<compile_context>
chip_gen: v5e
topology: v5e:2x2
jax: 0.10.0
libtpu: 0.0.40
codegen_flags: <defaults>
</compile_context>

<pallas_src>
import jax
import jax.numpy as jnp
from jax.experimental import pallas as pl
from jax.experimental.pallas import tpu as pltpu

K_IN = 784
K_PAD = 896          # 7 * 128, lane-aligned contraction dim for layer 1
N1 = 256
N2 = 128
N_OUT = 10
N_OUT_PAD = 128      # lane-dense output (padded, sliced back to 10 outside)


def mlp_kernel(x_ref, w1_ref, b1_ref, w2_ref, b2_ref, w3_ref, b3_ref, o_ref):
    # Layer 1: (TM, 896) @ (896, 256) + (1, 256) -> ReLU   (f32 accumulate)
    w1 = w1_ref[...]
    h1 = jnp.dot(x_ref[...].astype(w1.dtype), w1,
                 preferred_element_type=jnp.float32)
    h1 = jnp.maximum(h1 + b1_ref[...], 0.0)        # bias + ReLU in f32 (v5e VPU)

    # Layer 2: (TM, 256) @ (256, 128) + (1, 128) -> ReLU
    w2 = w2_ref[...]
    h2 = jnp.dot(h1.astype(w2.dtype), w2, preferred_element_type=jnp.float32)
    h2 = jnp.maximum(h2 + b2_ref[...], 0.0)

    # Layer 3: (TM, 128) @ (128, 128) + (1, 128)  (padded out features)
    w3 = w3_ref[...]
    out = jnp.dot(h2.astype(w3.dtype), w3, preferred_element_type=jnp.float32)
    o_ref[...] = (out + b3_ref[...]).astype(o_ref.dtype)


def vanilla_target_mlp_large(x, params, *, tile_m=256,
                             matmul_dtype=jnp.float32):
    """x: (B, 784) f32. params: dict of w1,b1,w2,b2,w3,b3 (see init_params)."""
    B, K = x.shape
    assert K == K_IN

    # --- wrapper-side layout plumbing (zero padding, dtype casts) ---
    n_tiles = pl.cdiv(B, tile_m)
    Bp = n_tiles * tile_m

    xp = jnp.zeros((Bp, K_PAD), matmul_dtype).at[:B, :K].set(
        x.astype(matmul_dtype))
    w1 = jnp.zeros((K_PAD, N1), matmul_dtype).at[:K, :].set(
        params["w1"].astype(matmul_dtype))
    w2 = params["w2"].astype(matmul_dtype)
    w3 = jnp.zeros((N2, N_OUT_PAD), matmul_dtype).at[:, :N_OUT].set(
        params["w3"].astype(matmul_dtype))
    b1 = params["b1"].astype(jnp.float32)
    b2 = params["b2"].astype(jnp.float32)
    b3 = jnp.zeros((1, N_OUT_PAD), jnp.float32).at[:, :N_OUT].set(
        params["b3"].astype(jnp.float32))

    out = pl.pallas_call(
        mlp_kernel,
        out_shape=jax.ShapeDtypeStruct((Bp, N_OUT_PAD), jnp.float32),
        grid_spec=pltpu.PrefetchScalarGridSpec(
            num_scalar_prefetch=0,
            grid=(n_tiles,),
            in_specs=[
                # x tiles stream (double-buffered) over the batch grid axis.
                pl.BlockSpec((tile_m, K_PAD), lambda i: (i, 0)),
                # Weights / biases: same block every step -> stay VMEM-resident.
                pl.BlockSpec((K_PAD, N1), lambda i: (0, 0)),
                pl.BlockSpec((1, N1), lambda i: (0, 0)),
                pl.BlockSpec((N1, N2), lambda i: (0, 0)),
                pl.BlockSpec((1, N2), lambda i: (0, 0)),
                pl.BlockSpec((N2, N_OUT_PAD), lambda i: (0, 0)),
                pl.BlockSpec((1, N_OUT_PAD), lambda i: (0, 0)),
            ],
            out_specs=pl.BlockSpec((tile_m, N_OUT_PAD), lambda i: (i, 0)),
        ),
        compiler_params=pltpu.CompilerParams(
            # Batch tiles are independent -> shard across both v7x TensorCores.
            dimension_semantics=("parallel",),
        ),
    )(xp, w1, b1, w2, b2, w3, b3)

    return out[:B, :N_OUT]


def init_params(key):
    """Deterministic init mimicking PyTorch nn.Linear default
    (U[-1/sqrt(fan_in), +1/sqrt(fan_in)])."""
    dims = [(784, 256), (256, 128), (128, 10)]
    params = {}
    for i, (fan_in, fan_out) in enumerate(dims, start=1):
        key, kw, kb = jax.random.split(key, 3)
        bound = 1.0 / jnp.sqrt(fan_in)
        params[f"w{i}"] = jax.random.uniform(
            kw, (fan_in, fan_out), jnp.float32, minval=-bound, maxval=bound)
        params[f"b{i}"] = jax.random.uniform(
            kb, (1, fan_out), jnp.float32, minval=-bound, maxval=bound)
    return params


def reference_forward(x, params):
    h1 = jnp.maximum(x @ params["w1"] + params["b1"], 0.0)
    h2 = jnp.maximum(h1 @ params["w2"] + params["b2"], 0.0)
    return h2 @ params["w3"] + params["b3"]


if __name__ == "__main__":
    key = jax.random.PRNGKey(0)
    key, kx1, kx2 = jax.random.split(key, 3)
    params = init_params(key)

    # Small single-tile case (batch padded up to one TILE_M tile internally).
    B1 = 8
    x1 = jax.random.normal(kx1, (B1, K_IN), jnp.float32)
    out1 = jax.block_until_ready(vanilla_target_mlp_large(x1, params))
    ref1 = reference_forward(x1, params)
    assert out1.shape == (B1, N_OUT)
    assert jnp.allclose(out1, ref1, atol=1e-4, rtol=1e-4)

    # Multi-tile case: exercises the batch grid + edge padding (3 grid steps).
    B2 = 520
    x2 = jax.random.normal(kx2, (B2, K_IN), jnp.float32)
    out2 = jax.block_until_ready(vanilla_target_mlp_large(x2, params))
    ref2 = reference_forward(x2, params)
    assert out2.shape == (B2, N_OUT)
    assert jnp.allclose(out2, ref2, atol=1e-4, rtol=1e-4)

    # bf16 matmul-input path (halved HBM traffic, f32 accumulation) — numerics
    # differ slightly from the f32 reference, so use a loose tolerance.
    out_bf16 = jax.block_until_ready(
        vanilla_target_mlp_large(x1, params, matmul_dtype=jnp.bfloat16))
    assert out_bf16.shape == (B1, N_OUT)
    assert jnp.allclose(out_bf16, ref1, atol=1e-1, rtol=1e-1)

    print("KERNEL_OK")
</pallas_src>

<mosaic_0001>
module attributes {stable_mosaic.version = 11 : i64} {
  func.func @mlp_kernel(%arg0: i32, %arg1: memref<256x896xf32, #tpu.memory_space<vmem>>, %arg2: memref<896x256xf32, #tpu.memory_space<vmem>>, %arg3: memref<1x256xf32, #tpu.memory_space<vmem>>, %arg4: memref<256x128xf32, #tpu.memory_space<vmem>>, %arg5: memref<1x128xf32, #tpu.memory_space<vmem>>, %arg6: memref<128x128xf32, #tpu.memory_space<vmem>>, %arg7: memref<1x128xf32, #tpu.memory_space<vmem>>, %arg8: memref<256x128xf32, #tpu.memory_space<vmem>>) attributes {dimension_semantics = [#tpu.dimension_semantics<parallel>], iteration_bounds = array<i64: 1>, scalar_prefetch = 0 : i64, scratch_operands = 0 : i64, tpu.core_type = #tpu.core_type<tc>, window_params = [{transform_indices = @transform_0, window_bounds = array<i64: 256, 896>}, {pipeline_mode = #tpu.pipeline_mode<synchronous>, transform_indices = @transform_1, window_bounds = array<i64: 896, 256>}, {pipeline_mode = #tpu.pipeline_mode<synchronous>, transform_indices = @transform_2, window_bounds = array<i64: 1, 256>}, {pipeline_mode = #tpu.pipeline_mode<synchronous>, transform_indices = @transform_3, window_bounds = array<i64: 256, 128>}, {pipeline_mode = #tpu.pipeline_mode<synchronous>, transform_indices = @transform_4, window_bounds = array<i64: 1, 128>}, {pipeline_mode = #tpu.pipeline_mode<synchronous>, transform_indices = @transform_5, window_bounds = array<i64: 128, 128>}, {pipeline_mode = #tpu.pipeline_mode<synchronous>, transform_indices = @transform_6, window_bounds = array<i64: 1, 128>}, {transform_indices = @transform_7, window_bounds = array<i64: 256, 128>}]} {
    %c0 = arith.constant 0 : index
    %c0_0 = arith.constant 0 : index
    %0 = vector.load %arg2[%c0, %c0_0] : memref<896x256xf32, #tpu.memory_space<vmem>>, vector<896x256xf32>
    %c0_1 = arith.constant 0 : index
    %c0_2 = arith.constant 0 : index
    %1 = vector.load %arg1[%c0_1, %c0_2] : memref<256x896xf32, #tpu.memory_space<vmem>>, vector<256x896xf32>
    %cst = arith.constant dense<0.000000e+00> : vector<256x256xf32>
    %2 = tpu.matmul %1, %0, %cst {dimension_numbers = #tpu.dot_dimension_numbers<[1], [0], [0], [1], [0, 0, 1, 1], [], []>} : vector<256x896xf32>, vector<896x256xf32>, vector<256x256xf32> -> vector<256x256xf32>
    %c0_3 = arith.constant 0 : index
    %c0_4 = arith.constant 0 : index
    %3 = vector.load %arg3[%c0_3, %c0_4] : memref<1x256xf32, #tpu.memory_space<vmem>>, vector<1x256xf32>
    %4 = vector.broadcast %3 : vector<1x256xf32> to vector<256x256xf32>
    %5 = arith.addf %2, %4 : vector<256x256xf32>
    %cst_5 = arith.constant 0.000000e+00 : f32
    %6 = vector.broadcast %cst_5 : f32 to vector<256x256xf32>
    %7 = arith.maximumf %5, %6 : vector<256x256xf32>
    %c0_6 = arith.constant 0 : index
    %c0_7 = arith.constant 0 : index
    %8 = vector.load %arg4[%c0_6, %c0_7] : memref<256x128xf32, #tpu.memory_space<vmem>>, vector<256x128xf32>
    %cst_8 = arith.constant dense<0.000000e+00> : vector<256x128xf32>
    %9 = tpu.matmul %7, %8, %cst_8 {dimension_numbers = #tpu.dot_dimension_numbers<[1], [0], [0], [1], [0, 0, 1, 1], [], []>} : vector<256x256xf32>, vector<256x128xf32>, vector<256x128xf32> -> vector<256x128xf32>
    %c0_9 = arith.constant 0 : index
    %c0_10 = arith.constant 0 : index
    %10 = vector.load %arg5[%c0_9, %c0_10] : memref<1x128xf32, #tpu.memory_space<vmem>>, vector<1x128xf32>
    %11 = vector.broadcast %10 : vector<1x128xf32> to vector<256x128xf32>
    %12 = arith.addf %9, %11 : vector<256x128xf32>
    %cst_11 = arith.constant 0.000000e+00 : f32
    %13 = vector.broadcast %cst_11 : f32 to vector<256x128xf32>
    %14 = arith.maximumf %12, %13 : vector<256x128xf32>
    %c0_12 = arith.constant 0 : index
    %c0_13 = arith.constant 0 : index
    %15 = vector.load %arg6[%c0_12, %c0_13] : memref<128x128xf32, #tpu.memory_space<vmem>>, vector<128x128xf32>
    %cst_14 = arith.constant dense<0.000000e+00> : vector<256x128xf32>
    %16 = tpu.matmul %14, %15, %cst_14 {dimension_numbers = #tpu.dot_dimension_numbers<[1], [0], [0], [1], [0, 0, 1, 1], [], []>} : vector<256x128xf32>, vector<128x128xf32>, vector<256x128xf32> -> vector<256x128xf32>
    %c0_15 = arith.constant 0 : index
    %c0_16 = arith.constant 0 : index
    %17 = vector.load %arg7[%c0_15, %c0_16] : memref<1x128xf32, #tpu.memory_space<vmem>>, vector<1x128xf32>
    %18 = vector.broadcast %17 : vector<1x128xf32> to vector<256x128xf32>
    %19 = arith.addf %16, %18 : vector<256x128xf32>
    %c0_17 = arith.constant 0 : index
    %c0_18 = arith.constant 0 : index
    %20 = vector.load %arg8[%c0_17, %c0_18] : memref<256x128xf32, #tpu.memory_space<vmem>>, vector<256x128xf32>
    tpu.vector_store %arg8[%c0_17, %c0_18], %19 {strides = array<i32>} : memref<256x128xf32, #tpu.memory_space<vmem>>, vector<256x128xf32>,
    return
  }
  func.func @transform_0(%arg0: i32) -> (i32, i32) {
    %c0_i32 = arith.constant 0 : i32
    %c0_i32_0 = arith.constant 0 : i32
    return %arg0, %c0_i32 : i32, i32
  }
  func.func @transform_1(%arg0: i32) -> (i32, i32) {
    %c0_i32 = arith.constant 0 : i32
    %c0_i32_0 = arith.constant 0 : i32
    %c0_i32_1 = arith.constant 0 : i32
    return %c0_i32, %c0_i32_0 : i32, i32
  }
  func.func @transform_2(%arg0: i32) -> (i32, i32) {
    %c0_i32 = arith.constant 0 : i32
    %c0_i32_0 = arith.constant 0 : i32
    %c0_i32_1 = arith.constant 0 : i32
    return %c0_i32, %c0_i32_0 : i32, i32
  }
  func.func @transform_3(%arg0: i32) -> (i32, i32) {
    %c0_i32 = arith.constant 0 : i32
    %c0_i32_0 = arith.constant 0 : i32
    %c0_i32_1 = arith.constant 0 : i32
    return %c0_i32, %c0_i32_0 : i32, i32
  }
  func.func @transform_4(%arg0: i32) -> (i32, i32) {
    %c0_i32 = arith.constant 0 : i32
    %c0_i32_0 = arith.constant 0 : i32
    %c0_i32_1 = arith.constant 0 : i32
    return %c0_i32, %c0_i32_0 : i32, i32
  }
  func.func @transform_5(%arg0: i32) -> (i32, i32) {
    %c0_i32 = arith.constant 0 : i32
    %c0_i32_0 = arith.constant 0 : i32
    %c0_i32_1 = arith.constant 0 : i32
    return %c0_i32, %c0_i32_0 : i32, i32
  }
  func.func @transform_6(%arg0: i32) -> (i32, i32) {
    %c0_i32 = arith.constant 0 : i32
    %c0_i32_0 = arith.constant 0 : i32
    %c0_i32_1 = arith.constant 0 : i32
    return %c0_i32, %c0_i32_0 : i32, i32
  }
  func.func @transform_7(%arg0: i32) -> (i32, i32) {
    %c0_i32 = arith.constant 0 : i32
    %c0_i32_0 = arith.constant 0 : i32
    return %arg0, %c0_i32 : i32, i32
  }
}

</mosaic_0001>

<bundles_post_ra>
// kernel: tpu_custom_call.1
= control target key start
LH: loop header
LB: loop body
LE: loop exit
PB: predicated region body
PF: predicated region fallthrough
CT: control target
= control target key end

     0   :  { %12 = vsyncpa [#allocation3], 0  ;;  %s3970_s0 = inlined_call_operand.hbm [shape: f32[256,896], index: 0, kind: input, shape index: {}]   ;;  %s3971_s1 = inlined_call_operand.hbm [shape: f32[896,256], index: 1, kind: input, shape index: {}]   ;;  %s3972_s2 = inlined_call_operand.hbm [shape: f32[1,256], index: 2, kind: input, shape index: {}]   ;;  %s3973_s3 = inlined_call_operand.hbm [shape: f32[256,128], index: 3, kind: input, shape index: {}]   ;;  %s3974_s4 = inlined_call_operand.vmem [shape: f32[1,128], index: 4, kind: input, shape index: {}]   ;;  %s3975_s5 = inlined_call_operand.hbm [shape: f32[128,128], index: 5, kind: input, shape index: {}]   ;;  %s3976_s6 = inlined_call_operand.vmem [shape: f32[1,128], index: 6, kind: input, shape index: {}]   ;;  %s3977_s7 = inlined_call_operand.hbm [shape: f32[256,128], index: 7, kind: output, shape index: {}]  }
   0x1   :  { %13 = vsyncpa [#allocation6], 0 }
   0x2   :  { %14 = vsyncpa [#allocation9], 0  ;;  %s33_s26 = sshll.u32 %s3971_s1, 4  ;;  %s34_s26 = int_to_ptr.hbm [resolvable:$true] %s33_s26 }
   0x3   :  { %15 = vsyncpa [#allocation4], 0  ;;  %s3117_s27 = smov [#allocation5]   ;;  %s57_s8 = sshll.u32 %s3973_s3, 4  ;;  %s58_s8 = int_to_ptr.hbm [resolvable:$true] %s57_s8 }
   0x4   :  { %s35_s28 = sshll.u32 %s3117_s27, 4  ;;  %s3118_s9 = smov 256   ;;  %s36_s28 = int_to_ptr.vmem [resolvable:$true] %s35_s28 }
   0x5   :  { %s3119_s10 = smov 16   ;;  %s3120_s11 = smov [#allocation8]  }
   0x6   :  { %41 = dma.hbm_to_vmem [thread:$0]  %s34_s26, 28672, %s36_s28, [#allocation6], %s3118_s9, %s3118_s9, %s3119_s10  }
   0x7   :  { %s59_s12 = sshll.u32 %s3120_s11, 4  ;;  %s3121_s13 = smov 128   ;;  %s60_s12 = int_to_ptr.vmem [resolvable:$true] %s59_s12 }
   0x8   :  { %s3122_s14 = smov 8   ;;  %s20_s16 = sshll.u32 %s3970_s0, 4  ;;  %s21_s16 = int_to_ptr.hbm [resolvable:$true] %s20_s16 }
   0x9   :  { %65 = dma.hbm_to_vmem [thread:$0]  %s58_s8, 4096, %s60_s12, [#allocation9], %s3121_s13, %s3121_s13, %s3122_s14  }
   0xa   :  { %s3123_s17 = smov [#allocation2]   ;;  %s47_s20 = sshll.u32 %s3972_s2, 4  ;;  %s48_s20 = int_to_ptr.hbm [resolvable:$true] %s47_s20 }
   0xb   :  { %s22_s3 = sshll.u32 %s3123_s17, 4  ;;  %s3124_s21 = smov 896   ;;  %s23_s3 = int_to_ptr.vmem [resolvable:$true] %s22_s3 }
   0xc   :  { %s3125_s22 = smov 56   ;;  %s3126_s23 = smov [#allocation7]  }
   0xd   :  { %28 = dma.hbm_to_vmem [thread:$0]  %s21_s16, 28672, %s23_s3, [#allocation3], %s3124_s21, %s3124_s21, %s3125_s22  }
   0xe   :  { %s49_s24 = sshll.u32 %s3126_s23, 4  ;;  %s72_s27 = sshll.u32 %s3975_s5, 4  ;;  %s50_s24 = int_to_ptr.vmem [resolvable:$true] %s49_s24  ;;  %s73_s27 = int_to_ptr.hbm [resolvable:$true] %s72_s27 }
   0xf   :  { %52 = dma.hbm_to_vmem [thread:$0]  %s48_s20, 32, %s50_s24, [#allocation6]  }
  0x10   :  { %s3127_s0 = smov [#allocation10]  }
  0x11   :  { %s74_s28 = sshll.u32 %s3127_s0, 4  ;;  %s75_s28 = int_to_ptr.vmem [resolvable:$true] %s74_s28 }
  0x12   :  { %80 = dma.hbm_to_vmem [thread:$0]  %s73_s27, 2048, %s75_s28, [#allocation9], %s3121_s13, %s3121_s13, %s3122_s14  }
  0x13   :  { %3109 = dma.done.wait [#allocation3], 28672  }
  0x14   :  { %3110 = vsyncadd [#allocation3], 4294938624 }
  0x15   :  { %3111 = dma.done.wait [#allocation6], 28704  }
  0x16   :  { %3112 = vsyncadd [#allocation6], 4294938592 }
  0x17   :  { %3113 = dma.done.wait [#allocation9], 6144  }
  0x18   :  { %3114 = vsyncadd [#allocation9], 4294961152  ;;  %v133_v0 = vld [vmem:[#allocation5 + $0xf0] sm:$0xff]  ;;  %v131_v1 = vld [vmem:[#allocation5 + $0xe0] sm:$0xff]  ;;  %s2668_s10 = sshll.u32 %s3977_s7, 4  ;;  %s2669_s10 = int_to_ptr.hbm [resolvable:$true] %s2668_s10 }
  0x19   :  { %2683 = vmatpush.msra.mxu1 %v133_v0  ;;  %2684 = vmatpush.msra.mxu2 %v133_v0  ;;  %v129_v2 = vld [vmem:[#allocation5 + $0xd0] sm:$0xff]  ;;  %v127_v3 = vld [vmem:[#allocation5 + $0xc0] sm:$0xff]  ;;  %v390_v28 = vld [vmem:[#allocation2 + $0x1f8] sm:$0xff] }
  0x1a   :  { %2685 = vmatpush.msra.mxu3 %v133_v0  ;;  %557 = vmatpush.msra.mxu0 %v133_v0  ;;  %v125_v4 = vld [vmem:[#allocation5 + $0xb0] sm:$0xff]  ;;  %v123_v5 = vld [vmem:[#allocation5 + $0xa0] sm:$0xff]  ;;  %v446_v29 = vld [vmem:[#allocation2 + $0x3b8] sm:$0xff] }
  0x1b   :  { %2686 = vmatpush.msra.mxu1 %v131_v1  ;;  %2687 = vmatpush.msra.mxu2 %v131_v1  ;;  %v121_v6 = vld [vmem:[#allocation5 + $0x90] sm:$0xff]  ;;  %v119_v7 = vld [vmem:[#allocation5 + $0x80] sm:$0xff]  ;;  %v502_v32 = vld [vmem:[#allocation2 + $0x578] sm:$0xff] }
  0x1c   :  { %2688 = vmatpush.msra.mxu3 %v131_v1  ;;  %558 = vmatpush.msra.mxu0 %v131_v1  ;;  %v117_v8 = vld [vmem:[#allocation5 + $0x70] sm:$0xff]  ;;  %v115_v9 = vld [vmem:[#allocation5 + $0x60] sm:$0xff]  ;;  %v334_v33 = vld [vmem:[#allocation2 + $0x38] sm:$0xff] }
  0x1d   :  { %2689 = vmatpush.msra.mxu1 %v129_v2  ;;  %2690 = vmatpush.msra.mxu2 %v129_v2  ;;  %v113_v10 = vld [vmem:[#allocation5 + $0x50] sm:$0xff]  ;;  %v111_v11 = vld [vmem:[#allocation5 + $0x40] sm:$0xff]  ;;  %v404_v59 = vld [vmem:[#allocation2 + $0x268] sm:$0xff] }
  0x1e   :  { %2691 = vmatpush.msra.mxu3 %v129_v2  ;;  %559 = vmatpush.msra.mxu0 %v129_v2  ;;  %v109_v12 = vld [vmem:[#allocation5 + $0x30] sm:$0xff]  ;;  %v107_v13 = vld [vmem:[#allocation5 + $0x20] sm:$0xff]  ;;  %v460_v60 = vld [vmem:[#allocation2 + $0x428] sm:$0xff] }
  0x1f   :  { %2692 = vmatpush.msra.mxu1 %v127_v3  ;;  %2693 = vmatpush.msra.mxu2 %v127_v3  ;;  %v105_v14 = vld [vmem:[#allocation5 + $0x10] sm:$0xff]  ;;  %v103_v15 = vld [vmem:[#allocation5] sm:$0xff]  ;;  %v516_v63 = vld [vmem:[#allocation2 + $0x5e8] sm:$0xff] }
  0x20   :  { %2694 = vmatpush.msra.mxu3 %v127_v3  ;;  %560 = vmatpush.msra.mxu0 %v127_v3  ;;  %v383_v16 = vld [vmem:[#allocation2 + $0x1c0] sm:$0xff]  ;;  %v165_v18 = vld [vmem:[#allocation5 + $0x1f0] sm:$0xff]  ;;  %v348_v1 = vld [vmem:[#allocation2 + $0xa8] sm:$0xff] }
  0x21   :  { %2695 = vmatpush.msra.mxu1 %v125_v4  ;;  %2696 = vmatpush.msra.mxu2 %v125_v4  ;;  %v439_v17 = vld [vmem:[#allocation2 + $0x380] sm:$0xff]  ;;  %v197_v22 = vld [vmem:[#allocation5 + $0x2f0] sm:$0xff] }
  0x22   :  { %2697 = vmatpush.msra.mxu3 %v125_v4  ;;  %561 = vmatpush.msra.mxu0 %v125_v4  ;;  %v495_v19 = vld [vmem:[#allocation2 + $0x540] sm:$0xff]  ;;  %v161_v23 = vld [vmem:[#allocation5 + $0x1d0] sm:$0xff] }
  0x23   :  { %2698 = vmatpush.msra.mxu1 %v123_v5  ;;  %2699 = vmatpush.msra.mxu2 %v123_v5  ;;  %v163_v20 = vld [vmem:[#allocation5 + $0x1e0] sm:$0xff]  ;;  %v229_v24 = vld [vmem:[#allocation5 + $0x3f0] sm:$0xff] }
  0x24   :  { %2700 = vmatpush.msra.mxu3 %v123_v5  ;;  %562 = vmatpush.msra.mxu0 %v123_v5  ;;  %v327_v21 = vld [vmem:[#allocation2] sm:$0xff]  ;;  %v157_v30 = vld [vmem:[#allocation5 + $0x1b0] sm:$0xff] }
  0x25   :  { %2701 = vmatpush.msra.mxu1 %v121_v6  ;;  %2702 = vmatpush.msra.mxu2 %v121_v6  ;;  %v195_v25 = vld [vmem:[#allocation5 + $0x2e0] sm:$0xff]  ;;  %v193_v31 = vld [vmem:[#allocation5 + $0x2d0] sm:$0xff] }
  0x26   :  { %2703 = vmatpush.msra.mxu3 %v121_v6  ;;  %563 = vmatpush.msra.mxu0 %v121_v6  ;;  %v227_v26 = vld [vmem:[#allocation5 + $0x3e0] sm:$0xff]  ;;  %v225_v36 = vld [vmem:[#allocation5 + $0x3d0] sm:$0xff] }
  0x27   :  { %2704 = vmatpush.msra.mxu1 %v119_v7  ;;  %2705 = vmatpush.msra.mxu2 %v119_v7  ;;  %v159_v27 = vld [vmem:[#allocation5 + $0x1c0] sm:$0xff]  ;;  %v153_v37 = vld [vmem:[#allocation5 + $0x190] sm:$0xff] }
  0x28   :  { %2706 = vmatpush.msra.mxu3 %v119_v7  ;;  %564 = vmatpush.msra.mxu0 %v119_v7  ;;  %v155_v34 = vld [vmem:[#allocation5 + $0x1a0] sm:$0xff]  ;;  %v261_v38 = vld [vmem:[#allocation5 + $0x4f0] sm:$0xff] }
  0x29   :  { %2707 = vmatpush.msra.mxu1 %v117_v8  ;;  %2708 = vmatpush.msra.mxu2 %v117_v8  ;;  %v191_v35 = vld [vmem:[#allocation5 + $0x2c0] sm:$0xff]  ;;  %v189_v39 = vld [vmem:[#allocation5 + $0x2b0] sm:$0xff] }
  0x2a   :  { %2709 = vmatpush.msra.mxu3 %v117_v8  ;;  %565 = vmatpush.msra.mxu0 %v117_v8  ;;  %v223_v40 = vld [vmem:[#allocation5 + $0x3c0] sm:$0xff]  ;;  %v397_v43 = vld [vmem:[#allocation2 + $0x230] sm:$0xff] }
  0x2b   :  { %2710 = vmatpush.msra.mxu1 %v115_v9  ;;  %2711 = vmatpush.msra.mxu2 %v115_v9  ;;  %v151_v41 = vld [vmem:[#allocation5 + $0x180] sm:$0xff]  ;;  %v453_v44 = vld [vmem:[#allocation2 + $0x3f0] sm:$0xff] }
  0x2c   :  { %2712 = vmatpush.msra.mxu3 %v115_v9  ;;  %566 = vmatpush.msra.mxu0 %v115_v9  ;;  %v259_v42 = vld [vmem:[#allocation5 + $0x4e0] sm:$0xff]  ;;  %v149_v45 = vld [vmem:[#allocation5 + $0x170] sm:$0xff] }
  0x2d   :  { %2713 = vmatpush.msra.mxu1 %v113_v10  ;;  %2714 = vmatpush.msra.mxu2 %v113_v10  ;;  %v187_v46 = vld [vmem:[#allocation5 + $0x2a0] sm:$0xff]  ;;  %v509_v47 = vld [vmem:[#allocation2 + $0x5b0] sm:$0xff] }
  0x2e   :  { %2715 = vmatpush.msra.mxu3 %v113_v10  ;;  %567 = vmatpush.msra.mxu0 %v113_v10  ;;  %v257_v48 = vld [vmem:[#allocation5 + $0x4d0] sm:$0xff]  ;;  %v147_v50 = vld [vmem:[#allocation5 + $0x160] sm:$0xff] }
  0x2f   :  { %2716 = vmatpush.msra.mxu1 %v111_v11  ;;  %2717 = vmatpush.msra.mxu2 %v111_v11  ;;  %v341_v49 = vld [vmem:[#allocation2 + $0x70] sm:$0xff]  ;;  %v255_v54 = vld [vmem:[#allocation5 + $0x4c0] sm:$0xff] }
  0x30   :  { %2718 = vmatpush.msra.mxu3 %v111_v11  ;;  %568 = vmatpush.msra.mxu0 %v111_v11  ;;  %v221_v51 = vld [vmem:[#allocation5 + $0x3b0] sm:$0xff]  ;;  %v219_v55 = vld [vmem:[#allocation5 + $0x3a0] sm:$0xff] }
  0x31   :  { %2719 = vmatpush.msra.mxu1 %v109_v12  ;;  %2720 = vmatpush.msra.mxu2 %v109_v12  ;;  %v185_v52 = vld [vmem:[#allocation5 + $0x290] sm:$0xff]  ;;  %v183_v56 = vld [vmem:[#allocation5 + $0x280] sm:$0xff] }
  0x32   :  { %2721 = vmatpush.msra.mxu3 %v109_v12  ;;  %569 = vmatpush.msra.mxu0 %v109_v12  ;;  %v145_v53 = vld [vmem:[#allocation5 + $0x150] sm:$0xff]  ;;  %v143_v57 = vld [vmem:[#allocation5 + $0x140] sm:$0xff] }
  0x33   :  { %2722 = vmatpush.msra.mxu1 %v107_v13  ;;  %2723 = vmatpush.msra.mxu2 %v107_v13  ;;  %v253_v58 = vld [vmem:[#allocation5 + $0x4b0] sm:$0xff]  ;;  %v215_v2 = vld [vmem:[#allocation5 + $0x380] sm:$0xff] }
  0x34   :  { %2724 = vmatpush.msra.mxu3 %v107_v13  ;;  %570 = vmatpush.msra.mxu0 %v107_v13  ;;  %v217_v61 = vld [vmem:[#allocation5 + $0x390] sm:$0xff]  ;;  %v179_v3 = vld [vmem:[#allocation5 + $0x260] sm:$0xff] }
  0x35   :  { %2725 = vmatpush.msra.mxu1 %v105_v14  ;;  %2726 = vmatpush.msra.mxu2 %v105_v14  ;;  %v141_v62 = vld [vmem:[#allocation5 + $0x130] sm:$0xff]  ;;  %v139_v4 = vld [vmem:[#allocation5 + $0x120] sm:$0xff] }
  0x36   :  { %2727 = vmatpush.msra.mxu3 %v105_v14  ;;  %571 = vmatpush.msra.mxu0 %v105_v14  ;;  %v181_v0 = vld [vmem:[#allocation5 + $0x270] sm:$0xff]  ;;  %v251_v6 = vld [vmem:[#allocation5 + $0x4a0] sm:$0xff] }
  0x37   :  { %2728 = vmatpush.msra.mxu1 %v103_v15  ;;  %2729 = vmatpush.msra.mxu2 %v103_v15  ;;  %v213_v5 = vld [vmem:[#allocation5 + $0x370] sm:$0xff]  ;;  %v211_v9 = vld [vmem:[#allocation5 + $0x360] sm:$0xff] }
  0x38   :  { %597 = vmatmul.f32.vlgmr.msra.gmra.mxu1 %v383_v16  ;;  %621 = vmatmul.f32.vlgmr.msra.gmra.mxu2 %v439_v17  ;;  %v177_v7 = vld [vmem:[#allocation5 + $0x250] sm:$0xff]  ;;  %v411_v11 = vld [vmem:[#allocation2 + $0x2a0] sm:$0xff] }
  0x39   :  { %670 = vmatpush.msrb.mxu1 %v165_v18  ;;  %2730 = vmatpush.msra.mxu3 %v103_v15  ;;  %v137_v8 = vld [vmem:[#allocation5 + $0x110] sm:$0xff]  ;;  %v467_v12 = vld [vmem:[#allocation2 + $0x460] sm:$0xff] }
  0x3a   :  { %645 = vmatmul.f32.vlgmr.msra.gmra.mxu3 %v495_v19  ;;  %572 = vmatpush.msra.mxu0 %v103_v15  ;;  %v249_v10 = vld [vmem:[#allocation5 + $0x490] sm:$0xff]  ;;  %v175_v13 = vld [vmem:[#allocation5 + $0x240] sm:$0xff] }
  0x3b   :  { %671 = vmatpush.msrb.mxu1 %v163_v20  ;;  %573 = vmatmul.f32.vlgmr.msra.gmra.mxu0 %v327_v21  ;;  %v209_v14 = vld [vmem:[#allocation5 + $0x350] sm:$0xff]  ;;  %v523_v15 = vld [vmem:[#allocation2 + $0x620] sm:$0xff] }
  0x3c   :  { %783 = vmatpush.msrb.mxu2 %v197_v22  ;;  %896 = vmatpush.msrb.mxu3 %v229_v24  ;;  %v247_v16 = vld [vmem:[#allocation5 + $0x480] sm:$0xff]  ;;  %v173_v18 = vld [vmem:[#allocation5 + $0x230] sm:$0xff] }
  0x3d   :  { %672 = vmatpush.msrb.mxu1 %v161_v23  ;;  %1009 = vmatpush.msrb.mxu0 %v261_v38  ;;  %v355_v17 = vld [vmem:[#allocation2 + $0xe0] sm:$0xff]  ;;  %v245_v20 = vld [vmem:[#allocation5 + $0x470] sm:$0xff] }
  0x3e   :  { %784 = vmatpush.msrb.mxu2 %v195_v25  ;;  %897 = vmatpush.msrb.mxu3 %v227_v26  ;;  %v207_v19 = vld [vmem:[#allocation5 + $0x340] sm:$0xff]  ;;  %v205_v23 = vld [vmem:[#allocation5 + $0x330] sm:$0xff] }
  0x3f   :  { %673 = vmatpush.msrb.mxu1 %v159_v27  ;;  %1010 = vmatpush.msrb.mxu0 %v259_v42  ;;  %v171_v21 = vld [vmem:[#allocation5 + $0x220] sm:$0xff]  ;;  %v169_v25 = vld [vmem:[#allocation5 + $0x210] sm:$0xff]  ;;  %v418_v27 = vld [vmem:[#allocation2 + $0x2d8] sm:$0xff] }
  0x40   :  { %600 = vmatmul.f32.gmra.mxu1 %v390_v28  ;;  %624 = vmatmul.f32.gmra.mxu2 %v446_v29  ;;  %v135_v22 = vld [vmem:[#allocation5 + $0x100] sm:$0xff]  ;;  %v293_v26 = vld [vmem:[#allocation5 + $0x5f0] sm:$0xff]  ;;  %v474_v28 = vld [vmem:[#allocation2 + $0x498] sm:$0xff] }
  0x41   :  { %674 = vmatpush.msrb.mxu1 %v157_v30  ;;  %785 = vmatpush.msrb.mxu2 %v193_v31  ;;  %v243_v24 = vld [vmem:[#allocation5 + $0x460] sm:$0xff]  ;;  %v530_v31 = vld [vmem:[#allocation2 + $0x658] sm:$0xff]  ;;  %v425_v38 = vld [vmem:[#allocation2 + $0x310] sm:$0xff] }
  0x42   :  { %648 = vmatmul.f32.gmra.mxu3 %v502_v32  ;;  %1011 = vmatpush.msrb.mxu0 %v257_v48  ;;  %v203_v29 = vld [vmem:[#allocation5 + $0x320] sm:$0xff]  ;;  %v241_v32 = vld [vmem:[#allocation5 + $0x450] sm:$0xff]  ;;  %v544_v48 = vld [vmem:[#allocation2 + $0x6c8] sm:$0xff] }
  0x43   :  { %576 = vmatmul.f32.gmra.mxu0 %v334_v33  ;;  %675 = vmatpush.msrb.mxu1 %v155_v34  ;;  %v167_v30 = vld [vmem:[#allocation5 + $0x200] sm:$0xff]  ;;  %v362_v33 = vld [vmem:[#allocation2 + $0x118] sm:$0xff]  ;;  %v201_v34 = vld [vmem:[#allocation5 + $0x310] sm:$0xff] }
  0x44   :  { %786 = vmatpush.msrb.mxu2 %v191_v35  ;;  %898 = vmatpush.msrb.mxu3 %v225_v36  ;;  %v239_v35 = vld [vmem:[#allocation5 + $0x440] sm:$0xff]  ;;  %v369_v42 = vld [vmem:[#allocation2 + $0x150] sm:$0xff] }
  0x45   :  { %676 = vmatpush.msrb.mxu1 %v153_v37  ;;  %1012 = vmatpush.msrb.mxu0 %v255_v54  ;;  %v199_v36 = vld [vmem:[#allocation5 + $0x300] sm:$0xff]  ;;  %v237_v37 = vld [vmem:[#allocation5 + $0x430] sm:$0xff] }
  0x46   :  { %787 = vmatpush.msrb.mxu2 %v189_v39  ;;  %899 = vmatpush.msrb.mxu3 %v223_v40  ;;  %v481_v39 = vld [vmem:[#allocation2 + $0x4d0] sm:$0xff]  ;;  %v235_v40 = vld [vmem:[#allocation5 + $0x420] sm:$0xff] }
  0x47   :  { %677 = vmatpush.msrb.mxu1 %v151_v41  ;;  %1013 = vmatpush.msrb.mxu0 %v253_v58  ;;  %v537_v41 = vld [vmem:[#allocation2 + $0x690] sm:$0xff]  ;;  %v338_v58 = vld [vmem:[#allocation2 + $0x58] sm:$0xff] }
  0x48   :  { %603 = vmatmul.f32.gmra.mxu1 %v397_v43  ;;  %627 = vmatmul.f32.gmra.mxu2 %v453_v44  ;;  %v291_v43 = vld [vmem:[#allocation5 + $0x5e0] sm:$0xff]  ;;  %v233_v44 = vld [vmem:[#allocation5 + $0x410] sm:$0xff] }
  0x49   :  { %678 = vmatpush.msrb.mxu1 %v149_v45  ;;  %788 = vmatpush.msrb.mxu2 %v187_v46  ;;  %v231_v45 = vld [vmem:[#allocation5 + $0x400] sm:$0xff]  ;;  %v432_v46 = vld [vmem:[#allocation2 + $0x348] sm:$0xff]  ;;  %v289_v54 = vld [vmem:[#allocation5 + $0x5d0] sm:$0xff] }
  0x4a   :  { %651 = vmatmul.f32.gmra.mxu3 %v509_v47  ;;  %1014 = vmatpush.msrb.mxu0 %v251_v6  ;;  %v488_v47 = vld [vmem:[#allocation2 + $0x508] sm:$0xff]  ;;  %v358_v6 = vld [vmem:[#allocation2 + $0xf8] sm:$0xff] }
  0x4b   :  { %579 = vmatmul.f32.gmra.mxu0 %v341_v49  ;;  %679 = vmatpush.msrb.mxu1 %v147_v50  ;;  %v376_v49 = vld [vmem:[#allocation2 + $0x188] sm:$0xff] }
  0x4c   :  { %900 = vmatpush.msrb.mxu3 %v221_v51  ;;  %789 = vmatpush.msrb.mxu2 %v185_v52  ;;  %v328_v50 = vld [vmem:[#allocation2 + $0x8] sm:$0xff]  ;;  %v329_v51 = vld [vmem:[#allocation2 + $0x10] sm:$0xff]  ;;  %v330_v52 = vld [vmem:[#allocation2 + $0x18] sm:$0xff] }
  0x4d   :  { %680 = vmatpush.msrb.mxu1 %v145_v53  ;;  %1015 = vmatpush.msrb.mxu0 %v249_v10  ;;  %v331_v53 = vld [vmem:[#allocation2 + $0x20] sm:$0xff]  ;;  %v364_v10 = vld [vmem:[#allocation2 + $0x128] sm:$0xff] }
  0x4e   :  { %901 = vmatpush.msrb.mxu3 %v219_v55  ;;  %790 = vmatpush.msrb.mxu2 %v183_v56  ;;  %v335_v55 = vld [vmem:[#allocation2 + $0x40] sm:$0xff]  ;;  %v336_v56 = vld [vmem:[#allocation2 + $0x48] sm:$0xff] }
  0x4f   :  { %681 = vmatpush.msrb.mxu1 %v143_v57  ;;  %1016 = vmatpush.msrb.mxu0 %v247_v16  ;;  %v337_v57 = vld [vmem:[#allocation2 + $0x50] sm:$0xff] }
  0x50   :  { %606 = vmatmul.f32.gmra.mxu1 %v404_v59  ;;  %630 = vmatmul.f32.gmra.mxu2 %v460_v60  ;;  %v342_v59 = vld [vmem:[#allocation2 + $0x78] sm:$0xff]  ;;  %v343_v60 = vld [vmem:[#allocation2 + $0x80] sm:$0xff]  ;;  %v373_v16 = vld [vmem:[#allocation2 + $0x170] sm:$0xff] }
  0x51   :  { %902 = vmatpush.msrb.mxu3 %v217_v61  ;;  %682 = vmatpush.msrb.mxu1 %v141_v62  ;;  %v344_v61 = vld [vmem:[#allocation2 + $0x88] sm:$0xff]  ;;  %v345_v62 = vld [vmem:[#allocation2 + $0x90] sm:$0xff] }
  0x52   :  { %654 = vmatmul.f32.gmra.mxu3 %v516_v63  ;;  %791 = vmatpush.msrb.mxu2 %v181_v0  ;;  %v287_v63 = vld [vmem:[#allocation5 + $0x5c0] sm:$0xff]  ;;  %v349_v0 = vld [vmem:[#allocation2 + $0xb0] sm:$0xff] }
  0x53   :  { %582 = vmatmul.f32.gmra.mxu0 %v348_v1  ;;  %903 = vmatpush.msrb.mxu3 %v215_v2  ;;  %v350_v1 = vld [vmem:[#allocation2 + $0xb8] sm:$0xff]  ;;  %v351_v2 = vld [vmem:[#allocation2 + $0xc0] sm:$0xff] }
  0x54   :  { %792 = vmatpush.msrb.mxu2 %v179_v3  ;;  %683 = vmatpush.msrb.mxu1 %v139_v4  ;;  %v352_v3 = vld [vmem:[#allocation2 + $0xc8] sm:$0xff] }
  0x55   :  { %904 = vmatpush.msrb.mxu3 %v213_v5  ;;  %1017 = vmatpush.msrb.mxu0 %v245_v20  ;;  %v356_v4 = vld [vmem:[#allocation2 + $0xe8] sm:$0xff]  ;;  %v357_v5 = vld [vmem:[#allocation2 + $0xf0] sm:$0xff]  ;;  %v379_v20 = vld [vmem:[#allocation2 + $0x1a0] sm:$0xff] }
  0x56   :  { %793 = vmatpush.msrb.mxu2 %v177_v7  ;;  %684 = vmatpush.msrb.mxu1 %v137_v8  ;;  %v359_v7 = vld [vmem:[#allocation2 + $0x100] sm:$0xff]  ;;  %v285_v8 = vld [vmem:[#allocation5 + $0x5b0] sm:$0xff] }
  0x57   :  { %905 = vmatpush.msrb.mxu3 %v211_v9  ;;  %1018 = vmatpush.msrb.mxu0 %v243_v24  ;;  %v363_v9 = vld [vmem:[#allocation2 + $0x120] sm:$0xff]  ;;  %v385_v24 = vld [vmem:[#allocation2 + $0x1d0] sm:$0xff] }
  0x58   :  { %609 = vmatmul.f32.gmra.mxu1 %v411_v11  ;;  %633 = vmatmul.f32.gmra.mxu2 %v467_v12  ;;  %v365_v11 = vld [vmem:[#allocation2 + $0x130] sm:$0xff]  ;;  %v366_v12 = vld [vmem:[#allocation2 + $0x138] sm:$0xff] }
  0x59   :  { %794 = vmatpush.msrb.mxu2 %v175_v13  ;;  %906 = vmatpush.msrb.mxu3 %v209_v14  ;;  %v370_v13 = vld [vmem:[#allocation2 + $0x158] sm:$0xff]  ;;  %v371_v14 = vld [vmem:[#allocation2 + $0x160] sm:$0xff] }
  0x5a   :  { %657 = vmatmul.f32.gmra.mxu3 %v523_v15  ;;  %685 = vmatpush.msrb.mxu1 %v135_v22  ;;  %v372_v15 = vld [vmem:[#allocation2 + $0x168] sm:$0xff] }
  0x5b   :  { %585 = vmatmul.f32.gmra.mxu0 %v355_v17  ;;  %795 = vmatpush.msrb.mxu2 %v173_v18  ;;  %v283_v17 = vld [vmem:[#allocation5 + $0x5a0] sm:$0xff]  ;;  %v377_v18 = vld [vmem:[#allocation2 + $0x190] sm:$0xff] }
  0x5c   :  { %907 = vmatpush.msrb.mxu3 %v207_v19  ;;  %1122 = vmatpush.msra.mxu1 %v293_v26  ;;  %v378_v19 = vld [vmem:[#allocation2 + $0x198] sm:$0xff] }
  0x5d   :  { %796 = vmatpush.msrb.mxu2 %v171_v21  ;;  %1019 = vmatpush.msrb.mxu0 %v241_v32  ;;  %v380_v21 = vld [vmem:[#allocation2 + $0x1a8] sm:$0xff]  ;;  %v386_v26 = vld [vmem:[#allocation2 + $0x1d8] sm:$0xff] }
  0x5e   :  { %908 = vmatpush.msrb.mxu3 %v205_v23  ;;  %1123 = vmatpush.msra.mxu1 %v291_v43  ;;  %v384_v23 = vld [vmem:[#allocation2 + $0x1c8] sm:$0xff] }
  0x5f   :  { %797 = vmatpush.msrb.mxu2 %v169_v25  ;;  %1020 = vmatpush.msrb.mxu0 %v239_v35  ;;  %v551_v25 = vld [vmem:[#allocation7] sm:$0x3] }
  0x60   :  { %612 = vmatmul.f32.gmra.mxu1 %v418_v27  ;;  %636 = vmatmul.f32.gmra.mxu2 %v474_v28  ;;  %v387_v28 = vld [vmem:[#allocation2 + $0x1e0] sm:$0xff] }
  0x61   :  { %909 = vmatpush.msrb.mxu3 %v203_v29  ;;  %798 = vmatpush.msrb.mxu2 %v167_v30  ;;  %v281_v29 = vld [vmem:[#allocation5 + $0x590] sm:$0xff]  ;;  %v3194_v30 = vperm.slane %v551_v25, 0  ;;  %v391_v35 = vld [vmem:[#allocation2 + $0x200] sm:$0xff] }
  0x62   :  { %660 = vmatmul.f32.gmra.mxu3 %v530_v31  ;;  %1021 = vmatpush.msrb.mxu0 %v237_v37 }
  0x63   :  { %588 = vmatmul.f32.gmra.mxu0 %v362_v33  ;;  %910 = vmatpush.msrb.mxu3 %v201_v34 }
  0x64   :  { %1022 = vmatpush.msrb.mxu0 %v235_v40  ;;  %1124 = vmatpush.msra.mxu1 %v289_v54  ;;  %v394_v40 = vld [vmem:[#allocation2 + $0x218] sm:$0xff] }
  0x65   :  { %911 = vmatpush.msrb.mxu3 %v199_v36  ;;  %v392_v36 = vld [vmem:[#allocation2 + $0x208] sm:$0xff] }
  0x66   :  { %1023 = vmatpush.msrb.mxu0 %v233_v44  ;;  %1125 = vmatpush.msra.mxu1 %v287_v63 }
  0x68   :  { %615 = vmatmul.f32.gmra.mxu1 %v425_v38  ;;  %639 = vmatmul.f32.gmra.mxu2 %v481_v39  ;;  %v393_v38 = vld [vmem:[#allocation2 + $0x210] sm:$0xff] }
  0x69   :  { %1024 = vmatpush.msrb.mxu0 %v231_v45  ;;  %1126 = vmatpush.msra.mxu1 %v285_v8  ;;  %v398_v45 = vld [vmem:[#allocation2 + $0x238] sm:$0xff]  ;;  %v277_v8 = vld [vmem:[#allocation5 + $0x570] sm:$0xff] }
  0x6a   :  { %663 = vmatmul.f32.gmra.mxu3 %v537_v41 }
  0x6b   :  { %591 = vmatmul.f32.gmra.mxu0 %v369_v42  ;;  %1127 = vmatpush.msra.mxu1 %v283_v17 }
  0x6d   :  { %1128 = vmatpush.msra.mxu1 %v281_v29 }
  0x70   :  { %618 = vmatmul.f32.gmra.mxu1 %v432_v46  ;;  %642 = vmatmul.f32.gmra.mxu2 %v488_v47  ;;  %v399_v46 = vld [vmem:[#allocation2 + $0x240] sm:$0xff] }
  0x72   :  { %666 = vmatmul.f32.gmra.mxu3 %v544_v48  ;;  %v400_v48 = vld [vmem:[#allocation2 + $0x248] sm:$0xff] }
  0x73   :  { %594 = vmatmul.f32.gmra.mxu0 %v376_v49 }
  0x78   :  { %686 = vmatmul.f32.vlgmr.msrb.gmra.mxu1 %v328_v50  ;;  %799 = vmatmul.f32.vlgmr.msrb.gmra.mxu2 %v329_v51  ;;  %v401_v50 = vld [vmem:[#allocation2 + $0x250] sm:$0xff]  ;;  %v279_v51 = vld [vmem:[#allocation5 + $0x580] sm:$0xff] }
  0x79   :  { %1129 = vmatpush.msra.mxu1 %v279_v51 }
  0x7a   :  { %912 = vmatmul.f32.vlgmr.msrb.gmra.mxu3 %v330_v52 }
  0x7b   :  { %1025 = vmatmul.f32.vlgmr.msrb.gmra.mxu0 %v331_v53  ;;  %1130 = vmatpush.msra.mxu1 %v277_v8 }
  0x80   :  { %689 = vmatmul.f32.gmra.mxu1 %v335_v55  ;;  %802 = vmatmul.f32.gmra.mxu2 %v336_v56  ;;  %v405_v56 = vld [vmem:[#allocation2 + $0x270] sm:$0xff] }
  0x82   :  { %915 = vmatmul.f32.gmra.mxu3 %v337_v57  ;;  %v406_v57 = vld [vmem:[#allocation2 + $0x278] sm:$0xff] }
  0x83   :  { %1028 = vmatmul.f32.gmra.mxu0 %v338_v58 }
  0x88   :  { %692 = vmatmul.f32.gmra.mxu1 %v342_v59  ;;  %805 = vmatmul.f32.gmra.mxu2 %v343_v60  ;;  %v407_v59 = vld [vmem:[#allocation2 + $0x280] sm:$0xff] }
  0x8a   :  { %918 = vmatmul.f32.gmra.mxu3 %v344_v61  ;;  %v408_v61 = vld [vmem:[#allocation2 + $0x288] sm:$0xff] }
  0x8b   :  { %1031 = vmatmul.f32.gmra.mxu0 %v345_v62 }
  0x90   :  { %695 = vmatmul.f32.gmra.mxu1 %v349_v0  ;;  %808 = vmatmul.f32.gmra.mxu2 %v350_v1 }
  0x92   :  { %921 = vmatmul.f32.gmra.mxu3 %v351_v2  ;;  %v412_v2 = vld [vmem:[#allocation2 + $0x2a8] sm:$0xff] }
  0x93   :  { %1034 = vmatmul.f32.gmra.mxu0 %v352_v3  ;;  %v413_v3 = vld [vmem:[#allocation2 + $0x2b0] sm:$0xff] }
  0x98   :  { %698 = vmatmul.f32.gmra.mxu1 %v356_v4  ;;  %811 = vmatmul.f32.gmra.mxu2 %v357_v5  ;;  %v414_v5 = vld [vmem:[#allocation2 + $0x2b8] sm:$0xff] }
  0x9a   :  { %924 = vmatmul.f32.gmra.mxu3 %v358_v6 }
  0x9b   :  { %1037 = vmatmul.f32.gmra.mxu0 %v359_v7  ;;  %v415_v7 = vld [vmem:[#allocation2 + $0x2c0] sm:$0xff] }
  0xa0   :  { %701 = vmatmul.f32.gmra.mxu1 %v363_v9  ;;  %814 = vmatmul.f32.gmra.mxu2 %v364_v10  ;;  %v325_v9 = vld [vmem:[#allocation5 + $0x6f0] sm:$0xff]  ;;  %v134_v10 = vld [vmem:[#allocation5 + $0xf8] sm:$0xff] }
  0xa1   :  { %1235 = vmatpush.msra.mxu2 %v325_v9  ;;  %1348 = vmatpush.msra.mxu3 %v134_v10  ;;  %v443_v9 = vld [vmem:[#allocation2 + $0x3a0] sm:$0xff]  ;;  %v273_v10 = vld [vmem:[#allocation5 + $0x550] sm:$0xff] }
  0xa2   :  { %927 = vmatmul.f32.gmra.mxu3 %v365_v11 }
  0xa3   :  { %1040 = vmatmul.f32.gmra.mxu0 %v366_v12 }
  0xa8   :  { %704 = vmatmul.f32.gmra.mxu1 %v370_v13  ;;  %817 = vmatmul.f32.gmra.mxu2 %v371_v14 }
  0xaa   :  { %930 = vmatmul.f32.gmra.mxu3 %v372_v15  ;;  %v419_v15 = vld [vmem:[#allocation2 + $0x2e0] sm:$0xff] }
  0xab   :  { %1043 = vmatmul.f32.gmra.mxu0 %v373_v16  ;;  %v420_v16 = vld [vmem:[#allocation2 + $0x2e8] sm:$0xff] }
  0xb0   :  { %707 = vmatmul.f32.gmra.mxu1 %v377_v18  ;;  %820 = vmatmul.f32.gmra.mxu2 %v378_v19  ;;  %v421_v18 = vld [vmem:[#allocation2 + $0x2f0] sm:$0xff] }
  0xb2   :  { %933 = vmatmul.f32.gmra.mxu3 %v379_v20  ;;  %v422_v20 = vld [vmem:[#allocation2 + $0x2f8] sm:$0xff] }
  0xb3   :  { %1046 = vmatmul.f32.gmra.mxu0 %v380_v21 }
  0xb5   :  { %v3190_v22 = vpop.f32.mrf.mxu1 }
  0xb8   :  { %710 = vmatmul.f32.gmra.mxu1 %v384_v23  ;;  %823 = vmatmul.f32.gmra.mxu2 %v385_v24  ;;  %v3192_v27 = vpop.f32.mrf.mxu0 }
  0xba   :  { %936 = vmatmul.f32.gmra.mxu3 %v386_v26  ;;  %v426_v26 = vld [vmem:[#allocation2 + $0x318] sm:$0xff] }
  0xbb   :  { %v622_v31 = vpop.f32.mrf.mxu2  ;;  %1049 = vmatmul.f32.gmra.mxu0 %v387_v28  ;;  %v427_v28 = vld [vmem:[#allocation2 + $0x320] sm:$0xff] }
  0xbc   :  { %v3197_v32 = vadd.f32 %v622_v31, %v3194_v30  ;;  %v428_v31 = vld [vmem:[#allocation2 + $0x328] sm:$0xff] }
  0xbd   :  { %v3199_v33 = vpop.f32.mrf.mxu1  ;;  %v646_v34 = vpop.f32.mrf.mxu3 }
  0xbe   :  { %v3202_v37 = vadd.f32 %v646_v34, %v3194_v30 }
  0xc0   :  { %713 = vmatmul.f32.gmra.mxu1 %v391_v35  ;;  %826 = vmatmul.f32.gmra.mxu2 %v392_v36  ;;  %v3204_v39 = vpop.f32.mrf.mxu0  ;;  %v429_v35 = vld [vmem:[#allocation2 + $0x330] sm:$0xff]  ;;  %v275_v36 = vld [vmem:[#allocation5 + $0x560] sm:$0xff] }
  0xc1   :  { %1131 = vmatpush.msra.mxu1 %v275_v36 }
  0xc2   :  { %939 = vmatmul.f32.gmra.mxu3 %v393_v38  ;;  %v323_v38 = vld [vmem:[#allocation5 + $0x6e0] sm:$0xff] }
  0xc3   :  { %v625_v41 = vpop.f32.mrf.mxu2  ;;  %1052 = vmatmul.f32.gmra.mxu0 %v394_v40  ;;  %1236 = vmatpush.msra.mxu2 %v323_v38  ;;  %v132_v40 = vld [vmem:[#allocation5 + $0xe8] sm:$0xff]  ;;  %v450_v38 = vld [vmem:[#allocation2 + $0x3d8] sm:$0xff] }
  0xc4   :  { %v3207_v42 = vadd.f32 %v625_v41, %v3194_v30  ;;  %1349 = vmatpush.msra.mxu3 %v132_v40  ;;  %1132 = vmatpush.msra.mxu1 %v273_v10 }
  0xc5   :  { %v3209_v43 = vpop.f32.mrf.mxu1  ;;  %v649_v44 = vpop.f32.mrf.mxu3 }
  0xc6   :  { %v3212_v47 = vadd.f32 %v649_v44, %v3194_v30 }
  0xc8   :  { %716 = vmatmul.f32.gmra.mxu1 %v398_v45  ;;  %829 = vmatmul.f32.gmra.mxu2 %v399_v46  ;;  %v3214_v49 = vpop.f32.mrf.mxu0 }
  0xca   :  { %942 = vmatmul.f32.gmra.mxu3 %v400_v48  ;;  %v433_v48 = vld [vmem:[#allocation2 + $0x350] sm:$0xff] }
  0xcb   :  { %v628_v52 = vpop.f32.mrf.mxu2  ;;  %1055 = vmatmul.f32.gmra.mxu0 %v401_v50  ;;  %v434_v50 = vld [vmem:[#allocation2 + $0x358] sm:$0xff] }
  0xcc   :  { %v3217_v53 = vadd.f32 %v628_v52, %v3194_v30  ;;  %v435_v52 = vld [vmem:[#allocation2 + $0x360] sm:$0xff] }
  0xcd   :  { %v3219_v54 = vpop.f32.mrf.mxu1  ;;  %v652_v55 = vpop.f32.mrf.mxu3 }
  0xce   :  { %v3222_v58 = vadd.f32 %v652_v55, %v3194_v30 }
  0xd0   :  { %719 = vmatmul.f32.gmra.mxu1 %v405_v56  ;;  %832 = vmatmul.f32.gmra.mxu2 %v406_v57  ;;  %v3224_v60 = vpop.f32.mrf.mxu0  ;;  %v436_v56 = vld [vmem:[#allocation2 + $0x368] sm:$0xff] }
  0xd2   :  { %945 = vmatmul.f32.gmra.mxu3 %v407_v59 }
  0xd3   :  { %v631_v62 = vpop.f32.mrf.mxu2  ;;  %1058 = vmatmul.f32.gmra.mxu0 %v408_v61 }
  0xd4   :  { %v3227_v63 = vadd.f32 %v631_v62, %v3194_v30 }
  0xd5   :  { %v3229_v0 = vpop.f32.mrf.mxu1  ;;  %v655_v1 = vpop.f32.mrf.mxu3 }
  0xd6   :  { %v3232_v4 = vadd.f32 %v655_v1, %v3194_v30  ;;  %v440_v1 = vld [vmem:[#allocation2 + $0x388] sm:$0xff] }
  0xd8   :  { %722 = vmatmul.f32.gmra.mxu1 %v412_v2  ;;  %835 = vmatmul.f32.gmra.mxu2 %v413_v3  ;;  %v3234_v6 = vpop.f32.mrf.mxu0  ;;  %v441_v2 = vld [vmem:[#allocation2 + $0x390] sm:$0xff]  ;;  %v575_v3 = vadd.f32 %v3192_v27, %v3194_v30 }
  0xda   :  { %948 = vmatmul.f32.gmra.mxu3 %v414_v5 }
  0xdb   :  { %v634_v11 = vpop.f32.mrf.mxu2  ;;  %1061 = vmatmul.f32.gmra.mxu0 %v415_v7  ;;  %v442_v7 = vld [vmem:[#allocation2 + $0x398] sm:$0xff] }
  0xdc   :  { %v3237_v12 = vadd.f32 %v634_v11, %v3194_v30  ;;  %v321_v11 = vld [vmem:[#allocation5 + $0x6d0] sm:$0xff] }
  0xdd   :  { %v3239_v13 = vpop.f32.mrf.mxu1  ;;  %v658_v14 = vpop.f32.mrf.mxu3  ;;  %1237 = vmatpush.msra.mxu2 %v321_v11 }
  0xde   :  { %v3242_v17 = vadd.f32 %v658_v14, %v3194_v30 }
  0xe0   :  { %725 = vmatmul.f32.gmra.mxu1 %v419_v15  ;;  %838 = vmatmul.f32.gmra.mxu2 %v420_v16  ;;  %v3244_v19 = vpop.f32.mrf.mxu0  ;;  %v130_v15 = vld [vmem:[#allocation5 + $0xd8] sm:$0xff] }
  0xe1   :  { %1350 = vmatpush.msra.mxu3 %v130_v15  ;;  %v461_v15 = vld [vmem:[#allocation2 + $0x430] sm:$0xff] }
  0xe2   :  { %951 = vmatmul.f32.gmra.mxu3 %v421_v18 }
  0xe3   :  { %v637_v21 = vpop.f32.mrf.mxu2  ;;  %1064 = vmatmul.f32.gmra.mxu0 %v422_v20 }
  0xe4   :  { %v3247_v23 = vadd.f32 %v637_v21, %v3194_v30  ;;  %v447_v21 = vld [vmem:[#allocation2 + $0x3c0] sm:$0xff] }
  0xe5   :  { %v3249_v24 = vpop.f32.mrf.mxu1  ;;  %v661_v25 = vpop.f32.mrf.mxu3 }
  0xe6   :  { %v3252_v29 = vadd.f32 %v661_v25, %v3194_v30  ;;  %v448_v25 = vld [vmem:[#allocation2 + $0x3c8] sm:$0xff] }
  0xe8   :  { %728 = vmatmul.f32.gmra.mxu1 %v426_v26  ;;  %841 = vmatmul.f32.gmra.mxu2 %v427_v28  ;;  %v3254_v34 = vpop.f32.mrf.mxu0  ;;  %v578_v26 = vadd.f32 %v3204_v39, %v3194_v30  ;;  %v581_v39 = vadd.f32 %v3214_v49, %v3194_v30 }
  0xea   :  { %954 = vmatmul.f32.gmra.mxu3 %v428_v31  ;;  %v449_v31 = vld [vmem:[#allocation2 + $0x3d0] sm:$0xff] }
  0xeb   :  { %v640_v41 = vpop.f32.mrf.mxu2  ;;  %1067 = vmatmul.f32.gmra.mxu0 %v429_v35 }
  0xec   :  { %v3257_v44 = vadd.f32 %v640_v41, %v3194_v30 }
  0xed   :  { %v3259_v45 = vpop.f32.mrf.mxu1  ;;  %v664_v46 = vpop.f32.mrf.mxu3 }
  0xee   :  { %v3262_v51 = vadd.f32 %v664_v46, %v3194_v30 }
  0xf0   :  { %731 = vmatmul.f32.gmra.mxu1 %v433_v48  ;;  %844 = vmatmul.f32.gmra.mxu2 %v434_v50  ;;  %v3264_v55 = vpop.f32.mrf.mxu0 }
  0xf2   :  { %957 = vmatmul.f32.gmra.mxu3 %v435_v52  ;;  %v454_v52 = vld [vmem:[#allocation2 + $0x3f8] sm:$0xff] }
  0xf3   :  { %v643_v57 = vpop.f32.mrf.mxu2  ;;  %1070 = vmatmul.f32.gmra.mxu0 %v436_v56  ;;  %v455_v56 = vld [vmem:[#allocation2 + $0x400] sm:$0xff] }
  0xf4   :  { %v3267_v59 = vadd.f32 %v643_v57, %v3194_v30 }
  0xf5   :  { %v667_v61 = vpop.f32.mrf.mxu3  ;;  %v687_v62 = vpop.f32.mrf.mxu1 }
  0xf6   :  { %v3272_v5 = vadd.f32 %v667_v61, %v3194_v30  ;;  %v688_v14 = vadd.f32 %v687_v62, %v575_v3  ;;  %v456_v61 = vld [vmem:[#allocation2 + $0x408] sm:$0xff]  ;;  %v271_v3 = vld [vmem:[#allocation5 + $0x540] sm:$0xff] }
  0xf7   :  { %1133 = vmatpush.msra.mxu1 %v271_v3 }
  0xf8   :  { %734 = vmatmul.f32.gmra.mxu1 %v440_v1  ;;  %847 = vmatmul.f32.gmra.mxu2 %v441_v2  ;;  %v1026_v8 = vpop.f32.mrf.mxu0  ;;  %v457_v2 = vld [vmem:[#allocation2 + $0x410] sm:$0xff] }
  0xfa   :  { %960 = vmatmul.f32.gmra.mxu3 %v442_v7  ;;  %v319_v7 = vld [vmem:[#allocation5 + $0x6c0] sm:$0xff] }
  0xfb   :  { %v800_v16 = vpop.f32.mrf.mxu2  ;;  %1073 = vmatmul.f32.gmra.mxu0 %v443_v9  ;;  %1238 = vmatpush.msra.mxu2 %v319_v7  ;;  %v128_v9 = vld [vmem:[#allocation5 + $0xc8] sm:$0xff] }
  0xfc   :  { %v801_v18 = vadd.f32 %v800_v16, %v688_v14  ;;  %1351 = vmatpush.msra.mxu3 %v128_v9  ;;  %v462_v16 = vld [vmem:[#allocation2 + $0x438] sm:$0xff]  ;;  %v475_v9 = vld [vmem:[#allocation2 + $0x4a0] sm:$0xff] }
  0xfd   :  { %v690_v27 = vpop.f32.mrf.mxu1  ;;  %v913_v20 = vpop.f32.mrf.mxu3 }
  0xfe   :  { %v914_v28 = vadd.f32 %v913_v20, %v801_v18  ;;  %v691_v40 = vadd.f32 %v690_v27, %v578_v26  ;;  %v584_v18 = vadd.f32 %v3224_v60, %v3194_v30  ;;  %v463_v20 = vld [vmem:[#allocation2 + $0x440] sm:$0xff]  ;;  %v464_v26 = vld [vmem:[#allocation2 + $0x448] sm:$0xff]  ;;  %v587_v60 = vadd.f32 %v3234_v6, %v3194_v30 }
 0x100   :  { %v3276_v35 = vadd.f32 %v1026_v8, %v914_v28  ;;  %737 = vmatmul.f32.gmra.mxu1 %v447_v21  ;;  %850 = vmatmul.f32.gmra.mxu2 %v448_v25  ;;  %v1029_v36 = vpop.f32.mrf.mxu0 }
 0x102   :  { %963 = vmatmul.f32.gmra.mxu3 %v449_v31 }
 0x103   :  { %v803_v41 = vpop.f32.mrf.mxu2  ;;  %1076 = vmatmul.f32.gmra.mxu0 %v450_v38 }
 0x104   :  { %v804_v46 = vadd.f32 %v803_v41, %v691_v40  ;;  %v468_v41 = vld [vmem:[#allocation2 + $0x468] sm:$0xff] }
 0x105   :  { %v693_v48 = vpop.f32.mrf.mxu1  ;;  %v916_v50 = vpop.f32.mrf.mxu3 }
 0x106   :  { %v917_v57 = vadd.f32 %v916_v50, %v804_v46  ;;  %v694_v8 = vadd.f32 %v693_v48, %v581_v39  ;;  %v469_v46 = vld [vmem:[#allocation2 + $0x470] sm:$0xff]  ;;  %v470_v50 = vld [vmem:[#allocation2 + $0x478] sm:$0xff]  ;;  %v471_v39 = vld [vmem:[#allocation2 + $0x480] sm:$0xff] }
 0x108   :  { %v3280_v62 = vadd.f32 %v1029_v36, %v917_v57  ;;  %740 = vmatmul.f32.gmra.mxu1 %v454_v52  ;;  %853 = vmatmul.f32.gmra.mxu2 %v455_v56  ;;  %v1032_v1 = vpop.f32.mrf.mxu0  ;;  %v269_v57 = vld [vmem:[#allocation5 + $0x530] sm:$0xff] }
 0x109   :  { %1134 = vmatpush.msra.mxu1 %v269_v57 }
 0x10a   :  { %966 = vmatmul.f32.gmra.mxu3 %v456_v61  ;;  %v317_v61 = vld [vmem:[#allocation5 + $0x6b0] sm:$0xff] }
 0x10b   :  { %v806_v10 = vpop.f32.mrf.mxu2  ;;  %1079 = vmatmul.f32.gmra.mxu0 %v457_v2  ;;  %1239 = vmatpush.msra.mxu2 %v317_v61  ;;  %v126_v2 = vld [vmem:[#allocation5 + $0xb8] sm:$0xff] }
 0x10c   :  { %v807_v11 = vadd.f32 %v806_v10, %v694_v8  ;;  %1352 = vmatpush.msra.mxu3 %v126_v2  ;;  %v476_v10 = vld [vmem:[#allocation2 + $0x4a8] sm:$0xff]  ;;  %v489_v2 = vld [vmem:[#allocation2 + $0x510] sm:$0xff] }
 0x10d   :  { %v696_v49 = vpop.f32.mrf.mxu1  ;;  %v919_v14 = vpop.f32.mrf.mxu3 }
 0x10e   :  { %v920_v27 = vadd.f32 %v919_v14, %v807_v11  ;;  %v697_v28 = vadd.f32 %v696_v49, %v584_v18  ;;  %v590_v11 = vadd.f32 %v3244_v19, %v3194_v30  ;;  %v477_v14 = vld [vmem:[#allocation2 + $0x4b0] sm:$0xff]  ;;  %v478_v18 = vld [vmem:[#allocation2 + $0x4b8] sm:$0xff]  ;;  %v593_v19 = vadd.f32 %v3254_v34, %v3194_v30 }
 0x110   :  { %v3284_v21 = vadd.f32 %v1032_v1, %v920_v27  ;;  %743 = vmatmul.f32.gmra.mxu1 %v461_v15  ;;  %856 = vmatmul.f32.gmra.mxu2 %v462_v16  ;;  %v1035_v25 = vpop.f32.mrf.mxu0 }
 0x112   :  { %969 = vmatmul.f32.gmra.mxu3 %v463_v20 }
 0x113   :  { %v809_v31 = vpop.f32.mrf.mxu2  ;;  %1082 = vmatmul.f32.gmra.mxu0 %v464_v26 }
 0x114   :  { %v810_v36 = vadd.f32 %v809_v31, %v697_v28  ;;  %v482_v31 = vld [vmem:[#allocation2 + $0x4d8] sm:$0xff] }
 0x115   :  { %v699_v38 = vpop.f32.mrf.mxu1  ;;  %v922_v40 = vpop.f32.mrf.mxu3 }
 0x116   :  { %v923_v48 = vadd.f32 %v922_v40, %v810_v36  ;;  %v700_v1 = vadd.f32 %v699_v38, %v587_v60  ;;  %v483_v36 = vld [vmem:[#allocation2 + $0x4e0] sm:$0xff]  ;;  %v484_v40 = vld [vmem:[#allocation2 + $0x4e8] sm:$0xff]  ;;  %v485_v60 = vld [vmem:[#allocation2 + $0x4f0] sm:$0xff] }
 0x118   :  { %v3288_v52 = vadd.f32 %v1035_v25, %v923_v48  ;;  %746 = vmatmul.f32.gmra.mxu1 %v468_v41  ;;  %859 = vmatmul.f32.gmra.mxu2 %v469_v46  ;;  %v1038_v56 = vpop.f32.mrf.mxu0  ;;  %v267_v48 = vld [vmem:[#allocation5 + $0x520] sm:$0xff] }
 0x119   :  { %1135 = vmatpush.msra.mxu1 %v267_v48 }
 0x11a   :  { %972 = vmatmul.f32.gmra.mxu3 %v470_v50  ;;  %v315_v50 = vld [vmem:[#allocation5 + $0x6a0] sm:$0xff] }
 0x11b   :  { %v812_v3 = vpop.f32.mrf.mxu2  ;;  %1085 = vmatmul.f32.gmra.mxu0 %v471_v39  ;;  %1240 = vmatpush.msra.mxu2 %v315_v50  ;;  %v124_v39 = vld [vmem:[#allocation5 + $0xa8] sm:$0xff] }
 0x11c   :  { %v813_v7 = vadd.f32 %v812_v3, %v700_v1  ;;  %1353 = vmatpush.msra.mxu3 %v124_v39  ;;  %v490_v3 = vld [vmem:[#allocation2 + $0x518] sm:$0xff] }
 0x11d   :  { %v702_v6 = vpop.f32.mrf.mxu1  ;;  %v925_v8 = vpop.f32.mrf.mxu3 }
 0x11e   :  { %v926_v49 = vadd.f32 %v925_v8, %v813_v7  ;;  %v703_v27 = vadd.f32 %v702_v6, %v590_v11  ;;  %v596_v7 = vadd.f32 %v3264_v55, %v3194_v30  ;;  %v491_v8 = vld [vmem:[#allocation2 + $0x520] sm:$0xff]  ;;  %v492_v11 = vld [vmem:[#allocation2 + $0x528] sm:$0xff]  ;;  %v599_v55 = vadd.f32 %v3190_v22, %v3194_v30 }
 0x11f   :  { %v503_v22 = vld [vmem:[#allocation2 + $0x580] sm:$0xff] }
 0x120   :  { %v3292_v15 = vadd.f32 %v1038_v56, %v926_v49  ;;  %749 = vmatmul.f32.gmra.mxu1 %v475_v9  ;;  %862 = vmatmul.f32.gmra.mxu2 %v476_v10  ;;  %v1041_v16 = vpop.f32.mrf.mxu0 }
 0x122   :  { %975 = vmatmul.f32.gmra.mxu3 %v477_v14 }
 0x123   :  { %v815_v20 = vpop.f32.mrf.mxu2  ;;  %1088 = vmatmul.f32.gmra.mxu0 %v478_v18 }
 0x124   :  { %v816_v25 = vadd.f32 %v815_v20, %v703_v27  ;;  %v496_v20 = vld [vmem:[#allocation2 + $0x548] sm:$0xff] }
 0x125   :  { %v705_v26 = vpop.f32.mrf.mxu1  ;;  %v928_v28 = vpop.f32.mrf.mxu3 }
 0x126   :  { %v929_v38 = vadd.f32 %v928_v28, %v816_v25  ;;  %v706_v56 = vadd.f32 %v705_v26, %v593_v19  ;;  %v497_v25 = vld [vmem:[#allocation2 + $0x550] sm:$0xff]  ;;  %v498_v28 = vld [vmem:[#allocation2 + $0x558] sm:$0xff]  ;;  %v499_v19 = vld [vmem:[#allocation2 + $0x560] sm:$0xff] }
 0x128   :  { %v3296_v41 = vadd.f32 %v1041_v16, %v929_v38  ;;  %752 = vmatmul.f32.gmra.mxu1 %v482_v31  ;;  %865 = vmatmul.f32.gmra.mxu2 %v483_v36  ;;  %v1044_v46 = vpop.f32.mrf.mxu0  ;;  %v265_v38 = vld [vmem:[#allocation5 + $0x510] sm:$0xff] }
 0x129   :  { %1136 = vmatpush.msra.mxu1 %v265_v38  ;;  %v263_v38 = vld [vmem:[#allocation5 + $0x500] sm:$0xff] }
 0x12a   :  { %978 = vmatmul.f32.gmra.mxu3 %v484_v40  ;;  %v313_v40 = vld [vmem:[#allocation5 + $0x690] sm:$0xff] }
 0x12b   :  { %v818_v57 = vpop.f32.mrf.mxu2  ;;  %1091 = vmatmul.f32.gmra.mxu0 %v485_v60  ;;  %1241 = vmatpush.msra.mxu2 %v313_v40  ;;  %v122_v60 = vld [vmem:[#allocation5 + $0x98] sm:$0xff]  ;;  %v309_v40 = vld [vmem:[#allocation5 + $0x670] sm:$0xff] }
 0x12c   :  { %v819_v61 = vadd.f32 %v818_v57, %v706_v56  ;;  %1354 = vmatpush.msra.mxu3 %v122_v60  ;;  %v504_v57 = vld [vmem:[#allocation2 + $0x588] sm:$0xff]  ;;  %1137 = vmatpush.msra.mxu1 %v263_v38  ;;  %v299_v38 = vld [vmem:[#allocation5 + $0x620] sm:$0xff] }
 0x12d   :  { %v708_v34 = vpop.f32.mrf.mxu1  ;;  %v931_v1 = vpop.f32.mrf.mxu3  ;;  %v160_v60 = vld [vmem:[#allocation5 + $0x1c8] sm:$0xff] }
 0x12e   :  { %v932_v6 = vadd.f32 %v931_v1, %v819_v61  ;;  %v709_v49 = vadd.f32 %v708_v34, %v596_v7  ;;  %v505_v34 = vld [vmem:[#allocation2 + $0x590] sm:$0xff]  ;;  %v602_v1 = vadd.f32 %v3199_v33, %v3194_v30  ;;  %v506_v7 = vld [vmem:[#allocation2 + $0x598] sm:$0xff]  ;;  %v311_v33 = vld [vmem:[#allocation5 + $0x680] sm:$0xff] }
 0x12f   :  { %1242 = vmatpush.msra.mxu2 %v311_v33  ;;  %v301_v33 = vld [vmem:[#allocation5 + $0x630] sm:$0xff] }
 0x130   :  { %v3300_v9 = vadd.f32 %v1044_v46, %v932_v6  ;;  %755 = vmatmul.f32.gmra.mxu1 %v489_v2  ;;  %868 = vmatmul.f32.gmra.mxu2 %v490_v3  ;;  %v1047_v10 = vpop.f32.mrf.mxu0 }
 0x131   :  { %1243 = vmatpush.msra.mxu2 %v309_v40 }
 0x132   :  { %981 = vmatmul.f32.gmra.mxu3 %v491_v8  ;;  %v166_v8 = vld [vmem:[#allocation5 + $0x1f8] sm:$0xff] }
 0x133   :  { %v821_v14 = vpop.f32.mrf.mxu2  ;;  %1094 = vmatmul.f32.gmra.mxu0 %v492_v11 }
 0x134   :  { %v822_v16 = vadd.f32 %v821_v14, %v709_v49  ;;  %1461 = vmatpush.msra.mxu0 %v166_v8  ;;  %v164_v49 = vld [vmem:[#allocation5 + $0x1e8] sm:$0xff] }
 0x135   :  { %v711_v18 = vpop.f32.mrf.mxu1  ;;  %v934_v27 = vpop.f32.mrf.mxu3  ;;  %v156_v8 = vld [vmem:[#allocation5 + $0x1a8] sm:$0xff] }
 0x136   :  { %v935_v26 = vadd.f32 %v934_v27, %v822_v16  ;;  %v712_v46 = vadd.f32 %v711_v18, %v599_v55  ;;  %v510_v18 = vld [vmem:[#allocation2 + $0x5b8] sm:$0xff]  ;;  %v511_v27 = vld [vmem:[#allocation2 + $0x5c0] sm:$0xff]  ;;  %1462 = vmatpush.msra.mxu0 %v164_v49  ;;  %v605_v55 = vadd.f32 %v3209_v43, %v3194_v30  ;;  %v608_v49 = vadd.f32 %v3219_v54, %v3194_v30 }
 0x137   :  { %v158_v43 = vld [vmem:[#allocation5 + $0x1b8] sm:$0xff] }
 0x138   :  { %v3304_v31 = vadd.f32 %v1047_v10, %v935_v26  ;;  %758 = vmatmul.f32.gmra.mxu1 %v496_v20  ;;  %871 = vmatmul.f32.gmra.mxu2 %v497_v25  ;;  %v1050_v36 = vpop.f32.mrf.mxu0  ;;  %v162_v25 = vld [vmem:[#allocation5 + $0x1d8] sm:$0xff]  ;;  %v512_v26 = vld [vmem:[#allocation2 + $0x5c8] sm:$0xff] }
 0x139   :  { %1463 = vmatpush.msra.mxu0 %v162_v25 }
 0x13a   :  { %984 = vmatmul.f32.gmra.mxu3 %v498_v28  ;;  %v513_v28 = vld [vmem:[#allocation2 + $0x5d0] sm:$0xff] }
 0x13b   :  { %v824_v48 = vpop.f32.mrf.mxu2  ;;  %1097 = vmatmul.f32.gmra.mxu0 %v499_v19 }
 0x13c   :  { %v825_v50 = vadd.f32 %v824_v48, %v712_v46  ;;  %v120_v46 = vld [vmem:[#allocation5 + $0x88] sm:$0xff]  ;;  %1464 = vmatpush.msra.mxu0 %v160_v60 }
 0x13d   :  { %v714_v56 = vpop.f32.mrf.mxu1  ;;  %v937_v39 = vpop.f32.mrf.mxu3  ;;  %1355 = vmatpush.msra.mxu3 %v120_v46  ;;  %v524_v60 = vld [vmem:[#allocation2 + $0x628] sm:$0xff] }
 0x13e   :  { %v938_v61 = vadd.f32 %v937_v39, %v825_v50  ;;  %v715_v6 = vadd.f32 %v714_v56, %v602_v1  ;;  %v307_v50 = vld [vmem:[#allocation5 + $0x660] sm:$0xff]  ;;  %v118_v56 = vld [vmem:[#allocation5 + $0x78] sm:$0xff]  ;;  %1465 = vmatpush.msra.mxu0 %v158_v43 }
 0x13f   :  { %1244 = vmatpush.msra.mxu2 %v307_v50  ;;  %1356 = vmatpush.msra.mxu3 %v118_v56  ;;  %v150_v56 = vld [vmem:[#allocation5 + $0x178] sm:$0xff] }
 0x140   :  { %v3308_v2 = vadd.f32 %v1050_v36, %v938_v61  ;;  %761 = vmatmul.f32.gmra.mxu1 %v503_v22  ;;  %874 = vmatmul.f32.gmra.mxu2 %v504_v57  ;;  %v1053_v3 = vpop.f32.mrf.mxu0  ;;  %v305_v57 = vld [vmem:[#allocation5 + $0x650] sm:$0xff]  ;;  %v116_v61 = vld [vmem:[#allocation5 + $0x68] sm:$0xff]  ;;  %v526_v43 = vld [vmem:[#allocation2 + $0x638] sm:$0xff] }
 0x141   :  { %1245 = vmatpush.msra.mxu2 %v305_v57  ;;  %1357 = vmatpush.msra.mxu3 %v116_v61 }
 0x142   :  { %987 = vmatmul.f32.gmra.mxu3 %v505_v34  ;;  %1466 = vmatpush.msra.mxu0 %v156_v8 }
 0x143   :  { %v827_v10 = vpop.f32.mrf.mxu2  ;;  %1100 = vmatmul.f32.gmra.mxu0 %v506_v7  ;;  %v518_v7 = vld [vmem:[#allocation2 + $0x5f8] sm:$0xff] }
 0x144   :  { %v828_v11 = vadd.f32 %v827_v10, %v715_v6  ;;  %v303_v10 = vld [vmem:[#allocation5 + $0x640] sm:$0xff] }
 0x145   :  { %v717_v14 = vpop.f32.mrf.mxu1  ;;  %v940_v16 = vpop.f32.mrf.mxu3  ;;  %1246 = vmatpush.msra.mxu2 %v303_v10  ;;  %v106_v10 = vld [vmem:[#allocation5 + $0x18] sm:$0xff] }
 0x146   :  { %v941_v20 = vadd.f32 %v940_v16, %v828_v11  ;;  %v718_v48 = vadd.f32 %v717_v14, %v605_v55  ;;  %v519_v11 = vld [vmem:[#allocation2 + $0x600] sm:$0xff]  ;;  %v152_v55 = vld [vmem:[#allocation5 + $0x188] sm:$0xff] }
 0x147   :  { %1247 = vmatpush.msra.mxu2 %v301_v33  ;;  %v532_v33 = vld [vmem:[#allocation2 + $0x668] sm:$0xff] }
 0x148   :  { %v3312_v36 = vadd.f32 %v1053_v3, %v941_v20  ;;  %764 = vmatmul.f32.gmra.mxu1 %v510_v18  ;;  %877 = vmatmul.f32.gmra.mxu2 %v511_v27  ;;  %v1056_v19 = vpop.f32.mrf.mxu0  ;;  %v517_v3 = vld [vmem:[#allocation2 + $0x5f0] sm:$0xff]  ;;  %v520_v18 = vld [vmem:[#allocation2 + $0x608] sm:$0xff]  ;;  %v114_v27 = vld [vmem:[#allocation5 + $0x58] sm:$0xff] }
 0x149   :  { %v154_v20 = vld [vmem:[#allocation5 + $0x198] sm:$0xff]  ;;  %1358 = vmatpush.msra.mxu3 %v114_v27  ;;  %1248 = vmatpush.msra.mxu2 %v299_v38 }
 0x14a   :  { %990 = vmatmul.f32.gmra.mxu3 %v512_v26  ;;  %v112_v26 = vld [vmem:[#allocation5 + $0x48] sm:$0xff]  ;;  %1467 = vmatpush.msra.mxu0 %v154_v20  ;;  %v531_v20 = vld [vmem:[#allocation2 + $0x660] sm:$0xff] }
 0x14b   :  { %v830_v39 = vpop.f32.mrf.mxu2  ;;  %1103 = vmatmul.f32.gmra.mxu0 %v513_v28  ;;  %1359 = vmatpush.msra.mxu3 %v112_v26  ;;  %v144_v26 = vld [vmem:[#allocation5 + $0x148] sm:$0xff] }
 0x14c   :  { %v831_v22 = vadd.f32 %v830_v39, %v718_v48  ;;  %v525_v48 = vld [vmem:[#allocation2 + $0x630] sm:$0xff]  ;;  %1468 = vmatpush.msra.mxu0 %v152_v55  ;;  %v614_v55 = vadd.f32 %v3239_v13, %v3194_v30 }
 0x14d   :  { %v720_v34 = vpop.f32.mrf.mxu1  ;;  %v943_v1 = vpop.f32.mrf.mxu3  ;;  %v297_v39 = vld [vmem:[#allocation5 + $0x610] sm:$0xff] }
 0x14e   :  { %v944_v6 = vadd.f32 %v943_v1, %v831_v22  ;;  %v721_v25 = vadd.f32 %v720_v34, %v608_v49  ;;  %v611_v22 = vadd.f32 %v3229_v0, %v3194_v30  ;;  %v527_v34 = vld [vmem:[#allocation2 + $0x640] sm:$0xff]  ;;  %v108_v1 = vld [vmem:[#allocation5 + $0x28] sm:$0xff]  ;;  %1469 = vmatpush.msra.mxu0 %v150_v56  ;;  %1249 = vmatpush.msra.mxu2 %v297_v39  ;;  %v146_v0 = vld [vmem:[#allocation5 + $0x158] sm:$0xff] }
 0x150   :  { %v3316_v14 = vadd.f32 %v1056_v19, %v944_v6  ;;  %767 = vmatmul.f32.gmra.mxu1 %v517_v3  ;;  %880 = vmatmul.f32.gmra.mxu2 %v518_v7  ;;  %v1059_v16 = vpop.f32.mrf.mxu0  ;;  %v110_v19 = vld [vmem:[#allocation5 + $0x38] sm:$0xff]  ;;  %v148_v7 = vld [vmem:[#allocation5 + $0x168] sm:$0xff]  ;;  %v295_v6 = vld [vmem:[#allocation5 + $0x600] sm:$0xff] }
 0x151   :  { %1360 = vmatpush.msra.mxu3 %v110_v19  ;;  %v198_v3 = vld [vmem:[#allocation5 + $0x2f8] sm:$0xff]  ;;  %1470 = vmatpush.msra.mxu0 %v148_v7 }
 0x152   :  { %993 = vmatmul.f32.gmra.mxu3 %v519_v11  ;;  %1574 = vmatpush.msrb.mxu1 %v198_v3  ;;  %v534_v19 = vld [vmem:[#allocation2 + $0x678] sm:$0xff] }
 0x153   :  { %v833_v28 = vpop.f32.mrf.mxu2  ;;  %1106 = vmatmul.f32.gmra.mxu0 %v520_v18  ;;  %1361 = vmatpush.msra.mxu3 %v108_v1  ;;  %v617_v1 = vadd.f32 %v3249_v24, %v3194_v30  ;;  %v546_v24 = vld [vmem:[#allocation2 + $0x6d8] sm:$0xff] }
 0x154   :  { %v834_v54 = vadd.f32 %v833_v28, %v721_v25  ;;  %1250 = vmatpush.msra.mxu2 %v295_v6  ;;  %1471 = vmatpush.msra.mxu0 %v146_v0  ;;  %v533_v28 = vld [vmem:[#allocation2 + $0x670] sm:$0xff] }
 0x155   :  { %v723_v40 = vpop.f32.mrf.mxu1  ;;  %v946_v46 = vpop.f32.mrf.mxu3  ;;  %1362 = vmatpush.msra.mxu3 %v106_v10  ;;  %v541_v6 = vld [vmem:[#allocation2 + $0x6b0] sm:$0xff]  ;;  %v136_v10 = vld [vmem:[#allocation5 + $0x108] sm:$0xff] }
 0x156   :  { %v947_v50 = vadd.f32 %v946_v46, %v834_v54  ;;  %v724_v8 = vadd.f32 %v723_v40, %v611_v22  ;;  %1472 = vmatpush.msra.mxu0 %v144_v26  ;;  %v142_v40 = vld [vmem:[#allocation5 + $0x138] sm:$0xff]  ;;  %v539_v22 = vld [vmem:[#allocation2 + $0x6a0] sm:$0xff] }
 0x158   :  { %v3320_v57 = vadd.f32 %v1059_v16, %v947_v50  ;;  %770 = vmatmul.f32.gmra.mxu1 %v524_v60  ;;  %883 = vmatmul.f32.gmra.mxu2 %v525_v48  ;;  %v1062_v61 = vpop.f32.mrf.mxu0  ;;  %v104_v16 = vld [vmem:[#allocation5 + $0x8] sm:$0xff] }
 0x159   :  { %1363 = vmatpush.msra.mxu3 %v104_v16  ;;  %v140_v48 = vld [vmem:[#allocation5 + $0x128] sm:$0xff]  ;;  %1473 = vmatpush.msra.mxu0 %v142_v40 }
 0x15a   :  { %996 = vmatmul.f32.gmra.mxu3 %v526_v43  ;;  %v538_v43 = vld [vmem:[#allocation2 + $0x698] sm:$0xff] }
 0x15b   :  { %v836_v11 = vpop.f32.mrf.mxu2  ;;  %1109 = vmatmul.f32.gmra.mxu0 %v527_v34  ;;  %v540_v34 = vld [vmem:[#allocation2 + $0x6a8] sm:$0xff] }
 0x15c   :  { %v837_v49 = vadd.f32 %v836_v11, %v724_v8  ;;  %1474 = vmatpush.msra.mxu0 %v140_v48  ;;  %v196_v8 = vld [vmem:[#allocation5 + $0x2e8] sm:$0xff] }
 0x15d   :  { %v726_v18 = vpop.f32.mrf.mxu1  ;;  %v949_v27 = vpop.f32.mrf.mxu3  ;;  %1575 = vmatpush.msrb.mxu1 %v196_v8  ;;  %v332_v48 = vld [vmem:[#allocation2 + $0x28] sm:$0xff] }
 0x15e   :  { %v950_v25 = vadd.f32 %v949_v27, %v837_v49  ;;  %v727_v46 = vadd.f32 %v726_v18, %v614_v55  ;;  %v545_v27 = vld [vmem:[#allocation2 + $0x6d0] sm:$0xff]  ;;  %v548_v55 = vld [vmem:[#allocation2 + $0x6e8] sm:$0xff] }
 0x15f   :  { %v340_v8 = vld [vmem:[#allocation2 + $0x68] sm:$0xff] }
 0x160   :  { %v3324_v38 = vadd.f32 %v1062_v61, %v950_v25  ;;  %773 = vmatmul.f32.gmra.mxu1 %v531_v20  ;;  %886 = vmatmul.f32.gmra.mxu2 %v532_v33  ;;  %v1065_v54 = vpop.f32.mrf.mxu0  ;;  %v138_v61 = vld [vmem:[#allocation5 + $0x118] sm:$0xff]  ;;  %v547_v33 = vld [vmem:[#allocation2 + $0x6e0] sm:$0xff]  ;;  %v620_v25 = vadd.f32 %v3259_v45, %v3194_v30 }
 0x161   :  { %1475 = vmatpush.msra.mxu0 %v138_v61  ;;  %v194_v45 = vld [vmem:[#allocation5 + $0x2d8] sm:$0xff]  ;;  %v2746_v61 = vld [vmem:[#allocation2 + $0x8] sm:$0xff] }
 0x162   :  { %999 = vmatmul.f32.gmra.mxu3 %v533_v28  ;;  %1576 = vmatpush.msrb.mxu1 %v194_v45  ;;  %v354_v45 = vld [vmem:[#allocation2 + $0xd8] sm:$0xff] }
 0x163   :  { %v839_v60 = vpop.f32.mrf.mxu2  ;;  %1112 = vmatmul.f32.gmra.mxu0 %v534_v19 }
 0x164   :  { %v840_v50 = vadd.f32 %v839_v60, %v727_v46  ;;  %1476 = vmatpush.msra.mxu0 %v136_v10 }
 0x165   :  { %v729_v56 = vpop.f32.mrf.mxu1  ;;  %v952_v39 = vpop.f32.mrf.mxu3 }
 0x166   :  { %v953_v13 = vadd.f32 %v952_v39, %v840_v50  ;;  %v730_v11 = vadd.f32 %v729_v56, %v617_v1  ;;  %v333_v50 = vld [vmem:[#allocation2 + $0x30] sm:$0xff] }
 0x168   :  { %v3328_v3 = vadd.f32 %v1065_v54, %v953_v13  ;;  %776 = vmatmul.f32.gmra.mxu1 %v538_v43  ;;  %889 = vmatmul.f32.gmra.mxu2 %v539_v22  ;;  %v1068_v7 = vpop.f32.mrf.mxu0  ;;  %v2745_v22 = vld [vmem:[#allocation2] sm:$0xff] }
 0x16a   :  { %1002 = vmatmul.f32.gmra.mxu3 %v540_v34 }
 0x16b   :  { %v842_v0 = vpop.f32.mrf.mxu2  ;;  %1115 = vmatmul.f32.gmra.mxu0 %v541_v6  ;;  %v339_v6 = vld [vmem:[#allocation2 + $0x60] sm:$0xff] }
 0x16c   :  { %v843_v49 = vadd.f32 %v842_v0, %v730_v11 }
 0x16d   :  { %v732_v16 = vpop.f32.mrf.mxu1  ;;  %v955_v18 = vpop.f32.mrf.mxu3 }
 0x16e   :  { %v956_v20 = vadd.f32 %v955_v18, %v843_v49  ;;  %v733_v54 = vadd.f32 %v732_v16, %v620_v25  ;;  %v2747_v16 = vld [vmem:[#allocation2 + $0x38] sm:$0xff]  ;;  %v2748_v18 = vld [vmem:[#allocation2 + $0x40] sm:$0xff] }
 0x16f   :  { %v347_v25 = vld [vmem:[#allocation2 + $0xa0] sm:$0xff] }
 0x170   :  { %v3332_v26 = vadd.f32 %v1068_v7, %v956_v20  ;;  %779 = vmatmul.f32.gmra.mxu1 %v545_v27  ;;  %892 = vmatmul.f32.gmra.mxu2 %v546_v24  ;;  %v1071_v28 = vpop.f32.mrf.mxu0 }
 0x172   :  { %1005 = vmatmul.f32.gmra.mxu3 %v547_v33  ;;  %v346_v33 = vld [vmem:[#allocation2 + $0x98] sm:$0xff] }
 0x173   :  { %v845_v19 = vpop.f32.mrf.mxu2  ;;  %1118 = vmatmul.f32.gmra.mxu0 %v548_v55 }
 0x174   :  { %v846_v40 = vadd.f32 %v845_v19, %v733_v54  ;;  %v192_v19 = vld [vmem:[#allocation5 + $0x2c8] sm:$0xff] }
 0x175   :  { %v735_v46 = vpop.f32.mrf.mxu1  ;;  %v958_v60 = vpop.f32.mrf.mxu3  ;;  %1577 = vmatpush.msrb.mxu1 %v192_v19  ;;  %v368_v19 = vld [vmem:[#allocation2 + $0x148] sm:$0xff] }
 0x176   :  { %v959_v56 = vadd.f32 %v958_v60, %v846_v40  ;;  %v736_v43 = vadd.f32 %v735_v46, %v3197_v32  ;;  %v2749_v40 = vld [vmem:[#allocation2 + $0x70] sm:$0xff]  ;;  %v2750_v60 = vld [vmem:[#allocation2 + $0x78] sm:$0xff] }
 0x178   :  { %v3334_v39 = vadd.f32 %v1071_v28, %v959_v56  ;;  %1138 = vmatmul.f32.vlgmr.msra.gmra.mxu1 %v332_v48  ;;  %1251 = vmatmul.f32.vlgmr.msra.gmra.mxu2 %v333_v50  ;;  %v1074_v30 = vpop.f32.mrf.mxu0 }
 0x17a   :  { %1364 = vmatmul.f32.vlgmr.msra.gmra.mxu3 %v2745_v22 }
 0x17b   :  { %v848_v13 = vpop.f32.mrf.mxu2  ;;  %1477 = vmatmul.f32.vlgmr.msra.gmra.mxu0 %v2746_v61 }
 0x17c   :  { %v849_v34 = vadd.f32 %v848_v13, %v736_v43 }
 0x17d   :  { %v738_v1 = vpop.f32.mrf.mxu1  ;;  %v961_v7 = vpop.f32.mrf.mxu3 }
 0x17e   :  { %v962_v10 = vadd.f32 %v961_v7, %v849_v34  ;;  %v739_v49 = vadd.f32 %v738_v1, %v3207_v42  ;;  %v2751_v34 = vld [vmem:[#allocation2 + $0xa8] sm:$0xff]  ;;  %v2752_v1 = vld [vmem:[#allocation2 + $0xb0] sm:$0xff] }
 0x180   :  { %v3337_v11 = vadd.f32 %v1074_v30, %v962_v10  ;;  %1141 = vmatmul.f32.gmra.mxu1 %v339_v6  ;;  %1254 = vmatmul.f32.gmra.mxu2 %v340_v8  ;;  %v1077_v0 = vpop.f32.mrf.mxu0  ;;  %v353_v30 = vld [vmem:[#allocation2 + $0xd0] sm:$0xff]  ;;  %v360_v10 = vld [vmem:[#allocation2 + $0x108] sm:$0xff] }
 0x182   :  { %1367 = vmatmul.f32.gmra.mxu3 %v2747_v16 }
 0x183   :  { %v851_v32 = vpop.f32.mrf.mxu2  ;;  %1480 = vmatmul.f32.gmra.mxu0 %v2748_v18  ;;  %v190_v18 = vld [vmem:[#allocation5 + $0x2b8] sm:$0xff] }
 0x184   :  { %v852_v27 = vadd.f32 %v851_v32, %v739_v49  ;;  %1578 = vmatpush.msrb.mxu1 %v190_v18  ;;  %v382_v18 = vld [vmem:[#allocation2 + $0x1b8] sm:$0xff] }
 0x185   :  { %v741_v24 = vpop.f32.mrf.mxu1  ;;  %v964_v20 = vpop.f32.mrf.mxu3 }
 0x186   :  { %v965_v28 = vadd.f32 %v964_v20, %v852_v27  ;;  %v742_v42 = vadd.f32 %v741_v24, %v3217_v53  ;;  %v2753_v27 = vld [vmem:[#allocation2 + $0xe0] sm:$0xff]  ;;  %v2754_v20 = vld [vmem:[#allocation2 + $0xe8] sm:$0xff] }
 0x188   :  { %v3340_v55 = vadd.f32 %v1077_v0, %v965_v28  ;;  %1144 = vmatmul.f32.gmra.mxu1 %v346_v33  ;;  %1257 = vmatmul.f32.gmra.mxu2 %v347_v25  ;;  %v1080_v54 = vpop.f32.mrf.mxu0  ;;  %v361_v0 = vld [vmem:[#allocation2 + $0x110] sm:$0xff] }
 0x18a   :  { %1370 = vmatmul.f32.gmra.mxu3 %v2749_v40 }
 0x18b   :  { %v854_v46 = vpop.f32.mrf.mxu2  ;;  %1483 = vmatmul.f32.gmra.mxu0 %v2750_v60 }
 0x18c   :  { %v855_v48 = vadd.f32 %v854_v46, %v742_v42 }
 0x18d   :  { %v744_v50 = vpop.f32.mrf.mxu1  ;;  %v967_v56 = vpop.f32.mrf.mxu3 }
 0x18e   :  { %v968_v43 = vadd.f32 %v967_v56, %v855_v48  ;;  %v745_v61 = vadd.f32 %v744_v50, %v3227_v63  ;;  %v2755_v48 = vld [vmem:[#allocation2 + $0x118] sm:$0xff]  ;;  %v2756_v50 = vld [vmem:[#allocation2 + $0x120] sm:$0xff] }
 0x190   :  { %v3343_v22 = vadd.f32 %v1080_v54, %v968_v43  ;;  %1147 = vmatmul.f32.gmra.mxu1 %v353_v30  ;;  %1260 = vmatmul.f32.gmra.mxu2 %v354_v45  ;;  %v1083_v13 = vpop.f32.mrf.mxu0  ;;  %v367_v54 = vld [vmem:[#allocation2 + $0x140] sm:$0xff]  ;;  %v374_v43 = vld [vmem:[#allocation2 + $0x178] sm:$0xff] }
 0x192   :  { %1373 = vmatmul.f32.gmra.mxu3 %v2751_v34 }
 0x193   :  { %v857_v53 = vpop.f32.mrf.mxu2  ;;  %1486 = vmatmul.f32.gmra.mxu0 %v2752_v1  ;;  %v188_v1 = vld [vmem:[#allocation5 + $0x2a8] sm:$0xff] }
 0x194   :  { %v858_v7 = vadd.f32 %v857_v53, %v745_v61  ;;  %1579 = vmatpush.msrb.mxu1 %v188_v1  ;;  %v396_v1 = vld [vmem:[#allocation2 + $0x228] sm:$0xff] }
 0x195   :  { %v747_v6 = vpop.f32.mrf.mxu1  ;;  %v970_v8 = vpop.f32.mrf.mxu3 }
 0x196   :  { %v971_v49 = vadd.f32 %v970_v8, %v858_v7  ;;  %v748_v63 = vadd.f32 %v747_v6, %v3237_v12  ;;  %v2757_v7 = vld [vmem:[#allocation2 + $0x150] sm:$0xff]  ;;  %v2758_v8 = vld [vmem:[#allocation2 + $0x158] sm:$0xff] }
 0x198   :  { %v3346_v16 = vadd.f32 %v1083_v13, %v971_v49  ;;  %1150 = vmatmul.f32.gmra.mxu1 %v360_v10  ;;  %1263 = vmatmul.f32.gmra.mxu2 %v361_v0  ;;  %v1086_v32 = vpop.f32.mrf.mxu0  ;;  %v375_v13 = vld [vmem:[#allocation2 + $0x180] sm:$0xff] }
 0x19a   :  { %1376 = vmatmul.f32.gmra.mxu3 %v2753_v27 }
 0x19b   :  { %v860_v24 = vpop.f32.mrf.mxu2  ;;  %1489 = vmatmul.f32.gmra.mxu0 %v2754_v20 }
 0x19c   :  { %v861_v33 = vadd.f32 %v860_v24, %v748_v63 }
 0x19d   :  { %v750_v25 = vpop.f32.mrf.mxu1  ;;  %v973_v28 = vpop.f32.mrf.mxu3 }
 0x19e   :  { %v974_v42 = vadd.f32 %v973_v28, %v861_v33  ;;  %v751_v60 = vadd.f32 %v750_v25, %v3247_v23  ;;  %v2759_v33 = vld [vmem:[#allocation2 + $0x188] sm:$0xff]  ;;  %v2760_v25 = vld [vmem:[#allocation2 + $0x190] sm:$0xff] }
 0x1a0   :  { %v3349_v40 = vadd.f32 %v1086_v32, %v974_v42  ;;  %1153 = vmatmul.f32.gmra.mxu1 %v367_v54  ;;  %1266 = vmatmul.f32.gmra.mxu2 %v368_v19  ;;  %v1089_v46 = vpop.f32.mrf.mxu0  ;;  %v381_v32 = vld [vmem:[#allocation2 + $0x1b0] sm:$0xff]  ;;  %v388_v42 = vld [vmem:[#allocation2 + $0x1e8] sm:$0xff] }
 0x1a2   :  { %1379 = vmatmul.f32.gmra.mxu3 %v2755_v48 }
 0x1a3   :  { %v863_v12 = vpop.f32.mrf.mxu2  ;;  %1492 = vmatmul.f32.gmra.mxu0 %v2756_v50  ;;  %v186_v50 = vld [vmem:[#allocation5 + $0x298] sm:$0xff] }
 0x1a4   :  { %v864_v56 = vadd.f32 %v863_v12, %v751_v60  ;;  %1580 = vmatpush.msrb.mxu1 %v186_v50  ;;  %v410_v50 = vld [vmem:[#allocation2 + $0x298] sm:$0xff] }
 0x1a5   :  { %v753_v30 = vpop.f32.mrf.mxu1  ;;  %v976_v45 = vpop.f32.mrf.mxu3 }
 0x1a6   :  { %v977_v61 = vadd.f32 %v976_v45, %v864_v56  ;;  %v754_v23 = vadd.f32 %v753_v30, %v3257_v44  ;;  %v2761_v56 = vld [vmem:[#allocation2 + $0x1c0] sm:$0xff]  ;;  %v2762_v45 = vld [vmem:[#allocation2 + $0x1c8] sm:$0xff] }
 0x1a8   :  { %v3352_v34 = vadd.f32 %v1089_v46, %v977_v61  ;;  %1156 = vmatmul.f32.gmra.mxu1 %v374_v43  ;;  %1269 = vmatmul.f32.gmra.mxu2 %v375_v13  ;;  %v1092_v53 = vpop.f32.mrf.mxu0  ;;  %v389_v46 = vld [vmem:[#allocation2 + $0x1f0] sm:$0xff] }
 0x1aa   :  { %1382 = vmatmul.f32.gmra.mxu3 %v2757_v7 }
 0x1ab   :  { %v866_v6 = vpop.f32.mrf.mxu2  ;;  %1495 = vmatmul.f32.gmra.mxu0 %v2758_v8 }
 0x1ac   :  { %v867_v10 = vadd.f32 %v866_v6, %v754_v23 }
 0x1ad   :  { %v756_v0 = vpop.f32.mrf.mxu1  ;;  %v979_v49 = vpop.f32.mrf.mxu3 }
 0x1ae   :  { %v980_v63 = vadd.f32 %v979_v49, %v867_v10  ;;  %v757_v20 = vadd.f32 %v756_v0, %v3267_v59  ;;  %v2763_v10 = vld [vmem:[#allocation2 + $0x1f8] sm:$0xff]  ;;  %v2764_v0 = vld [vmem:[#allocation2 + $0x200] sm:$0xff] }
 0x1b0   :  { %v3355_v27 = vadd.f32 %v1092_v53, %v980_v63  ;;  %1159 = vmatmul.f32.gmra.mxu1 %v381_v32  ;;  %1272 = vmatmul.f32.gmra.mxu2 %v382_v18  ;;  %v1095_v24 = vpop.f32.mrf.mxu0  ;;  %v395_v53 = vld [vmem:[#allocation2 + $0x220] sm:$0xff]  ;;  %v402_v63 = vld [vmem:[#allocation2 + $0x258] sm:$0xff] }
 0x1b2   :  { %1385 = vmatmul.f32.gmra.mxu3 %v2759_v33 }
 0x1b3   :  { %v869_v44 = vpop.f32.mrf.mxu2  ;;  %1498 = vmatmul.f32.gmra.mxu0 %v2760_v25  ;;  %v184_v25 = vld [vmem:[#allocation5 + $0x288] sm:$0xff] }
 0x1b4   :  { %v870_v28 = vadd.f32 %v869_v44, %v757_v20  ;;  %1581 = vmatpush.msrb.mxu1 %v184_v25 }
 0x1b5   :  { %v759_v54 = vpop.f32.mrf.mxu1  ;;  %v982_v19 = vpop.f32.mrf.mxu3 }
 0x1b6   :  { %v983_v60 = vadd.f32 %v982_v19, %v870_v28  ;;  %v760_v59 = vadd.f32 %v759_v54, %v3202_v37  ;;  %v2765_v28 = vld [vmem:[#allocation2 + $0x230] sm:$0xff]  ;;  %v2766_v19 = vld [vmem:[#allocation2 + $0x238] sm:$0xff] }
 0x1b8   :  { %v3358_v48 = vadd.f32 %v1095_v24, %v983_v60  ;;  %1162 = vmatmul.f32.gmra.mxu1 %v388_v42  ;;  %1275 = vmatmul.f32.gmra.mxu2 %v389_v46  ;;  %v1098_v12 = vpop.f32.mrf.mxu0  ;;  %v403_v24 = vld [vmem:[#allocation2 + $0x260] sm:$0xff] }
 0x1ba   :  { %1388 = vmatmul.f32.gmra.mxu3 %v2761_v56 }
 0x1bb   :  { %v872_v30 = vpop.f32.mrf.mxu2  ;;  %1501 = vmatmul.f32.gmra.mxu0 %v2762_v45 }
 0x1bc   :  { %v873_v43 = vadd.f32 %v872_v30, %v760_v59 }
 0x1bd   :  { %v762_v13 = vpop.f32.mrf.mxu1  ;;  %v985_v61 = vpop.f32.mrf.mxu3 }
 0x1be   :  { %v986_v23 = vadd.f32 %v985_v61, %v873_v43  ;;  %v763_v8 = vadd.f32 %v762_v13, %v3212_v47  ;;  %v2767_v43 = vld [vmem:[#allocation2 + $0x268] sm:$0xff]  ;;  %v2768_v13 = vld [vmem:[#allocation2 + $0x270] sm:$0xff] }
 0x1c0   :  { %v3361_v7 = vadd.f32 %v1098_v12, %v986_v23  ;;  %1165 = vmatmul.f32.gmra.mxu1 %v395_v53  ;;  %1278 = vmatmul.f32.gmra.mxu2 %v396_v1  ;;  %v1101_v6 = vpop.f32.mrf.mxu0  ;;  %v409_v12 = vld [vmem:[#allocation2 + $0x290] sm:$0xff]  ;;  %v416_v23 = vld [vmem:[#allocation2 + $0x2c8] sm:$0xff] }
 0x1c2   :  { %1391 = vmatmul.f32.gmra.mxu3 %v2763_v10 }
 0x1c3   :  { %v875_v37 = vpop.f32.mrf.mxu2  ;;  %1504 = vmatmul.f32.gmra.mxu0 %v2764_v0  ;;  %v182_v0 = vld [vmem:[#allocation5 + $0x278] sm:$0xff] }
 0x1c4   :  { %v876_v49 = vadd.f32 %v875_v37, %v763_v8  ;;  %1582 = vmatpush.msrb.mxu1 %v182_v0 }
 0x1c5   :  { %v765_v32 = vpop.f32.mrf.mxu1  ;;  %v988_v18 = vpop.f32.mrf.mxu3 }
 0x1c6   :  { %v989_v20 = vadd.f32 %v988_v18, %v876_v49  ;;  %v766_v47 = vadd.f32 %v765_v32, %v3222_v58  ;;  %v230_v49 = vld [vmem:[#allocation5 + $0x3f8] sm:$0xff]  ;;  %v2769_v32 = vld [vmem:[#allocation2 + $0x2a0] sm:$0xff] }
 0x1c7   :  { %1687 = vmatpush.msrb.mxu2 %v230_v49  ;;  %v262_v18 = vld [vmem:[#allocation5 + $0x4f8] sm:$0xff] }
 0x1c8   :  { %v3364_v33 = vadd.f32 %v1101_v6, %v989_v20  ;;  %1168 = vmatmul.f32.gmra.mxu1 %v402_v63  ;;  %1281 = vmatmul.f32.gmra.mxu2 %v403_v24  ;;  %v1104_v44 = vpop.f32.mrf.mxu0  ;;  %v417_v6 = vld [vmem:[#allocation2 + $0x2d0] sm:$0xff]  ;;  %v2770_v24 = vld [vmem:[#allocation2 + $0x2a8] sm:$0xff] }
 0x1c9   :  { %1800 = vmatpush.msrb.mxu3 %v262_v18  ;;  %v438_v18 = vld [vmem:[#allocation2 + $0x378] sm:$0xff] }
 0x1ca   :  { %1394 = vmatmul.f32.gmra.mxu3 %v2765_v28  ;;  %v424_v28 = vld [vmem:[#allocation2 + $0x308] sm:$0xff] }
 0x1cb   :  { %v878_v54 = vpop.f32.mrf.mxu2  ;;  %1507 = vmatmul.f32.gmra.mxu0 %v2766_v19 }
 0x1cc   :  { %v879_v42 = vadd.f32 %v878_v54, %v766_v47  ;;  %v423_v47 = vld [vmem:[#allocation2 + $0x300] sm:$0xff] }
 0x1cd   :  { %v768_v46 = vpop.f32.mrf.mxu1  ;;  %v991_v60 = vpop.f32.mrf.mxu3 }
 0x1ce   :  { %v992_v59 = vadd.f32 %v991_v60, %v879_v42  ;;  %v769_v45 = vadd.f32 %v768_v46, %v3232_v4  ;;  %v2771_v46 = vld [vmem:[#allocation2 + $0x2d8] sm:$0xff] }
 0x1d0   :  { %v3367_v56 = vadd.f32 %v1104_v44, %v992_v59  ;;  %1171 = vmatmul.f32.gmra.mxu1 %v409_v12  ;;  %1284 = vmatmul.f32.gmra.mxu2 %v410_v50  ;;  %v1107_v30 = vpop.f32.mrf.mxu0  ;;  %v2772_v12 = vld [vmem:[#allocation2 + $0x2e0] sm:$0xff] }
 0x1d2   :  { %1397 = vmatmul.f32.gmra.mxu3 %v2767_v43  ;;  %v431_v43 = vld [vmem:[#allocation2 + $0x340] sm:$0xff] }
 0x1d3   :  { %v881_v58 = vpop.f32.mrf.mxu2  ;;  %1510 = vmatmul.f32.gmra.mxu0 %v2768_v13 }
 0x1d4   :  { %v882_v61 = vadd.f32 %v881_v58, %v769_v45  ;;  %v430_v45 = vld [vmem:[#allocation2 + $0x338] sm:$0xff] }
 0x1d5   :  { %v771_v53 = vpop.f32.mrf.mxu1  ;;  %v994_v1 = vpop.f32.mrf.mxu3 }
 0x1d6   :  { %v995_v8 = vadd.f32 %v994_v1, %v882_v61  ;;  %v772_v4 = vadd.f32 %v771_v53, %v3242_v17  ;;  %v180_v53 = vld [vmem:[#allocation5 + $0x268] sm:$0xff] }
 0x1d7   :  { %v228_v1 = vld [vmem:[#allocation5 + $0x3e8] sm:$0xff]  ;;  %1583 = vmatpush.msrb.mxu1 %v180_v53 }
 0x1d8   :  { %v3370_v10 = vadd.f32 %v1107_v30, %v995_v8  ;;  %1174 = vmatmul.f32.gmra.mxu1 %v416_v23  ;;  %1287 = vmatmul.f32.gmra.mxu2 %v417_v6  ;;  %v1110_v37 = vpop.f32.mrf.mxu0  ;;  %v2773_v23 = vld [vmem:[#allocation2 + $0x310] sm:$0xff]  ;;  %v260_v6 = vld [vmem:[#allocation5 + $0x4e8] sm:$0xff] }
 0x1d9   :  { %1688 = vmatpush.msrb.mxu2 %v228_v1  ;;  %1801 = vmatpush.msrb.mxu3 %v260_v6  ;;  %v2779_v1 = vld [vmem:[#allocation2 + $0x388] sm:$0xff] }
 0x1da   :  { %1400 = vmatmul.f32.gmra.mxu3 %v2769_v32  ;;  %v437_v32 = vld [vmem:[#allocation2 + $0x370] sm:$0xff] }
 0x1db   :  { %v884_v63 = vpop.f32.mrf.mxu2  ;;  %1513 = vmatmul.f32.gmra.mxu0 %v2770_v24 }
 0x1dc   :  { %v885_v20 = vadd.f32 %v884_v63, %v772_v4 }
 0x1dd   :  { %v774_v44 = vpop.f32.mrf.mxu1  ;;  %v997_v25 = vpop.f32.mrf.mxu3 }
 0x1de   :  { %v998_v54 = vadd.f32 %v997_v25, %v885_v20  ;;  %v775_v17 = vadd.f32 %v774_v44, %v3252_v29  ;;  %v2775_v44 = vld [vmem:[#allocation2 + $0x348] sm:$0xff] }
 0x1e0   :  { %v3373_v19 = vadd.f32 %v1110_v37, %v998_v54  ;;  %1177 = vmatmul.f32.gmra.mxu1 %v423_v47  ;;  %1290 = vmatmul.f32.gmra.mxu2 %v424_v28  ;;  %v1113_v42 = vpop.f32.mrf.mxu0  ;;  %v2774_v37 = vld [vmem:[#allocation2 + $0x318] sm:$0xff]  ;;  %v2776_v47 = vld [vmem:[#allocation2 + $0x350] sm:$0xff] }
 0x1e2   :  { %1403 = vmatmul.f32.gmra.mxu3 %v2771_v46  ;;  %v445_v46 = vld [vmem:[#allocation2 + $0x3b0] sm:$0xff] }
 0x1e3   :  { %v887_v60 = vpop.f32.mrf.mxu2  ;;  %1516 = vmatmul.f32.gmra.mxu0 %v2772_v12 }
 0x1e4   :  { %v888_v50 = vadd.f32 %v887_v60, %v775_v17  ;;  %v444_v17 = vld [vmem:[#allocation2 + $0x3a8] sm:$0xff] }
 0x1e5   :  { %v777_v59 = vpop.f32.mrf.mxu1  ;;  %v1000_v30 = vpop.f32.mrf.mxu3 }
 0x1e6   :  { %v1001_v58 = vadd.f32 %v1000_v30, %v888_v50  ;;  %v778_v29 = vadd.f32 %v777_v59, %v3262_v51  ;;  %v178_v59 = vld [vmem:[#allocation5 + $0x258] sm:$0xff] }
 0x1e7   :  { %v226_v30 = vld [vmem:[#allocation5 + $0x3d8] sm:$0xff]  ;;  %1584 = vmatpush.msrb.mxu1 %v178_v59 }
 0x1e8   :  { %v3376_v13 = vadd.f32 %v1113_v42, %v1001_v58  ;;  %1180 = vmatmul.f32.gmra.mxu1 %v430_v45  ;;  %1293 = vmatmul.f32.gmra.mxu2 %v431_v43  ;;  %v1116_v61 = vpop.f32.mrf.mxu0  ;;  %v2777_v45 = vld [vmem:[#allocation2 + $0x380] sm:$0xff] }
 0x1e9   :  { %1689 = vmatpush.msrb.mxu2 %v226_v30  ;;  %v2778_v43 = vld [vmem:[#allocation7] sm:$0x3]  ;;  %v2783_v30 = vld [vmem:[#allocation2 + $0x3f8] sm:$0xff] }
 0x1ea   :  { %1406 = vmatmul.f32.gmra.mxu3 %v2773_v23  ;;  %v3385_v58 = vperm.slane %v2778_v43, 1 }
 0x1eb   :  { %v890_v8 = vpop.f32.mrf.mxu2  ;;  %1519 = vmatmul.f32.gmra.mxu0 %v2774_v37  ;;  %v452_v37 = vld [vmem:[#allocation2 + $0x3e8] sm:$0xff] }
 0x1ec   :  { %v891_v0 = vadd.f32 %v890_v8, %v778_v29  ;;  %v451_v8 = vld [vmem:[#allocation2 + $0x3e0] sm:$0xff] }
 0x1ed   :  { %v780_v49 = vpop.f32.mrf.mxu1  ;;  %v1003_v4 = vpop.f32.mrf.mxu3 }
 0x1ee   :  { %v1004_v63 = vadd.f32 %v1003_v4, %v891_v0  ;;  %v781_v51 = vadd.f32 %v780_v49, %v3272_v5 }
 0x1f0   :  { %v3379_v24 = vadd.f32 %v1116_v61, %v1004_v63  ;;  %1183 = vmatmul.f32.gmra.mxu1 %v437_v32  ;;  %1296 = vmatmul.f32.gmra.mxu2 %v438_v18  ;;  %v1119_v20 = vpop.f32.mrf.mxu0  ;;  %v258_v61 = vld [vmem:[#allocation5 + $0x4d8] sm:$0xff]  ;;  %v2781_v63 = vld [vmem:[#allocation2 + $0x3c0] sm:$0xff] }
 0x1f1   :  { %1802 = vmatpush.msrb.mxu3 %v258_v61  ;;  %v2780_v32 = vld [vmem:[#allocation2 + $0x3b8] sm:$0xff]  ;;  %v465_v61 = vld [vmem:[#allocation2 + $0x450] sm:$0xff] }
 0x1f2   :  { %1409 = vmatmul.f32.gmra.mxu3 %v2775_v44 }
 0x1f3   :  { %v893_v25 = vpop.f32.mrf.mxu2  ;;  %1522 = vmatmul.f32.gmra.mxu0 %v2776_v47  ;;  %v459_v47 = vld [vmem:[#allocation2 + $0x420] sm:$0xff] }
 0x1f4   :  { %v894_v28 = vadd.f32 %v893_v25, %v781_v51  ;;  %v458_v25 = vld [vmem:[#allocation2 + $0x418] sm:$0xff] }
 0x1f5   :  { %v1006_v54 = vpop.f32.mrf.mxu3  ;;  %v1139_v42 = vpop.f32.mrf.mxu1 }
 0x1f6   :  { %v1007_v60 = vadd.f32 %v1006_v54, %v894_v28  ;;  %v1140_v5 = vadd.f32 %v1139_v42, %v3276_v35 }
 0x1f8   :  { %v3382_v12 = vadd.f32 %v1119_v20, %v1007_v60  ;;  %1186 = vmatmul.f32.gmra.mxu1 %v444_v17  ;;  %1299 = vmatmul.f32.gmra.mxu2 %v445_v46  ;;  %v1478_v50 = vpop.f32.mrf.mxu0  ;;  %v176_v17 = vld [vmem:[#allocation5 + $0x248] sm:$0xff]  ;;  %v2782_v60 = vld [vmem:[#allocation2 + $0x3f0] sm:$0xff] }
 0x1f9   :  { %1585 = vmatpush.msrb.mxu1 %v176_v17  ;;  %v254_v17 = vld [vmem:[#allocation5 + $0x4b8] sm:$0xff] }
 0x1fa   :  { %1412 = vmatmul.f32.gmra.mxu3 %v2777_v45 }
 0x1fb   :  { %v1252_v53 = vpop.f32.mrf.mxu2  ;;  %1525 = vmatmul.f32.gmra.mxu0 %v2779_v1 }
 0x1fc   :  { %v3387_v29 = vadd.f32 %v1252_v53, %v1140_v5  ;;  %v466_v53 = vld [vmem:[#allocation2 + $0x458] sm:$0xff] }
 0x1fd   :  { %v1142_v23 = vpop.f32.mrf.mxu1  ;;  %v1365_v6 = vpop.f32.mrf.mxu3 }
 0x1fe   :  { %v1366_v0 = vadd.f32 %v1365_v6, %v3385_v58  ;;  %v1143_v4 = vadd.f32 %v1142_v23, %v3280_v62  ;;  %v224_v62 = vld [vmem:[#allocation5 + $0x3c8] sm:$0xff] }
 0x1ff   :  { %1690 = vmatpush.msrb.mxu2 %v224_v62 }
 0x200   :  { %v3390_v49 = vadd.f32 %v1478_v50, %v1366_v0  ;;  %1189 = vmatmul.f32.gmra.mxu1 %v451_v8  ;;  %1302 = vmatmul.f32.gmra.mxu2 %v452_v37  ;;  %v1481_v35 = vpop.f32.mrf.mxu0  ;;  %v256_v50 = vld [vmem:[#allocation5 + $0x4c8] sm:$0xff]  ;;  %v2785_v0 = vld [vmem:[#allocation2 + $0x430] sm:$0xff] }
 0x201   :  { %1803 = vmatpush.msrb.mxu3 %v256_v50  ;;  %v2784_v8 = vld [vmem:[#allocation2 + $0x428] sm:$0xff] }
 0x202   :  { %1415 = vmatmul.f32.gmra.mxu3 %v2780_v32 }
 0x203   :  { %v1255_v18 = vpop.f32.mrf.mxu2  ;;  %1528 = vmatmul.f32.gmra.mxu0 %v2781_v63  ;;  %v473_v63 = vld [vmem:[#allocation2 + $0x490] sm:$0xff]  ;;  %1804 = vmatpush.msrb.mxu3 %v254_v17  ;;  %v2791_v17 = vld [vmem:[#allocation2 + $0x4d8] sm:$0xff] }
 0x204   :  { %v3393_v20 = vadd.f32 %v1255_v18, %v1143_v4  ;;  %v472_v18 = vld [vmem:[#allocation2 + $0x488] sm:$0xff] }
 0x205   :  { %v1145_v51 = vpop.f32.mrf.mxu1  ;;  %v1368_v44 = vpop.f32.mrf.mxu3 }
 0x206   :  { %v1369_v28 = vadd.f32 %v1368_v44, %v3385_v58  ;;  %v1146_v46 = vadd.f32 %v1145_v51, %v3284_v21 }
 0x208   :  { %v3396_v54 = vadd.f32 %v1481_v35, %v1369_v28  ;;  %1192 = vmatmul.f32.gmra.mxu1 %v458_v25  ;;  %1305 = vmatmul.f32.gmra.mxu2 %v459_v47  ;;  %v1484_v42 = vpop.f32.mrf.mxu0  ;;  %v174_v47 = vld [vmem:[#allocation5 + $0x238] sm:$0xff] }
 0x209   :  { %1586 = vmatpush.msrb.mxu1 %v174_v47 }
 0x20a   :  { %1418 = vmatmul.f32.gmra.mxu3 %v2782_v60 }
 0x20b   :  { %v1258_v59 = vpop.f32.mrf.mxu2  ;;  %1531 = vmatmul.f32.gmra.mxu0 %v2783_v30  ;;  %v479_v30 = vld [vmem:[#allocation2 + $0x4c0] sm:$0xff] }
 0x20c   :  { %v3399_v5 = vadd.f32 %v1258_v59, %v1146_v46  ;;  %v2787_v46 = vld [vmem:[#allocation2 + $0x468] sm:$0xff] }
 0x20d   :  { %v1148_v45 = vpop.f32.mrf.mxu1  ;;  %v1371_v43 = vpop.f32.mrf.mxu3 }
 0x20e   :  { %v1372_v1 = vadd.f32 %v1371_v43, %v3385_v58  ;;  %v1149_v6 = vadd.f32 %v1148_v45, %v3288_v52  ;;  %v222_v52 = vld [vmem:[#allocation5 + $0x3b8] sm:$0xff]  ;;  %v480_v45 = vld [vmem:[#allocation2 + $0x4c8] sm:$0xff] }
 0x20f   :  { %1691 = vmatpush.msrb.mxu2 %v222_v52  ;;  %v2790_v52 = vld [vmem:[#allocation2 + $0x4d0] sm:$0xff] }
 0x210   :  { %v3402_v23 = vadd.f32 %v1484_v42, %v1372_v1  ;;  %1195 = vmatmul.f32.gmra.mxu1 %v465_v61  ;;  %1308 = vmatmul.f32.gmra.mxu2 %v466_v53  ;;  %v1487_v21 = vpop.f32.mrf.mxu0  ;;  %v2786_v42 = vld [vmem:[#allocation2 + $0x460] sm:$0xff]  ;;  %v2788_v1 = vld [vmem:[#allocation2 + $0x498] sm:$0xff] }
 0x212   :  { %1421 = vmatmul.f32.gmra.mxu3 %v2784_v8 }
 0x213   :  { %v1261_v37 = vpop.f32.mrf.mxu2  ;;  %1534 = vmatmul.f32.gmra.mxu0 %v2785_v0 }
 0x214   :  { %v3405_v35 = vadd.f32 %v1261_v37, %v1149_v6  ;;  %v2789_v6 = vld [vmem:[#allocation2 + $0x4a0] sm:$0xff] }
 0x215   :  { %v1151_v4 = vpop.f32.mrf.mxu1  ;;  %v1374_v32 = vpop.f32.mrf.mxu3 }
 0x216   :  { %v1375_v51 = vadd.f32 %v1374_v32, %v3385_v58  ;;  %v1152_v28 = vadd.f32 %v1151_v4, %v3292_v15  ;;  %v486_v4 = vld [vmem:[#allocation2 + $0x4f8] sm:$0xff]  ;;  %v487_v32 = vld [vmem:[#allocation2 + $0x500] sm:$0xff] }
 0x218   :  { %v3408_v44 = vadd.f32 %v1487_v21, %v1375_v51  ;;  %1198 = vmatmul.f32.gmra.mxu1 %v472_v18  ;;  %1311 = vmatmul.f32.gmra.mxu2 %v473_v63  ;;  %v1490_v25 = vpop.f32.mrf.mxu0 }
 0x21a   :  { %1424 = vmatmul.f32.gmra.mxu3 %v2786_v42 }
 0x21b   :  { %v1264_v62 = vpop.f32.mrf.mxu2  ;;  %1537 = vmatmul.f32.gmra.mxu0 %v2787_v46 }
 0x21c   :  { %v3411_v60 = vadd.f32 %v1264_v62, %v1152_v28  ;;  %v252_v28 = vld [vmem:[#allocation5 + $0x4a8] sm:$0xff] }
 0x21d   :  { %v1154_v50 = vpop.f32.mrf.mxu1  ;;  %v1377_v59 = vpop.f32.mrf.mxu3  ;;  %1805 = vmatpush.msrb.mxu3 %v252_v28  ;;  %v250_v28 = vld [vmem:[#allocation5 + $0x498] sm:$0xff] }
 0x21e   :  { %v1378_v43 = vadd.f32 %v1377_v59, %v3385_v58  ;;  %v1155_v53 = vadd.f32 %v1154_v50, %v3296_v41  ;;  %v220_v41 = vld [vmem:[#allocation5 + $0x3a8] sm:$0xff]  ;;  %v493_v59 = vld [vmem:[#allocation2 + $0x530] sm:$0xff] }
 0x21f   :  { %1692 = vmatpush.msrb.mxu2 %v220_v41  ;;  %v170_v41 = vld [vmem:[#allocation5 + $0x218] sm:$0xff]  ;;  %1806 = vmatpush.msrb.mxu3 %v250_v28 }
 0x220   :  { %v3414_v61 = vadd.f32 %v1490_v25, %v1378_v43  ;;  %1201 = vmatmul.f32.gmra.mxu1 %v479_v30  ;;  %1314 = vmatmul.f32.gmra.mxu2 %v480_v45  ;;  %v1493_v15 = vpop.f32.mrf.mxu0  ;;  %v172_v25 = vld [vmem:[#allocation5 + $0x228] sm:$0xff]  ;;  %v494_v30 = vld [vmem:[#allocation2 + $0x538] sm:$0xff] }
 0x221   :  { %1587 = vmatpush.msrb.mxu1 %v172_v25  ;;  %v290_v28 = vld [vmem:[#allocation5 + $0x5d8] sm:$0xff] }
 0x222   :  { %1427 = vmatmul.f32.gmra.mxu3 %v2788_v1 }
 0x223   :  { %v1267_v21 = vpop.f32.mrf.mxu2  ;;  %1540 = vmatmul.f32.gmra.mxu0 %v2789_v6  ;;  %1588 = vmatpush.msrb.mxu1 %v170_v41 }
 0x224   :  { %v3417_v8 = vadd.f32 %v1267_v21, %v1155_v53  ;;  %v2792_v53 = vld [vmem:[#allocation2 + $0x508] sm:$0xff]  ;;  %v2793_v21 = vld [vmem:[#allocation2 + $0x510] sm:$0xff] }
 0x225   :  { %v1157_v37 = vpop.f32.mrf.mxu1  ;;  %v1380_v0 = vpop.f32.mrf.mxu3 }
 0x226   :  { %v1381_v18 = vadd.f32 %v1380_v0, %v3385_v58  ;;  %v1158_v47 = vadd.f32 %v1157_v37, %v3300_v9 }
 0x228   :  { %v3420_v63 = vadd.f32 %v1493_v15, %v1381_v18  ;;  %1204 = vmatmul.f32.gmra.mxu1 %v486_v4  ;;  %1317 = vmatmul.f32.gmra.mxu2 %v487_v32  ;;  %v1496_v51 = vpop.f32.mrf.mxu0  ;;  %v500_v4 = vld [vmem:[#allocation2 + $0x568] sm:$0xff]  ;;  %v501_v32 = vld [vmem:[#allocation2 + $0x570] sm:$0xff] }
 0x22a   :  { %1430 = vmatmul.f32.gmra.mxu3 %v2790_v52  ;;  %v2794_v52 = vld [vmem:[#allocation2 + $0x540] sm:$0xff] }
 0x22b   :  { %v1270_v42 = vpop.f32.mrf.mxu2  ;;  %1543 = vmatmul.f32.gmra.mxu0 %v2791_v17  ;;  %v2795_v17 = vld [vmem:[#allocation2 + $0x548] sm:$0xff] }
 0x22c   :  { %v3423_v62 = vadd.f32 %v1270_v42, %v1158_v47 }
 0x22d   :  { %v1160_v46 = vpop.f32.mrf.mxu1  ;;  %v1383_v50 = vpop.f32.mrf.mxu3 }
 0x22e   :  { %v1384_v45 = vadd.f32 %v1383_v50, %v3385_v58  ;;  %v1161_v15 = vadd.f32 %v1160_v46, %v3304_v31  ;;  %v218_v31 = vld [vmem:[#allocation5 + $0x398] sm:$0xff] }
 0x22f   :  { %1693 = vmatpush.msrb.mxu2 %v218_v31  ;;  %v514_v31 = vld [vmem:[#allocation2 + $0x5d8] sm:$0xff] }
 0x230   :  { %v3426_v43 = vadd.f32 %v1496_v51, %v1384_v45  ;;  %1207 = vmatmul.f32.gmra.mxu1 %v493_v59  ;;  %1320 = vmatmul.f32.gmra.mxu2 %v494_v30  ;;  %v1499_v9 = vpop.f32.mrf.mxu0  ;;  %v507_v30 = vld [vmem:[#allocation2 + $0x5a0] sm:$0xff]  ;;  %v508_v45 = vld [vmem:[#allocation2 + $0x5a8] sm:$0xff] }
 0x232   :  { %1433 = vmatmul.f32.gmra.mxu3 %v2792_v53 }
 0x233   :  { %v1273_v1 = vpop.f32.mrf.mxu2  ;;  %1546 = vmatmul.f32.gmra.mxu0 %v2793_v21  ;;  %v294_v21 = vld [vmem:[#allocation5 + $0x5f8] sm:$0xff] }
 0x234   :  { %v3429_v6 = vadd.f32 %v1273_v1, %v1161_v15  ;;  %v2796_v1 = vld [vmem:[#allocation2 + $0x578] sm:$0xff]  ;;  %1913 = vmatpush.msrb.mxu0 %v294_v21 }
 0x235   :  { %v1163_v37 = vpop.f32.mrf.mxu1  ;;  %v1386_v0 = vpop.f32.mrf.mxu3 }
 0x236   :  { %v1387_v18 = vadd.f32 %v1386_v0, %v3385_v58  ;;  %v1164_v47 = vadd.f32 %v1163_v37, %v3308_v2  ;;  %v2797_v0 = vld [vmem:[#allocation2 + $0x580] sm:$0xff] }
 0x238   :  { %v3432_v51 = vadd.f32 %v1499_v9, %v1387_v18  ;;  %1210 = vmatmul.f32.gmra.mxu1 %v500_v4  ;;  %1323 = vmatmul.f32.gmra.mxu2 %v501_v32  ;;  %v1502_v25 = vpop.f32.mrf.mxu0  ;;  %v292_v32 = vld [vmem:[#allocation5 + $0x5e8] sm:$0xff] }
 0x239   :  { %1914 = vmatpush.msrb.mxu0 %v292_v32  ;;  %v210_v32 = vld [vmem:[#allocation5 + $0x358] sm:$0xff] }
 0x23a   :  { %1436 = vmatmul.f32.gmra.mxu3 %v2794_v52  ;;  %v216_v52 = vld [vmem:[#allocation5 + $0x388] sm:$0xff] }
 0x23b   :  { %v1276_v42 = vpop.f32.mrf.mxu2  ;;  %1549 = vmatmul.f32.gmra.mxu0 %v2795_v17  ;;  %1694 = vmatpush.msrb.mxu2 %v216_v52  ;;  %v168_v17 = vld [vmem:[#allocation5 + $0x208] sm:$0xff] }
 0x23c   :  { %v3435_v46 = vadd.f32 %v1276_v42, %v1164_v47  ;;  %1915 = vmatpush.msrb.mxu0 %v290_v28  ;;  %1589 = vmatpush.msrb.mxu1 %v168_v17  ;;  %v284_v52 = vld [vmem:[#allocation5 + $0x5a8] sm:$0xff] }
 0x23d   :  { %v1166_v50 = vpop.f32.mrf.mxu1  ;;  %v1389_v59 = vpop.f32.mrf.mxu3  ;;  %v208_v28 = vld [vmem:[#allocation5 + $0x348] sm:$0xff] }
 0x23e   :  { %v1390_v9 = vadd.f32 %v1389_v59, %v3385_v58  ;;  %v1167_v53 = vadd.f32 %v1166_v50, %v3312_v36  ;;  %v214_v50 = vld [vmem:[#allocation5 + $0x378] sm:$0xff]  ;;  %v248_v59 = vld [vmem:[#allocation5 + $0x488] sm:$0xff] }
 0x23f   :  { %1695 = vmatpush.msrb.mxu2 %v214_v50  ;;  %1807 = vmatpush.msrb.mxu3 %v248_v59  ;;  %v242_v59 = vld [vmem:[#allocation5 + $0x458] sm:$0xff] }
 0x240   :  { %v3438_v15 = vadd.f32 %v1502_v25, %v1390_v9  ;;  %1213 = vmatmul.f32.gmra.mxu1 %v507_v30  ;;  %1326 = vmatmul.f32.gmra.mxu2 %v508_v45  ;;  %v1505_v2 = vpop.f32.mrf.mxu0  ;;  %v515_v25 = vld [vmem:[#allocation2 + $0x5e0] sm:$0xff]  ;;  %v288_v30 = vld [vmem:[#allocation5 + $0x5c8] sm:$0xff]  ;;  %v2798_v9 = vld [vmem:[#allocation2 + $0x5b0] sm:$0xff] }
 0x241   :  { %1916 = vmatpush.msrb.mxu0 %v288_v30  ;;  %v282_v30 = vld [vmem:[#allocation5 + $0x598] sm:$0xff] }
 0x242   :  { %1439 = vmatmul.f32.gmra.mxu3 %v2796_v1  ;;  %v246_v1 = vld [vmem:[#allocation5 + $0x478] sm:$0xff] }
 0x243   :  { %v1279_v37 = vpop.f32.mrf.mxu2  ;;  %1552 = vmatmul.f32.gmra.mxu0 %v2797_v0  ;;  %1808 = vmatpush.msrb.mxu3 %v246_v1  ;;  %v240_v1 = vld [vmem:[#allocation5 + $0x448] sm:$0xff] }
 0x244   :  { %v3441_v4 = vadd.f32 %v1279_v37, %v1167_v53  ;;  %v212_v53 = vld [vmem:[#allocation5 + $0x368] sm:$0xff]  ;;  %v2799_v37 = vld [vmem:[#allocation2 + $0x5b8] sm:$0xff] }
 0x245   :  { %v1169_v18 = vpop.f32.mrf.mxu1  ;;  %v1392_v41 = vpop.f32.mrf.mxu3  ;;  %1696 = vmatpush.msrb.mxu2 %v212_v53  ;;  %v2800_v53 = vld [vmem:[#allocation2 + $0x5e8] sm:$0xff] }
 0x246   :  { %v1393_v47 = vadd.f32 %v1392_v41, %v3385_v58  ;;  %v1170_v45 = vadd.f32 %v1169_v18, %v3316_v14  ;;  %v244_v41 = vld [vmem:[#allocation5 + $0x468] sm:$0xff]  ;;  %v522_v14 = vld [vmem:[#allocation2 + $0x618] sm:$0xff] }
 0x247   :  { %1697 = vmatpush.msrb.mxu2 %v210_v32  ;;  %1809 = vmatpush.msrb.mxu3 %v244_v41  ;;  %v238_v41 = vld [vmem:[#allocation5 + $0x438] sm:$0xff] }
 0x248   :  { %v3444_v36 = vadd.f32 %v1505_v2, %v1393_v47  ;;  %1216 = vmatmul.f32.gmra.mxu1 %v514_v31  ;;  %1329 = vmatmul.f32.gmra.mxu2 %v515_v25  ;;  %v1508_v42 = vpop.f32.mrf.mxu0  ;;  %v286_v2 = vld [vmem:[#allocation5 + $0x5b8] sm:$0xff]  ;;  %v3449_v47 = vld [vmem:[#allocation2 + $0x610] sm:$0xff] }
 0x249   :  { %1917 = vmatpush.msrb.mxu0 %v286_v2  ;;  %1698 = vmatpush.msrb.mxu2 %v208_v28  ;;  %v204_v2 = vld [vmem:[#allocation5 + $0x328] sm:$0xff]  ;;  %v202_v28 = vld [vmem:[#allocation5 + $0x318] sm:$0xff] }
 0x24a   :  { %1442 = vmatmul.f32.gmra.mxu3 %v2798_v9 }
 0x24b   :  { %v1282_v21 = vpop.f32.mrf.mxu2  ;;  %1555 = vmatmul.f32.gmra.mxu0 %v2799_v37  ;;  %v2801_v37 = vld [vmem:[#allocation2 + $0x5f0] sm:$0xff]  ;;  %1810 = vmatpush.msrb.mxu3 %v242_v59 }
 0x24c   :  { %v3447_v0 = vadd.f32 %v1282_v21, %v1170_v45  ;;  %1918 = vmatpush.msrb.mxu0 %v284_v52  ;;  %v206_v45 = vld [vmem:[#allocation5 + $0x338] sm:$0xff]  ;;  %v529_v52 = vld [vmem:[#allocation2 + $0x650] sm:$0xff] }
 0x24d   :  { %v1172_v31 = vpop.f32.mrf.mxu1  ;;  %v1395_v25 = vpop.f32.mrf.mxu3  ;;  %1699 = vmatpush.msrb.mxu2 %v206_v45  ;;  %1811 = vmatpush.msrb.mxu3 %v240_v1  ;;  %v236_v45 = vld [vmem:[#allocation5 + $0x428] sm:$0xff] }
 0x24e   :  { %v1396_v18 = vadd.f32 %v1395_v25, %v3385_v58  ;;  %v1173_v9 = vadd.f32 %v1172_v31, %v3320_v57  ;;  %1919 = vmatpush.msrb.mxu0 %v282_v30  ;;  %v278_v31 = vld [vmem:[#allocation5 + $0x578] sm:$0xff] }
 0x24f   :  { %1700 = vmatpush.msrb.mxu2 %v204_v2  ;;  %1812 = vmatpush.msrb.mxu3 %v238_v41  ;;  %v2803_v41 = vld [vmem:[#allocation2 + $0x628] sm:$0xff] }
 0x250   :  { %v3452_v17 = vadd.f32 %v1508_v42, %v1396_v18  ;;  %1219 = vmatmul.f32.gmra.mxu1 %v3449_v47  ;;  %1332 = vmatmul.f32.gmra.mxu2 %v522_v14  ;;  %v1511_v50 = vpop.f32.mrf.mxu0  ;;  %v280_v42 = vld [vmem:[#allocation5 + $0x588] sm:$0xff] }
 0x251   :  { %v3458_v18 = vld [vmem:[#allocation2 + $0x648] sm:$0xff]  ;;  %1920 = vmatpush.msrb.mxu0 %v280_v42  ;;  %1701 = vmatpush.msrb.mxu2 %v202_v28  ;;  %v234_v42 = vld [vmem:[#allocation5 + $0x418] sm:$0xff]  ;;  %v3467_v28 = vld [vmem:[#allocation2 + $0x680] sm:$0xff] }
 0x252   :  { %1445 = vmatmul.f32.gmra.mxu3 %v2800_v53  ;;  %v276_v53 = vld [vmem:[#allocation5 + $0x568] sm:$0xff] }
 0x253   :  { %v1285_v21 = vpop.f32.mrf.mxu2  ;;  %1558 = vmatmul.f32.gmra.mxu0 %v2801_v37  ;;  %v2802_v37 = vld [vmem:[#allocation2 + $0x620] sm:$0xff]  ;;  %1813 = vmatpush.msrb.mxu3 %v236_v45 }
 0x254   :  { %v3456_v32 = vadd.f32 %v1285_v21, %v1173_v9  ;;  %v326_v9 = vld [vmem:[#allocation5 + $0x6f8] sm:$0xff]  ;;  %1921 = vmatpush.msrb.mxu0 %v278_v31  ;;  %v200_v21 = vld [vmem:[#allocation5 + $0x308] sm:$0xff] }
 0x255   :  { %v1175_v25 = vpop.f32.mrf.mxu1  ;;  %v1398_v14 = vpop.f32.mrf.mxu3  ;;  %2026 = vmatpush.msra.mxu1 %v326_v9  ;;  %1702 = vmatpush.msrb.mxu2 %v200_v21 }
 0x256   :  { %3978 = vst [vmem:[#allocation16_spill] sm:$0xff] %v3456_v32  ;;  %v1399_v57 = vadd.f32 %v1398_v14, %v3385_v58  ;;  %v1176_v1 = vadd.f32 %v1175_v25, %v3324_v38  ;;  %1922 = vmatpush.msrb.mxu0 %v276_v53  ;;  %v536_v32 = vld [vmem:[#allocation2 + $0x688] sm:$0xff]  ;;  %1814 = vmatpush.msrb.mxu3 %v234_v42  ;;  %v270_v53 = vld [vmem:[#allocation5 + $0x538] sm:$0xff] }
 0x257   :  { %v272_v25 = vld [vmem:[#allocation5 + $0x548] sm:$0xff] }
 0x258   :  { %v3461_v59 = vadd.f32 %v1511_v50, %v1399_v57  ;;  %1222 = vmatmul.f32.gmra.mxu1 %v3458_v18  ;;  %1335 = vmatmul.f32.gmra.mxu2 %v529_v52  ;;  %v1514_v30 = vpop.f32.mrf.mxu0  ;;  %v274_v50 = vld [vmem:[#allocation5 + $0x558] sm:$0xff]  ;;  %v232_v52 = vld [vmem:[#allocation5 + $0x408] sm:$0xff] }
 0x259   :  { %1923 = vmatpush.msrb.mxu0 %v274_v50  ;;  %1815 = vmatpush.msrb.mxu3 %v232_v52  ;;  %v268_v42 = vld [vmem:[#allocation5 + $0x528] sm:$0xff]  ;;  %v3476_v52 = vld [vmem:[#allocation2 + $0x6b8] sm:$0xff] }
 0x25a   :  { %1448 = vmatmul.f32.gmra.mxu3 %v2802_v37 }
 0x25b   :  { %v1288_v2 = vpop.f32.mrf.mxu2  ;;  %1561 = vmatmul.f32.gmra.mxu0 %v2803_v41 }
 0x25c   :  { %v3465_v14 = vadd.f32 %v1288_v2, %v1176_v1  ;;  %1924 = vmatpush.msrb.mxu0 %v272_v25  ;;  %v2804_v1 = vld [vmem:[#allocation2 + $0x658] sm:$0xff]  ;;  %v2805_v2 = vld [vmem:[#allocation2 + $0x660] sm:$0xff] }
 0x25d   :  { %v1178_v57 = vpop.f32.mrf.mxu1  ;;  %v1401_v31 = vpop.f32.mrf.mxu3 }
 0x25e   :  { %3979 = vst [vmem:[#allocation17_spill] sm:$0xff] %v3465_v14  ;;  %v1402_v38 = vadd.f32 %v1401_v31, %v3385_v58  ;;  %v1179_v21 = vadd.f32 %v1178_v57, %v3328_v3  ;;  %1925 = vmatpush.msrb.mxu0 %v270_v53  ;;  %v543_v31 = vld [vmem:[#allocation2 + $0x6c0] sm:$0xff]  ;;  %v324_v57 = vld [vmem:[#allocation5 + $0x6e8] sm:$0xff]  ;;  %v322_v14 = vld [vmem:[#allocation5 + $0x6d8] sm:$0xff] }
 0x25f   :  { %2027 = vmatpush.msra.mxu1 %v324_v57  ;;  %v2808_v57 = vld [vmem:[#allocation2 + $0x6c8] sm:$0xff] }
 0x260   :  { %v3470_v9 = vadd.f32 %v1514_v30, %v1402_v38  ;;  %1225 = vmatmul.f32.gmra.mxu1 %v3467_v28  ;;  %1338 = vmatmul.f32.gmra.mxu2 %v536_v32  ;;  %v1517_v45 = vpop.f32.mrf.mxu0  ;;  %v266_v38 = vld [vmem:[#allocation5 + $0x518] sm:$0xff] }
 0x261   :  { %1926 = vmatpush.msrb.mxu0 %v268_v42  ;;  %2028 = vmatpush.msra.mxu1 %v322_v14 }
 0x262   :  { %1451 = vmatmul.f32.gmra.mxu3 %v2804_v1  ;;  %v2806_v1 = vld [vmem:[#allocation2 + $0x690] sm:$0xff] }
 0x263   :  { %v1291_v37 = vpop.f32.mrf.mxu2  ;;  %1564 = vmatmul.f32.gmra.mxu0 %v2805_v2  ;;  %v2807_v2 = vld [vmem:[#allocation2 + $0x698] sm:$0xff] }
 0x264   :  { %v3474_v41 = vadd.f32 %v1291_v37, %v1179_v21  ;;  %1927 = vmatpush.msrb.mxu0 %v266_v38  ;;  %v264_v21 = vld [vmem:[#allocation5 + $0x508] sm:$0xff] }
 0x265   :  { %v1181_v50 = vpop.f32.mrf.mxu1  ;;  %v1404_v30 = vpop.f32.mrf.mxu3 }
 0x266   :  { %3980 = vst [vmem:[#allocation18_spill] sm:$0xff] %v3474_v41  ;;  %v1405_v32 = vadd.f32 %v1404_v30, %v3385_v58  ;;  %v1182_v53 = vadd.f32 %v1181_v50, %v3332_v26  ;;  %1928 = vmatpush.msrb.mxu0 %v264_v21 }
 0x268   :  { %v3479_v25 = vadd.f32 %v1517_v45, %v1405_v32  ;;  %1228 = vmatmul.f32.gmra.mxu1 %v3476_v52  ;;  %1341 = vmatmul.f32.gmra.mxu2 %v543_v31  ;;  %v1520_v3 = vpop.f32.mrf.mxu0  ;;  %v3485_v32 = vld [vmem:[#allocation2 + $0x6f0] sm:$0xff]  ;;  %v550_v31 = vld [vmem:[#allocation2 + $0x6f8] sm:$0xff] }
 0x26a   :  { %1454 = vmatmul.f32.gmra.mxu3 %v2806_v1  ;;  %v2809_v1 = vld [vmem:[#allocation2 + $0x6d0] sm:$0xff] }
 0x26b   :  { %v1294_v37 = vpop.f32.mrf.mxu2  ;;  %1567 = vmatmul.f32.gmra.mxu0 %v2807_v2 }
 0x26c   :  { %v3483_v30 = vadd.f32 %v1294_v37, %v1182_v53 }
 0x26d   :  { %v1184_v45 = vpop.f32.mrf.mxu1  ;;  %v1407_v42 = vpop.f32.mrf.mxu3 }
 0x26e   :  { %3981 = vst [vmem:[#allocation19_spill] sm:$0xff] %v3483_v30  ;;  %v1408_v41 = vadd.f32 %v1407_v42, %v3385_v58  ;;  %v1185_v50 = vadd.f32 %v1184_v45, %v3334_v39  ;;  %v2812_v45 = vld [vmem:[#allocation2 + $0x20] sm:$0xff] }
 0x270   :  { %v3488_v38 = vadd.f32 %v1520_v3, %v1408_v41  ;;  %1231 = vmatmul.f32.gmra.mxu1 %v3485_v32  ;;  %1344 = vmatmul.f32.gmra.mxu2 %v550_v31  ;;  %v1523_v26 = vpop.f32.mrf.mxu0  ;;  %v2810_v41 = vld [vmem:[#allocation2 + $0x10] sm:$0xff]  ;;  %v2811_v3 = vld [vmem:[#allocation2 + $0x18] sm:$0xff] }
 0x272   :  { %1457 = vmatmul.f32.gmra.mxu3 %v2808_v57 }
 0x273   :  { %v1297_v53 = vpop.f32.mrf.mxu2  ;;  %1570 = vmatmul.f32.gmra.mxu0 %v2809_v1 }
 0x274   :  { %v3492_v21 = vadd.f32 %v1297_v53, %v1185_v50  ;;  %v2813_v50 = vld [vmem:[#allocation2 + $0x28] sm:$0xff] }
 0x275   :  { %v1187_v37 = vpop.f32.mrf.mxu1  ;;  %v1410_v2 = vpop.f32.mrf.mxu3 }
 0x276   :  { %3982 = vst [vmem:[#allocation20_spill] sm:$0xff] %v3492_v21  ;;  %v1411_v30 = vadd.f32 %v1410_v2, %v3385_v58  ;;  %v1188_v39 = vadd.f32 %v1187_v37, %v3337_v11  ;;  %v2816_v37 = vld [vmem:[#allocation2 + $0x58] sm:$0xff]  ;;  %v2817_v21 = vld [vmem:[#allocation2 + $0x60] sm:$0xff] }
 0x278   :  { %v3495_v42 = vadd.f32 %v1523_v26, %v1411_v30  ;;  %1590 = vmatmul.f32.vlgmr.msrb.gmra.mxu1 %v2810_v41  ;;  %1703 = vmatmul.f32.vlgmr.msrb.gmra.mxu2 %v2811_v3  ;;  %v1526_v31 = vpop.f32.mrf.mxu0  ;;  %v2814_v41 = vld [vmem:[#allocation2 + $0x48] sm:$0xff]  ;;  %v2815_v3 = vld [vmem:[#allocation2 + $0x50] sm:$0xff] }
 0x27a   :  { %1816 = vmatmul.f32.vlgmr.msrb.gmra.mxu3 %v2812_v45 }
 0x27b   :  { %v1300_v57 = vpop.f32.mrf.mxu2  ;;  %1929 = vmatmul.f32.vlgmr.msrb.gmra.mxu0 %v2813_v50 }
 0x27c   :  { %v3498_v53 = vadd.f32 %v1300_v57, %v1188_v39 }
 0x27d   :  { %v1190_v1 = vpop.f32.mrf.mxu1  ;;  %v1413_v2 = vpop.f32.mrf.mxu3 }
 0x27e   :  { %3983 = vst [vmem:[#allocation21_spill] sm:$0xff] %v3498_v53  ;;  %v1414_v30 = vadd.f32 %v1413_v2, %v3385_v58  ;;  %v1191_v11 = vadd.f32 %v1190_v1, %v3340_v55  ;;  %v320_v53 = vld [vmem:[#allocation5 + $0x6c8] sm:$0xff]  ;;  %v2820_v1 = vld [vmem:[#allocation2 + $0x90] sm:$0xff] }
 0x27f   :  { %2029 = vmatpush.msra.mxu1 %v320_v53 }
 0x280   :  { %v3501_v26 = vadd.f32 %v1526_v31, %v1414_v30  ;;  %1593 = vmatmul.f32.gmra.mxu1 %v2814_v41  ;;  %1706 = vmatmul.f32.gmra.mxu2 %v2815_v3  ;;  %v1529_v14 = vpop.f32.mrf.mxu0  ;;  %v2818_v30 = vld [vmem:[#allocation2 + $0x80] sm:$0xff]  ;;  %v2819_v41 = vld [vmem:[#allocation2 + $0x88] sm:$0xff] }
 0x282   :  { %1819 = vmatmul.f32.gmra.mxu3 %v2816_v37 }
 0x283   :  { %v1303_v45 = vpop.f32.mrf.mxu2  ;;  %1932 = vmatmul.f32.gmra.mxu0 %v2817_v21 }
 0x284   :  { %v3504_v39 = vadd.f32 %v1303_v45, %v1191_v11  ;;  %v2821_v11 = vld [vmem:[#allocation2 + $0x98] sm:$0xff] }
 0x285   :  { %v1193_v57 = vpop.f32.mrf.mxu1  ;;  %v1416_v50 = vpop.f32.mrf.mxu3 }
 0x286   :  { %3984 = vst [vmem:[#allocation22_spill] sm:$0xff] %v3504_v39  ;;  %v1417_v2 = vadd.f32 %v1416_v50, %v3385_v58  ;;  %v1194_v55 = vadd.f32 %v1193_v57, %v3343_v22  ;;  %v2824_v57 = vld [vmem:[#allocation2 + $0xc8] sm:$0xff]  ;;  %v2825_v39 = vld [vmem:[#allocation2 + $0xd0] sm:$0xff] }
 0x288   :  { %v3507_v31 = vadd.f32 %v1529_v14, %v1417_v2  ;;  %1596 = vmatmul.f32.gmra.mxu1 %v2818_v30  ;;  %1709 = vmatmul.f32.gmra.mxu2 %v2819_v41  ;;  %v1532_v3 = vpop.f32.mrf.mxu0  ;;  %v2822_v30 = vld [vmem:[#allocation2 + $0xb8] sm:$0xff]  ;;  %v2823_v41 = vld [vmem:[#allocation2 + $0xc0] sm:$0xff] }
 0x28a   :  { %1822 = vmatmul.f32.gmra.mxu3 %v2820_v1 }
 0x28b   :  { %v1306_v21 = vpop.f32.mrf.mxu2  ;;  %1935 = vmatmul.f32.gmra.mxu0 %v2821_v11 }
 0x28c   :  { %v3510_v37 = vadd.f32 %v1306_v21, %v1194_v55 }
 0x28d   :  { %v1196_v45 = vpop.f32.mrf.mxu1  ;;  %v1419_v50 = vpop.f32.mrf.mxu3 }
 0x28e   :  { %3985 = vst [vmem:[#allocation23_spill] sm:$0xff] %v3510_v37  ;;  %v1420_v14 = vadd.f32 %v1419_v50, %v3385_v58  ;;  %v1197_v22 = vadd.f32 %v1196_v45, %v3346_v16  ;;  %v318_v37 = vld [vmem:[#allocation5 + $0x6b8] sm:$0xff]  ;;  %v2828_v45 = vld [vmem:[#allocation2 + $0x100] sm:$0xff] }
 0x28f   :  { %2030 = vmatpush.msra.mxu1 %v318_v37 }
 0x290   :  { %v3513_v2 = vadd.f32 %v1532_v3, %v1420_v14  ;;  %1599 = vmatmul.f32.gmra.mxu1 %v2822_v30  ;;  %1712 = vmatmul.f32.gmra.mxu2 %v2823_v41  ;;  %v1535_v53 = vpop.f32.mrf.mxu0  ;;  %v2826_v14 = vld [vmem:[#allocation2 + $0xf0] sm:$0xff]  ;;  %v2827_v30 = vld [vmem:[#allocation2 + $0xf8] sm:$0xff] }
 0x292   :  { %1825 = vmatmul.f32.gmra.mxu3 %v2824_v57 }
 0x293   :  { %v1309_v1 = vpop.f32.mrf.mxu2  ;;  %1938 = vmatmul.f32.gmra.mxu0 %v2825_v39 }
 0x294   :  { %v3516_v55 = vadd.f32 %v1309_v1, %v1197_v22  ;;  %v2829_v22 = vld [vmem:[#allocation2 + $0x108] sm:$0xff] }
 0x295   :  { %v1199_v21 = vpop.f32.mrf.mxu1  ;;  %v1422_v11 = vpop.f32.mrf.mxu3 }
 0x296   :  { %3986 = vst [vmem:[#allocation24_spill] sm:$0xff] %v3516_v55  ;;  %v1423_v50 = vadd.f32 %v1422_v11, %v3385_v58  ;;  %v1200_v16 = vadd.f32 %v1199_v21, %v3349_v40  ;;  %v2832_v21 = vld [vmem:[#allocation2 + $0x138] sm:$0xff]  ;;  %v2833_v55 = vld [vmem:[#allocation2 + $0x140] sm:$0xff] }
 0x298   :  { %v3519_v3 = vadd.f32 %v1535_v53, %v1423_v50  ;;  %1602 = vmatmul.f32.gmra.mxu1 %v2826_v14  ;;  %1715 = vmatmul.f32.gmra.mxu2 %v2827_v30  ;;  %v1538_v41 = vpop.f32.mrf.mxu0  ;;  %v2830_v14 = vld [vmem:[#allocation2 + $0x128] sm:$0xff]  ;;  %v2831_v30 = vld [vmem:[#allocation2 + $0x130] sm:$0xff] }
 0x29a   :  { %1828 = vmatmul.f32.gmra.mxu3 %v2828_v45 }
 0x29b   :  { %v1312_v39 = vpop.f32.mrf.mxu2  ;;  %1941 = vmatmul.f32.gmra.mxu0 %v2829_v22 }
 0x29c   :  { %v3522_v57 = vadd.f32 %v1312_v39, %v1200_v16 }
 0x29d   :  { %v1202_v1 = vpop.f32.mrf.mxu1  ;;  %v1425_v11 = vpop.f32.mrf.mxu3 }
 0x29e   :  { %3987 = vst [vmem:[#allocation25_spill] sm:$0xff] %v3522_v57  ;;  %v1426_v53 = vadd.f32 %v1425_v11, %v3385_v58  ;;  %v1203_v40 = vadd.f32 %v1202_v1, %v3352_v34  ;;  %v316_v57 = vld [vmem:[#allocation5 + $0x6a8] sm:$0xff]  ;;  %v2836_v1 = vld [vmem:[#allocation2 + $0x170] sm:$0xff] }
 0x29f   :  { %2031 = vmatpush.msra.mxu1 %v316_v57 }
 0x2a0   :  { %v3525_v50 = vadd.f32 %v1538_v41, %v1426_v53  ;;  %1605 = vmatmul.f32.gmra.mxu1 %v2830_v14  ;;  %1718 = vmatmul.f32.gmra.mxu2 %v2831_v30  ;;  %v1541_v37 = vpop.f32.mrf.mxu0  ;;  %v2834_v53 = vld [vmem:[#allocation2 + $0x160] sm:$0xff]  ;;  %v2835_v14 = vld [vmem:[#allocation2 + $0x168] sm:$0xff] }
 0x2a2   :  { %1831 = vmatmul.f32.gmra.mxu3 %v2832_v21 }
 0x2a3   :  { %v1315_v45 = vpop.f32.mrf.mxu2  ;;  %1944 = vmatmul.f32.gmra.mxu0 %v2833_v55 }
 0x2a4   :  { %v3528_v16 = vadd.f32 %v1315_v45, %v1203_v40  ;;  %v2837_v40 = vld [vmem:[#allocation2 + $0x178] sm:$0xff] }
 0x2a5   :  { %v1205_v39 = vpop.f32.mrf.mxu1  ;;  %v1428_v22 = vpop.f32.mrf.mxu3 }
 0x2a6   :  { %3988 = vst [vmem:[#allocation26_spill] sm:$0xff] %v3528_v16  ;;  %v1429_v11 = vadd.f32 %v1428_v22, %v3385_v58  ;;  %v1206_v34 = vadd.f32 %v1205_v39, %v3355_v27  ;;  %v2840_v39 = vld [vmem:[#allocation2 + $0x1a8] sm:$0xff]  ;;  %v2841_v16 = vld [vmem:[#allocation2 + $0x1b0] sm:$0xff] }
 0x2a8   :  { %v3531_v41 = vadd.f32 %v1541_v37, %v1429_v11  ;;  %1608 = vmatmul.f32.gmra.mxu1 %v2834_v53  ;;  %1721 = vmatmul.f32.gmra.mxu2 %v2835_v14  ;;  %v1544_v30 = vpop.f32.mrf.mxu0  ;;  %v2838_v53 = vld [vmem:[#allocation2 + $0x198] sm:$0xff]  ;;  %v2839_v14 = vld [vmem:[#allocation2 + $0x1a0] sm:$0xff] }
 0x2aa   :  { %1834 = vmatmul.f32.gmra.mxu3 %v2836_v1 }
 0x2ab   :  { %v1318_v55 = vpop.f32.mrf.mxu2  ;;  %1947 = vmatmul.f32.gmra.mxu0 %v2837_v40 }
 0x2ac   :  { %v3534_v21 = vadd.f32 %v1318_v55, %v1206_v34 }
 0x2ad   :  { %v1208_v45 = vpop.f32.mrf.mxu1  ;;  %v1431_v22 = vpop.f32.mrf.mxu3 }
 0x2ae   :  { %3989 = vst [vmem:[#allocation27_spill] sm:$0xff] %v3534_v21  ;;  %v1432_v37 = vadd.f32 %v1431_v22, %v3385_v58  ;;  %v1209_v27 = vadd.f32 %v1208_v45, %v3358_v48  ;;  %v314_v21 = vld [vmem:[#allocation5 + $0x698] sm:$0xff]  ;;  %v2844_v45 = vld [vmem:[#allocation2 + $0x1e0] sm:$0xff] }
 0x2af   :  { %2032 = vmatpush.msra.mxu1 %v314_v21 }
 0x2b0   :  { %v3537_v11 = vadd.f32 %v1544_v30, %v1432_v37  ;;  %1611 = vmatmul.f32.gmra.mxu1 %v2838_v53  ;;  %1724 = vmatmul.f32.gmra.mxu2 %v2839_v14  ;;  %v1547_v57 = vpop.f32.mrf.mxu0  ;;  %v2842_v37 = vld [vmem:[#allocation2 + $0x1d0] sm:$0xff]  ;;  %v2843_v53 = vld [vmem:[#allocation2 + $0x1d8] sm:$0xff] }
 0x2b2   :  { %1837 = vmatmul.f32.gmra.mxu3 %v2840_v39 }
 0x2b3   :  { %v1321_v1 = vpop.f32.mrf.mxu2  ;;  %1950 = vmatmul.f32.gmra.mxu0 %v2841_v16 }
 0x2b4   :  { %v3540_v34 = vadd.f32 %v1321_v1, %v1209_v27  ;;  %v2845_v27 = vld [vmem:[#allocation2 + $0x1e8] sm:$0xff] }
 0x2b5   :  { %v1211_v55 = vpop.f32.mrf.mxu1  ;;  %v1434_v40 = vpop.f32.mrf.mxu3 }
 0x2b6   :  { %3990 = vst [vmem:[#allocation28_spill] sm:$0xff] %v3540_v34  ;;  %v1435_v22 = vadd.f32 %v1434_v40, %v3385_v58  ;;  %v1212_v48 = vadd.f32 %v1211_v55, %v3361_v7  ;;  %v2848_v55 = vld [vmem:[#allocation2 + $0x218] sm:$0xff]  ;;  %v2849_v34 = vld [vmem:[#allocation2 + $0x220] sm:$0xff] }
 0x2b8   :  { %v3543_v30 = vadd.f32 %v1547_v57, %v1435_v22  ;;  %1614 = vmatmul.f32.gmra.mxu1 %v2842_v37  ;;  %1727 = vmatmul.f32.gmra.mxu2 %v2843_v53  ;;  %v1550_v14 = vpop.f32.mrf.mxu0  ;;  %v2846_v37 = vld [vmem:[#allocation2 + $0x208] sm:$0xff]  ;;  %v2847_v53 = vld [vmem:[#allocation2 + $0x210] sm:$0xff] }
 0x2ba   :  { %1840 = vmatmul.f32.gmra.mxu3 %v2844_v45 }
 0x2bb   :  { %v1324_v16 = vpop.f32.mrf.mxu2  ;;  %1953 = vmatmul.f32.gmra.mxu0 %v2845_v27 }
 0x2bc   :  { %v3546_v39 = vadd.f32 %v1324_v16, %v1212_v48 }
 0x2bd   :  { %v1214_v1 = vpop.f32.mrf.mxu1  ;;  %v1437_v40 = vpop.f32.mrf.mxu3 }
 0x2be   :  { %3991 = vst [vmem:[#allocation29_spill] sm:$0xff] %v3546_v39  ;;  %v1438_v57 = vadd.f32 %v1437_v40, %v3385_v58  ;;  %v1215_v7 = vadd.f32 %v1214_v1, %v3364_v33  ;;  %v312_v39 = vld [vmem:[#allocation5 + $0x688] sm:$0xff]  ;;  %v2852_v1 = vld [vmem:[#allocation2 + $0x250] sm:$0xff] }
 0x2bf   :  { %2033 = vmatpush.msra.mxu1 %v312_v39 }
 0x2c0   :  { %v3549_v22 = vadd.f32 %v1550_v14, %v1438_v57  ;;  %1617 = vmatmul.f32.gmra.mxu1 %v2846_v37  ;;  %1730 = vmatmul.f32.gmra.mxu2 %v2847_v53  ;;  %v1553_v21 = vpop.f32.mrf.mxu0  ;;  %v2850_v57 = vld [vmem:[#allocation2 + $0x240] sm:$0xff]  ;;  %v2851_v37 = vld [vmem:[#allocation2 + $0x248] sm:$0xff] }
 0x2c2   :  { %1843 = vmatmul.f32.gmra.mxu3 %v2848_v55 }
 0x2c3   :  { %v1327_v45 = vpop.f32.mrf.mxu2  ;;  %1956 = vmatmul.f32.gmra.mxu0 %v2849_v34 }
 0x2c4   :  { %v3552_v48 = vadd.f32 %v1327_v45, %v1215_v7  ;;  %v2853_v7 = vld [vmem:[#allocation2 + $0x258] sm:$0xff] }
 0x2c5   :  { %v1217_v16 = vpop.f32.mrf.mxu1  ;;  %v1440_v27 = vpop.f32.mrf.mxu3 }
 0x2c6   :  { %3992 = vst [vmem:[#allocation30_spill] sm:$0xff] %v3552_v48  ;;  %v1441_v40 = vadd.f32 %v1440_v27, %v3385_v58  ;;  %v1218_v33 = vadd.f32 %v1217_v16, %v3367_v56  ;;  %v2856_v16 = vld [vmem:[#allocation2 + $0x288] sm:$0xff]  ;;  %v2857_v48 = vld [vmem:[#allocation2 + $0x290] sm:$0xff] }
 0x2c8   :  { %v3555_v14 = vadd.f32 %v1553_v21, %v1441_v40  ;;  %1620 = vmatmul.f32.gmra.mxu1 %v2850_v57  ;;  %1733 = vmatmul.f32.gmra.mxu2 %v2851_v37  ;;  %v1556_v53 = vpop.f32.mrf.mxu0  ;;  %v2854_v57 = vld [vmem:[#allocation2 + $0x278] sm:$0xff]  ;;  %v2855_v37 = vld [vmem:[#allocation2 + $0x280] sm:$0xff] }
 0x2ca   :  { %1846 = vmatmul.f32.gmra.mxu3 %v2852_v1 }
 0x2cb   :  { %v1330_v34 = vpop.f32.mrf.mxu2  ;;  %1959 = vmatmul.f32.gmra.mxu0 %v2853_v7 }
 0x2cc   :  { %v3558_v55 = vadd.f32 %v1330_v34, %v1218_v33 }
 0x2cd   :  { %v1220_v45 = vpop.f32.mrf.mxu1  ;;  %v1443_v27 = vpop.f32.mrf.mxu3 }
 0x2ce   :  { %3993 = vst [vmem:[#allocation31_spill] sm:$0xff] %v3558_v55  ;;  %v1444_v21 = vadd.f32 %v1443_v27, %v3385_v58  ;;  %v1221_v56 = vadd.f32 %v1220_v45, %v3370_v10  ;;  %v310_v55 = vld [vmem:[#allocation5 + $0x678] sm:$0xff] }
 0x2cf   :  { %v2218_v10 = vld [vmem:[#allocation8 + $0x78] sm:$0xff]  ;;  %2034 = vmatpush.msra.mxu1 %v310_v55  ;;  %v2863_v55 = vld [vmem:[#allocation2 + $0x2f0] sm:$0xff] }
 0x2d0   :  { %v3561_v40 = vadd.f32 %v1556_v53, %v1444_v21  ;;  %1623 = vmatmul.f32.gmra.mxu1 %v2854_v57  ;;  %1736 = vmatmul.f32.gmra.mxu2 %v2855_v37  ;;  %v1559_v39 = vpop.f32.mrf.mxu0  ;;  %v2858_v21 = vld [vmem:[#allocation2 + $0x2b0] sm:$0xff]  ;;  %v2859_v57 = vld [vmem:[#allocation2 + $0x2b8] sm:$0xff] }
 0x2d1   :  { %2239 = vmatpush.msra.mxu2 %v2218_v10  ;;  %v2864_v10 = vld [vmem:[#allocation2 + $0x2f8] sm:$0xff] }
 0x2d2   :  { %1849 = vmatmul.f32.gmra.mxu3 %v2856_v16 }
 0x2d3   :  { %v1333_v1 = vpop.f32.mrf.mxu2  ;;  %1962 = vmatmul.f32.gmra.mxu0 %v2857_v48  ;;  %v2860_v48 = vld [vmem:[#allocation2 + $0x2c0] sm:$0xff] }
 0x2d4   :  { %v3564_v33 = vadd.f32 %v1333_v1, %v1221_v56  ;;  %v2234_v56 = vld [vmem:[#allocation8 + $0xf8] sm:$0xff]  ;;  %v2861_v1 = vld [vmem:[#allocation2 + $0x2c8] sm:$0xff] }
 0x2d5   :  { %v1223_v34 = vpop.f32.mrf.mxu1  ;;  %v1446_v7 = vpop.f32.mrf.mxu3  ;;  %2352 = vmatpush.msra.mxu3 %v2234_v56 }
 0x2d6   :  { %3994 = vst [vmem:[#allocation32_spill] sm:$0xff] %v3564_v33  ;;  %v1447_v27 = vadd.f32 %v1446_v7, %v3385_v58  ;;  %v1224_v45 = vadd.f32 %v1223_v34, %v3373_v19  ;;  %v2862_v33 = vld [vmem:[#allocation2 + $0x2e8] sm:$0xff] }
 0x2d8   :  { %v3567_v53 = vadd.f32 %v1559_v39, %v1447_v27  ;;  %1626 = vmatmul.f32.gmra.mxu1 %v2858_v21  ;;  %1739 = vmatmul.f32.gmra.mxu2 %v2859_v57  ;;  %v1562_v37 = vpop.f32.mrf.mxu0 }
 0x2da   :  { %1852 = vmatmul.f32.gmra.mxu3 %v2860_v48 }
 0x2db   :  { %v1336_v16 = vpop.f32.mrf.mxu2  ;;  %1965 = vmatmul.f32.gmra.mxu0 %v2861_v1  ;;  %v2865_v1 = vld [vmem:[#allocation2 + $0x300] sm:$0xff] }
 0x2dc   :  { %v3570_v39 = vadd.f32 %v1336_v16, %v1224_v45 }
 0x2dd   :  { %v1226_v7 = vpop.f32.mrf.mxu1  ;;  %v1449_v27 = vpop.f32.mrf.mxu3 }
 0x2de   :  { %3995 = vst [vmem:[#allocation33_spill] sm:$0xff] %v3570_v39  ;;  %v1450_v21 = vadd.f32 %v1449_v27, %v3385_v58  ;;  %v1227_v34 = vadd.f32 %v1226_v7, %v3376_v13  ;;  %v308_v39 = vld [vmem:[#allocation5 + $0x668] sm:$0xff]  ;;  %v2217_v13 = vld [vmem:[#allocation8 + $0x70] sm:$0xff] }
 0x2df   :  { %2035 = vmatpush.msra.mxu1 %v308_v39  ;;  %2240 = vmatpush.msra.mxu2 %v2217_v13  ;;  %v2871_v39 = vld [vmem:[#allocation2 + $0x360] sm:$0xff]  ;;  %v2872_v13 = vld [vmem:[#allocation2 + $0x368] sm:$0xff] }
 0x2e0   :  { %v3573_v57 = vadd.f32 %v1562_v37, %v1450_v21  ;;  %1629 = vmatmul.f32.gmra.mxu1 %v2862_v33  ;;  %1742 = vmatmul.f32.gmra.mxu2 %v2863_v55  ;;  %v1565_v19 = vpop.f32.mrf.mxu0  ;;  %v2866_v21 = vld [vmem:[#allocation2 + $0x320] sm:$0xff]  ;;  %v2867_v33 = vld [vmem:[#allocation2 + $0x328] sm:$0xff] }
 0x2e2   :  { %1855 = vmatmul.f32.gmra.mxu3 %v2864_v10  ;;  %v2868_v10 = vld [vmem:[#allocation2 + $0x330] sm:$0xff] }
 0x2e3   :  { %v1339_v48 = vpop.f32.mrf.mxu2  ;;  %1968 = vmatmul.f32.gmra.mxu0 %v2865_v1  ;;  %v2869_v1 = vld [vmem:[#allocation2 + $0x338] sm:$0xff] }
 0x2e4   :  { %v3576_v45 = vadd.f32 %v1339_v48, %v1227_v34  ;;  %v2233_v34 = vld [vmem:[#allocation8 + $0xf0] sm:$0xff] }
 0x2e5   :  { %v1229_v56 = vpop.f32.mrf.mxu1  ;;  %v1452_v16 = vpop.f32.mrf.mxu3  ;;  %2353 = vmatpush.msra.mxu3 %v2233_v34 }
 0x2e6   :  { %3996 = vst [vmem:[#allocation34_spill] sm:$0xff] %v3576_v45  ;;  %v1453_v27 = vadd.f32 %v1452_v16, %v3385_v58  ;;  %v1230_v7 = vadd.f32 %v1229_v56, %v3379_v24  ;;  %v2870_v45 = vld [vmem:[#allocation2 + $0x358] sm:$0xff] }
 0x2e8   :  { %v3579_v37 = vadd.f32 %v1565_v19, %v1453_v27  ;;  %1632 = vmatmul.f32.gmra.mxu1 %v2866_v21  ;;  %1745 = vmatmul.f32.gmra.mxu2 %v2867_v33  ;;  %v1568_v55 = vpop.f32.mrf.mxu0 }
 0x2ea   :  { %1858 = vmatmul.f32.gmra.mxu3 %v2868_v10 }
 0x2eb   :  { %v1342_v48 = vpop.f32.mrf.mxu2  ;;  %1971 = vmatmul.f32.gmra.mxu0 %v2869_v1  ;;  %v2873_v1 = vld [vmem:[#allocation2 + $0x370] sm:$0xff] }
 0x2ec   :  { %v3582_v19 = vadd.f32 %v1342_v48, %v1230_v7 }
 0x2ed   :  { %v1232_v16 = vpop.f32.mrf.mxu1  ;;  %v1455_v27 = vpop.f32.mrf.mxu3 }
 0x2ee   :  { %3997 = vst [vmem:[#allocation35_spill] sm:$0xff] %v3582_v19  ;;  %v1456_v21 = vadd.f32 %v1455_v27, %v3385_v58  ;;  %v1233_v56 = vadd.f32 %v1232_v16, %v3382_v12  ;;  %v306_v19 = vld [vmem:[#allocation5 + $0x658] sm:$0xff]  ;;  %v2216_v12 = vld [vmem:[#allocation8 + $0x68] sm:$0xff] }
 0x2ef   :  { %2036 = vmatpush.msra.mxu1 %v306_v19  ;;  %2241 = vmatpush.msra.mxu2 %v2216_v12 }
 0x2f0   :  { %v3585_v33 = vadd.f32 %v1568_v55, %v1456_v21  ;;  %1635 = vmatmul.f32.gmra.mxu1 %v2870_v45  ;;  %1748 = vmatmul.f32.gmra.mxu2 %v2871_v39  ;;  %v1571_v24 = vpop.f32.mrf.mxu0  ;;  %v2874_v21 = vld [vmem:[#allocation2 + $0x390] sm:$0xff]  ;;  %v2875_v45 = vld [vmem:[#allocation2 + $0x398] sm:$0xff] }
 0x2f2   :  { %1861 = vmatmul.f32.gmra.mxu3 %v2872_v13  ;;  %v2876_v13 = vld [vmem:[#allocation2 + $0x3a0] sm:$0xff] }
 0x2f3   :  { %v1345_v10 = vpop.f32.mrf.mxu2  ;;  %1974 = vmatmul.f32.gmra.mxu0 %v2873_v1  ;;  %v2877_v1 = vld [vmem:[#allocation2 + $0x3a8] sm:$0xff] }
 0x2f4   :  { %v3588_v7 = vadd.f32 %v1345_v10, %v1233_v56  ;;  %v2232_v56 = vld [vmem:[#allocation8 + $0xe8] sm:$0xff] }
 0x2f5   :  { %v1458_v34 = vpop.f32.mrf.mxu3  ;;  %v1591_v48 = vpop.f32.mrf.mxu1  ;;  %2354 = vmatpush.msra.mxu3 %v2232_v56 }
 0x2f6   :  { %3998 = vst [vmem:[#allocation36_spill] sm:$0xff] %v3588_v7  ;;  %v1459_v27 = vadd.f32 %v1458_v34, %v3385_v58  ;;  %v1592_v16 = vadd.f32 %v1591_v48, %v3390_v49  ;;  %v2879_v7 = vld [vmem:[#allocation2 + $0x3d0] sm:$0xff]  ;;  %v2880_v48 = vld [vmem:[#allocation2 + $0x3d8] sm:$0xff] }
 0x2f8   :  { %v3591_v55 = vadd.f32 %v1571_v24, %v1459_v27  ;;  %1638 = vmatmul.f32.gmra.mxu1 %v2874_v21  ;;  %1751 = vmatmul.f32.gmra.mxu2 %v2875_v45  ;;  %v1930_v39 = vpop.f32.mrf.mxu0  ;;  %v2878_v45 = vld [vmem:[#allocation2 + $0x3c8] sm:$0xff] }
 0x2fa   :  { %3999 = vst [vmem:[#allocation37_spill] sm:$0xff] %v3591_v55  ;;  %1864 = vmatmul.f32.gmra.mxu3 %v2876_v13  ;;  %v2881_v13 = vld [vmem:[#allocation2 + $0x3e0] sm:$0xff] }
 0x2fb   :  { %v1704_v10 = vpop.f32.mrf.mxu2  ;;  %1977 = vmatmul.f32.gmra.mxu0 %v2877_v1 }
 0x2fc   :  { %v1705_v58 = vadd.f32 %v1704_v10, %v1592_v16 }
 0x2fd   :  { %v1594_v24 = vpop.f32.mrf.mxu1  ;;  %v1817_v34 = vpop.f32.mrf.mxu3 }
 0x2fe   :  { %v1818_v27 = vadd.f32 %v1817_v34, %v1705_v58  ;;  %v1595_v49 = vadd.f32 %v1594_v24, %v3396_v54  ;;  %v2883_v58 = vld [vmem:[#allocation2 + $0x408] sm:$0xff]  ;;  %v2884_v24 = vld [vmem:[#allocation2 + $0x410] sm:$0xff] }
 0x300   :  { %v3594_v21 = vadd.f32 %v1930_v39, %v1818_v27  ;;  %1641 = vmatmul.f32.gmra.mxu1 %v2878_v45  ;;  %1754 = vmatmul.f32.gmra.mxu2 %v2879_v7  ;;  %v1933_v19 = vpop.f32.mrf.mxu0  ;;  %v2882_v39 = vld [vmem:[#allocation2 + $0x400] sm:$0xff]  ;;  %v304_v7 = vld [vmem:[#allocation5 + $0x648] sm:$0xff] }
 0x301   :  { %v2215_v27 = vld [vmem:[#allocation8 + $0x60] sm:$0xff]  ;;  %2037 = vmatpush.msra.mxu1 %v304_v7 }
 0x302   :  { %1867 = vmatmul.f32.gmra.mxu3 %v2880_v48  ;;  %2242 = vmatpush.msra.mxu2 %v2215_v27  ;;  %v2231_v45 = vld [vmem:[#allocation8 + $0xe0] sm:$0xff]  ;;  %v2885_v48 = vld [vmem:[#allocation2 + $0x418] sm:$0xff]  ;;  %v2889_v27 = vld [vmem:[#allocation2 + $0x450] sm:$0xff] }
 0x303   :  { %v1707_v12 = vpop.f32.mrf.mxu2  ;;  %1980 = vmatmul.f32.gmra.mxu0 %v2881_v13  ;;  %2355 = vmatpush.msra.mxu3 %v2231_v45 }
 0x304   :  { %v1708_v1 = vadd.f32 %v1707_v12, %v1595_v49 }
 0x305   :  { %v1597_v56 = vpop.f32.mrf.mxu1  ;;  %v1820_v16 = vpop.f32.mrf.mxu3 }
 0x306   :  { %v1821_v10 = vadd.f32 %v1820_v16, %v1708_v1  ;;  %v1598_v54 = vadd.f32 %v1597_v56, %v3402_v23  ;;  %v2888_v56 = vld [vmem:[#allocation2 + $0x448] sm:$0xff] }
 0x308   :  { %v3597_v55 = vadd.f32 %v1933_v19, %v1821_v10  ;;  %1644 = vmatmul.f32.gmra.mxu1 %v2882_v39  ;;  %1757 = vmatmul.f32.gmra.mxu2 %v2883_v58  ;;  %v1936_v34 = vpop.f32.mrf.mxu0  ;;  %v2886_v10 = vld [vmem:[#allocation2 + $0x438] sm:$0xff]  ;;  %v2887_v39 = vld [vmem:[#allocation2 + $0x440] sm:$0xff] }
 0x30a   :  { %1870 = vmatmul.f32.gmra.mxu3 %v2884_v24 }
 0x30b   :  { %v1710_v49 = vpop.f32.mrf.mxu2  ;;  %1983 = vmatmul.f32.gmra.mxu0 %v2885_v48 }
 0x30c   :  { %v1711_v19 = vadd.f32 %v1710_v49, %v1598_v54 }
 0x30d   :  { %v1600_v12 = vpop.f32.mrf.mxu1  ;;  %v1823_v13 = vpop.f32.mrf.mxu3 }
 0x30e   :  { %v1824_v1 = vadd.f32 %v1823_v13, %v1711_v19  ;;  %v1601_v23 = vadd.f32 %v1600_v12, %v3408_v44  ;;  %v2891_v19 = vld [vmem:[#allocation2 + $0x478] sm:$0xff]  ;;  %v2892_v12 = vld [vmem:[#allocation2 + $0x480] sm:$0xff] }
 0x310   :  { %v3600_v16 = vadd.f32 %v1936_v34, %v1824_v1  ;;  %1647 = vmatmul.f32.gmra.mxu1 %v2886_v10  ;;  %1760 = vmatmul.f32.gmra.mxu2 %v2887_v39  ;;  %v1939_v58 = vpop.f32.mrf.mxu0  ;;  %v2890_v34 = vld [vmem:[#allocation2 + $0x470] sm:$0xff]  ;;  %v302_v1 = vld [vmem:[#allocation5 + $0x638] sm:$0xff] }
 0x311   :  { %v2214_v10 = vld [vmem:[#allocation8 + $0x58] sm:$0xff]  ;;  %2038 = vmatpush.msra.mxu1 %v302_v1 }
 0x312   :  { %1873 = vmatmul.f32.gmra.mxu3 %v2888_v56  ;;  %2243 = vmatpush.msra.mxu2 %v2214_v10  ;;  %v2230_v39 = vld [vmem:[#allocation8 + $0xd8] sm:$0xff]  ;;  %v2893_v56 = vld [vmem:[#allocation2 + $0x488] sm:$0xff] }
 0x313   :  { %v1713_v7 = vpop.f32.mrf.mxu2  ;;  %1986 = vmatmul.f32.gmra.mxu0 %v2889_v27  ;;  %2356 = vmatpush.msra.mxu3 %v2230_v39  ;;  %v2897_v10 = vld [vmem:[#allocation2 + $0x4c0] sm:$0xff] }
 0x314   :  { %v1714_v24 = vadd.f32 %v1713_v7, %v1601_v23 }
 0x315   :  { %v1603_v45 = vpop.f32.mrf.mxu1  ;;  %v1826_v54 = vpop.f32.mrf.mxu3 }
 0x316   :  { %v1827_v49 = vadd.f32 %v1826_v54, %v1714_v24  ;;  %v1604_v44 = vadd.f32 %v1603_v45, %v3414_v61  ;;  %v2896_v45 = vld [vmem:[#allocation2 + $0x4b8] sm:$0xff] }
 0x318   :  { %v3603_v48 = vadd.f32 %v1939_v58, %v1827_v49  ;;  %1650 = vmatmul.f32.gmra.mxu1 %v2890_v34  ;;  %1763 = vmatmul.f32.gmra.mxu2 %v2891_v19  ;;  %v1942_v13 = vpop.f32.mrf.mxu0  ;;  %v2894_v49 = vld [vmem:[#allocation2 + $0x4a8] sm:$0xff]  ;;  %v2895_v34 = vld [vmem:[#allocation2 + $0x4b0] sm:$0xff] }
 0x31a   :  { %1876 = vmatmul.f32.gmra.mxu3 %v2892_v12 }
 0x31b   :  { %v1716_v23 = vpop.f32.mrf.mxu2  ;;  %1989 = vmatmul.f32.gmra.mxu0 %v2893_v56 }
 0x31c   :  { %v1717_v58 = vadd.f32 %v1716_v23, %v1604_v44 }
 0x31d   :  { %v1606_v7 = vpop.f32.mrf.mxu1  ;;  %v1829_v27 = vpop.f32.mrf.mxu3 }
 0x31e   :  { %v1830_v24 = vadd.f32 %v1829_v27, %v1717_v58  ;;  %v1607_v61 = vadd.f32 %v1606_v7, %v3420_v63  ;;  %v2899_v58 = vld [vmem:[#allocation2 + $0x4e8] sm:$0xff]  ;;  %v2900_v7 = vld [vmem:[#allocation2 + $0x4f0] sm:$0xff] }
 0x31f   :  { %v300_v27 = vld [vmem:[#allocation5 + $0x628] sm:$0xff] }
 0x320   :  { %v3606_v54 = vadd.f32 %v1942_v13, %v1830_v24  ;;  %1653 = vmatmul.f32.gmra.mxu1 %v2894_v49  ;;  %1766 = vmatmul.f32.gmra.mxu2 %v2895_v34  ;;  %v1945_v19 = vpop.f32.mrf.mxu0  ;;  %v2898_v13 = vld [vmem:[#allocation2 + $0x4e0] sm:$0xff]  ;;  %v2213_v24 = vld [vmem:[#allocation8 + $0x50] sm:$0xff] }
 0x321   :  { %2039 = vmatpush.msra.mxu1 %v300_v27  ;;  %2244 = vmatpush.msra.mxu2 %v2213_v24  ;;  %v2229_v34 = vld [vmem:[#allocation8 + $0xd0] sm:$0xff] }
 0x322   :  { %1879 = vmatmul.f32.gmra.mxu3 %v2896_v45  ;;  %v2901_v45 = vld [vmem:[#allocation2 + $0x4f8] sm:$0xff]  ;;  %v2905_v27 = vld [vmem:[#allocation2 + $0x530] sm:$0xff] }
 0x323   :  { %v1719_v1 = vpop.f32.mrf.mxu2  ;;  %1992 = vmatmul.f32.gmra.mxu0 %v2897_v10  ;;  %2357 = vmatpush.msra.mxu3 %v2229_v34 }
 0x324   :  { %v1720_v12 = vadd.f32 %v1719_v1, %v1607_v61 }
 0x325   :  { %v1609_v39 = vpop.f32.mrf.mxu1  ;;  %v1832_v44 = vpop.f32.mrf.mxu3 }
 0x326   :  { %v1833_v23 = vadd.f32 %v1832_v44, %v1720_v12  ;;  %v1610_v63 = vadd.f32 %v1609_v39, %v3426_v43  ;;  %v2904_v39 = vld [vmem:[#allocation2 + $0x528] sm:$0xff] }
 0x328   :  { %v3609_v56 = vadd.f32 %v1945_v19, %v1833_v23  ;;  %1656 = vmatmul.f32.gmra.mxu1 %v2898_v13  ;;  %1769 = vmatmul.f32.gmra.mxu2 %v2899_v58  ;;  %v1948_v49 = vpop.f32.mrf.mxu0  ;;  %v2902_v23 = vld [vmem:[#allocation2 + $0x518] sm:$0xff]  ;;  %v2903_v13 = vld [vmem:[#allocation2 + $0x520] sm:$0xff] }
 0x32a   :  { %1882 = vmatmul.f32.gmra.mxu3 %v2900_v7 }
 0x32b   :  { %v1722_v61 = vpop.f32.mrf.mxu2  ;;  %1995 = vmatmul.f32.gmra.mxu0 %v2901_v45 }
 0x32c   :  { %v1723_v19 = vadd.f32 %v1722_v61, %v1610_v63 }
 0x32d   :  { %v1612_v1 = vpop.f32.mrf.mxu1  ;;  %v1835_v10 = vpop.f32.mrf.mxu3 }
 0x32e   :  { %v1836_v12 = vadd.f32 %v1835_v10, %v1723_v19  ;;  %v1613_v43 = vadd.f32 %v1612_v1, %v3432_v51  ;;  %v2907_v19 = vld [vmem:[#allocation2 + $0x558] sm:$0xff]  ;;  %v2908_v1 = vld [vmem:[#allocation2 + $0x560] sm:$0xff] }
 0x32f   :  { %v298_v10 = vld [vmem:[#allocation5 + $0x618] sm:$0xff] }
 0x330   :  { %v3612_v44 = vadd.f32 %v1948_v49, %v1836_v12  ;;  %1659 = vmatmul.f32.gmra.mxu1 %v2902_v23  ;;  %1772 = vmatmul.f32.gmra.mxu2 %v2903_v13  ;;  %v1951_v7 = vpop.f32.mrf.mxu0  ;;  %v2906_v49 = vld [vmem:[#allocation2 + $0x550] sm:$0xff] }
 0x331   :  { %v2212_v12 = vld [vmem:[#allocation8 + $0x48] sm:$0xff]  ;;  %2040 = vmatpush.msra.mxu1 %v298_v10  ;;  %v2914_v10 = vld [vmem:[#allocation2 + $0x5c0] sm:$0xff] }
 0x332   :  { %1885 = vmatmul.f32.gmra.mxu3 %v2904_v39  ;;  %2245 = vmatpush.msra.mxu2 %v2212_v12  ;;  %v2228_v23 = vld [vmem:[#allocation8 + $0xc8] sm:$0xff] }
 0x333   :  { %v1725_v58 = vpop.f32.mrf.mxu2  ;;  %1998 = vmatmul.f32.gmra.mxu0 %v2905_v27  ;;  %2358 = vmatpush.msra.mxu3 %v2228_v23  ;;  %v2910_v27 = vld [vmem:[#allocation2 + $0x588] sm:$0xff]  ;;  %v2916_v23 = vld [vmem:[#allocation2 + $0x5d0] sm:$0xff] }
 0x334   :  { %v1726_v24 = vadd.f32 %v1725_v58, %v1613_v43  ;;  %v2909_v43 = vld [vmem:[#allocation2 + $0x568] sm:$0xff] }
 0x335   :  { %v1615_v34 = vpop.f32.mrf.mxu1  ;;  %v1838_v63 = vpop.f32.mrf.mxu3  ;;  %v2915_v12 = vld [vmem:[#allocation2 + $0x5c8] sm:$0xff] }
 0x336   :  { %v1839_v61 = vadd.f32 %v1838_v63, %v1726_v24  ;;  %v1616_v51 = vadd.f32 %v1615_v34, %v3438_v15  ;;  %v2911_v24 = vld [vmem:[#allocation2 + $0x590] sm:$0xff]  ;;  %v2912_v63 = vld [vmem:[#allocation2 + $0x598] sm:$0xff]  ;;  %v2913_v15 = vld [vmem:[#allocation2 + $0x5a0] sm:$0xff] }
 0x338   :  { %v3615_v45 = vadd.f32 %v1951_v7, %v1839_v61  ;;  %1662 = vmatmul.f32.gmra.mxu1 %v2906_v49  ;;  %1775 = vmatmul.f32.gmra.mxu2 %v2907_v19  ;;  %v2211_v19 = vld [vmem:[#allocation8 + $0x40] sm:$0xff] }
 0x339   :  { %2246 = vmatpush.msra.mxu2 %v2211_v19  ;;  %v2919_v19 = vld [vmem:[#allocation2 + $0x600] sm:$0xff] }
 0x33a   :  { %1888 = vmatmul.f32.gmra.mxu3 %v2908_v1  ;;  %v2210_v1 = vld [vmem:[#allocation8 + $0x38] sm:$0xff] }
 0x33b   :  { %v1728_v13 = vpop.f32.mrf.mxu2  ;;  %2001 = vmatmul.f32.gmra.mxu0 %v2909_v43  ;;  %2247 = vmatpush.msra.mxu2 %v2210_v1  ;;  %v2209_v43 = vld [vmem:[#allocation8 + $0x30] sm:$0xff] }
 0x33c   :  { %v3618_v39 = vadd.f32 %v1728_v13, %v1616_v51  ;;  %v296_v51 = vld [vmem:[#allocation5 + $0x608] sm:$0xff] }
 0x33d   :  { %v1618_v58 = vpop.f32.mrf.mxu1  ;;  %2041 = vmatpush.msra.mxu1 %v296_v51  ;;  %v2227_v13 = vld [vmem:[#allocation8 + $0xc0] sm:$0xff]  ;;  %2248 = vmatpush.msra.mxu2 %v2209_v43  ;;  %v2921_v43 = vld [vmem:[#allocation2 + $0x630] sm:$0xff] }
 0x33e   :  { %v1619_v7 = vadd.f32 %v1618_v58, %v3444_v36  ;;  %2359 = vmatpush.msra.mxu3 %v2227_v13  ;;  %v2203_v13 = vld [vmem:[#allocation8] sm:$0xff] }
 0x340   :  { %1665 = vmatmul.f32.gmra.mxu1 %v2910_v27  ;;  %1778 = vmatmul.f32.gmra.mxu2 %v2911_v24  ;;  %v2917_v27 = vld [vmem:[#allocation2 + $0x5d8] sm:$0xff] }
 0x342   :  { %1891 = vmatmul.f32.gmra.mxu3 %v2912_v63 }
 0x343   :  { %v1731_v61 = vpop.f32.mrf.mxu2  ;;  %2004 = vmatmul.f32.gmra.mxu0 %v2913_v15  ;;  %v2918_v15 = vld [vmem:[#allocation2 + $0x5f8] sm:$0xff] }
 0x344   :  { %v3621_v34 = vadd.f32 %v1731_v61, %v1619_v7  ;;  %v2208_v7 = vld [vmem:[#allocation8 + $0x28] sm:$0xff]  ;;  %v2207_v61 = vld [vmem:[#allocation8 + $0x20] sm:$0xff] }
 0x345   :  { %v1621_v49 = vpop.f32.mrf.mxu1  ;;  %2249 = vmatpush.msra.mxu2 %v2208_v7  ;;  %v2923_v7 = vld [vmem:[#allocation2 + $0x640] sm:$0xff] }
 0x346   :  { %v1622_v36 = vadd.f32 %v1621_v49, %v3452_v17  ;;  %v2206_v17 = vld [vmem:[#allocation8 + $0x18] sm:$0xff] }
 0x347   :  { %2250 = vmatpush.msra.mxu2 %v2207_v61 }
 0x348   :  { %1668 = vmatmul.f32.gmra.mxu1 %v2914_v10  ;;  %1781 = vmatmul.f32.gmra.mxu2 %v2915_v12  ;;  %v2920_v10 = vld [vmem:[#allocation2 + $0x608] sm:$0xff]  ;;  %v2205_v12 = vld [vmem:[#allocation8 + $0x10] sm:$0xff] }
 0x349   :  { %2251 = vmatpush.msra.mxu2 %v2206_v17  ;;  %v2512_v17 = vld [vmem:[#allocation10 + $0x78] sm:$0xff] }
 0x34a   :  { %1894 = vmatmul.f32.gmra.mxu3 %v2916_v23  ;;  %2517 = vmatpush.msra.mxu0 %v2512_v17  ;;  %v2933_v17 = vld [vmem:[#allocation2 + $0x30] sm:$0xff] }
 0x34b   :  { %v1734_v58 = vpop.f32.mrf.mxu2  ;;  %2007 = vmatmul.f32.gmra.mxu0 %v2917_v27  ;;  %2252 = vmatpush.msra.mxu2 %v2205_v12  ;;  %v2226_v27 = vld [vmem:[#allocation8 + $0xb8] sm:$0xff] }
 0x34c   :  { %v3624_v24 = vadd.f32 %v1734_v58, %v1622_v36  ;;  %v2204_v36 = vld [vmem:[#allocation8 + $0x8] sm:$0xff]  ;;  %v2922_v58 = vld [vmem:[#allocation2 + $0x638] sm:$0xff]  ;;  %2360 = vmatpush.msra.mxu3 %v2226_v27 }
 0x34d   :  { %v1624_v63 = vpop.f32.mrf.mxu1  ;;  %2253 = vmatpush.msra.mxu2 %v2204_v36  ;;  %v2928_v36 = vld [vmem:[#allocation2 + $0x6a8] sm:$0xff] }
 0x34e   :  { %v1625_v49 = vadd.f32 %v1624_v63, %v3461_v59 }
 0x34f   :  { %2254 = vmatpush.msra.mxu2 %v2203_v13 }
 0x350   :  { %1671 = vmatmul.f32.gmra.mxu1 %v2918_v15  ;;  %1784 = vmatmul.f32.gmra.mxu2 %v2919_v19  ;;  %v2924_v15 = vld [vmem:[#allocation2 + $0x668] sm:$0xff]  ;;  %v2925_v19 = vld [vmem:[#allocation2 + $0x670] sm:$0xff] }
 0x352   :  { %1897 = vmatmul.f32.gmra.mxu3 %v2920_v10  ;;  %v2926_v10 = vld [vmem:[#allocation2 + $0x678] sm:$0xff] }
 0x353   :  { %v1737_v51 = vpop.f32.mrf.mxu2  ;;  %2010 = vmatmul.f32.gmra.mxu0 %v3449_v47 }
 0x354   :  { %v3628_v1 = vadd.f32 %v1737_v51, %v1625_v49 }
 0x355   :  { %v1627_v23 = vpop.f32.mrf.mxu1 }
 0x356   :  { %v1628_v59 = vadd.f32 %v1627_v23, %v3470_v9  ;;  %v2225_v23 = vld [vmem:[#allocation8 + $0xb0] sm:$0xff] }
 0x357   :  { %2361 = vmatpush.msra.mxu3 %v2225_v23 }
 0x358   :  { %1674 = vmatmul.f32.gmra.mxu1 %v2921_v43  ;;  %1787 = vmatmul.f32.gmra.mxu2 %v2922_v58  ;;  %v2929_v43 = vld [vmem:[#allocation2 + $0x6b0] sm:$0xff] }
 0x35a   :  { %1900 = vmatmul.f32.gmra.mxu3 %v2923_v7  ;;  %v2511_v7 = vld [vmem:[#allocation10 + $0x70] sm:$0xff] }
 0x35b   :  { %v1740_v47 = vpop.f32.mrf.mxu2  ;;  %2013 = vmatmul.f32.gmra.mxu0 %v3458_v18  ;;  %v2927_v18 = vld [vmem:[#allocation2 + $0x6a0] sm:$0xff] }
 0x35c   :  { %v3632_v63 = vadd.f32 %v1740_v47, %v1628_v59  ;;  %v2931_v59 = vld [vmem:[#allocation2 + $0x6e0] sm:$0xff]  ;;  %2518 = vmatpush.msra.mxu0 %v2511_v7 }
 0x35d   :  { %v1630_v61 = vpop.f32.mrf.mxu1 }
 0x35e   :  { %v1631_v49 = vadd.f32 %v1630_v61, %v3479_v25  ;;  %v2932_v61 = vld [vmem:[#allocation2 + $0x6e8] sm:$0xff] }
 0x360   :  { %1677 = vmatmul.f32.gmra.mxu1 %v2924_v15  ;;  %1790 = vmatmul.f32.gmra.mxu2 %v2925_v19 }
 0x362   :  { %1903 = vmatmul.f32.gmra.mxu3 %v2926_v10 }
 0x363   :  { %v1743_v12 = vpop.f32.mrf.mxu2  ;;  %2016 = vmatmul.f32.gmra.mxu0 %v3467_v28  ;;  %v2930_v28 = vld [vmem:[#allocation2 + $0x6d8] sm:$0xff] }
 0x364   :  { %v3636_v9 = vadd.f32 %v1743_v12, %v1631_v49  ;;  %v2224_v49 = vld [vmem:[#allocation8 + $0xa8] sm:$0xff] }
 0x365   :  { %v1633_v51 = vpop.f32.mrf.mxu1  ;;  %2362 = vmatpush.msra.mxu3 %v2224_v49  ;;  %v2937_v49 = vld [vmem:[#allocation2 + $0x110] sm:$0xff] }
 0x366   :  { %v1634_v13 = vadd.f32 %v1633_v51, %v3488_v38 }
 0x368   :  { %1680 = vmatmul.f32.gmra.mxu1 %v2927_v18  ;;  %1793 = vmatmul.f32.gmra.mxu2 %v2928_v36  ;;  %v2141_v18 = vmax.f32 %v3393_v20, 0.0  ;;  %v2934_v36 = vld [vmem:[#allocation2 + $0x68] sm:$0xff] }
 0x36a   :  { %1906 = vmatmul.f32.gmra.mxu3 %v2929_v43 }
 0x36b   :  { %v1746_v58 = vpop.f32.mrf.mxu2  ;;  %2019 = vmatmul.f32.gmra.mxu0 %v3476_v52  ;;  %v2139_v52 = vmax.f32 %v3387_v29, 0.0 }
 0x36c   :  { %v3640_v25 = vadd.f32 %v1746_v58, %v1634_v13  ;;  %v2143_v58 = vmax.f32 %v3399_v5, 0.0 }
 0x36d   :  { %v1636_v27 = vpop.f32.mrf.mxu1 }
 0x36e   :  { %v1637_v47 = vadd.f32 %v1636_v27, %v3495_v42  ;;  %v2223_v27 = vld [vmem:[#allocation8 + $0xa0] sm:$0xff] }
 0x36f   :  { %2363 = vmatpush.msra.mxu3 %v2223_v27  ;;  %v2939_v27 = vld [vmem:[#allocation2 + $0x180] sm:$0xff] }
 0x370   :  { %1683 = vmatmul.f32.gmra.mxu1 %v2930_v28  ;;  %1796 = vmatmul.f32.gmra.mxu2 %v2931_v59 }
 0x372   :  { %1909 = vmatmul.f32.gmra.mxu3 %v2932_v61  ;;  %v2936_v61 = vld [vmem:[#allocation2 + $0xd8] sm:$0xff] }
 0x373   :  { %v1749_v15 = vpop.f32.mrf.mxu2  ;;  %2022 = vmatmul.f32.gmra.mxu0 %v3485_v32  ;;  %v2510_v32 = vld [vmem:[#allocation10 + $0x68] sm:$0xff] }
 0x374   :  { %v3644_v38 = vadd.f32 %v1749_v15, %v1637_v47  ;;  %2519 = vmatpush.msra.mxu0 %v2510_v32  ;;  %v2145_v47 = vmax.f32 %v3405_v35, 0.0  ;;  %v2509_v15 = vld [vmem:[#allocation10 + $0x60] sm:$0xff] }
 0x375   :  { %v1639_v19 = vpop.f32.mrf.mxu1  ;;  %v2938_v32 = vld [vmem:[#allocation2 + $0x148] sm:$0xff] }
 0x376   :  { %v1640_v10 = vadd.f32 %v1639_v19, %v3501_v26  ;;  %v2935_v26 = vld [vmem:[#allocation2 + $0xa0] sm:$0xff]  ;;  %2520 = vmatpush.msra.mxu0 %v2509_v15  ;;  %v2940_v15 = vld [vmem:[#allocation2 + $0x1b8] sm:$0xff] }
 0x378   :  { %2042 = vmatmul.f32.vlgmr.msra.gmra.mxu1 %v2933_v17  ;;  %2255 = vmatmul.f32.vlgmr.msra.gmra.mxu2 %v2139_v52 }
 0x37b   :  { %v1752_v12 = vpop.f32.mrf.mxu2 }
 0x37c   :  { %v3648_v51 = vadd.f32 %v1752_v12, %v1640_v10  ;;  %v2222_v10 = vld [vmem:[#allocation8 + $0x98] sm:$0xff] }
 0x37d   :  { %v1642_v42 = vpop.f32.mrf.mxu1  ;;  %2364 = vmatpush.msra.mxu3 %v2222_v10  ;;  %v2941_v10 = vld [vmem:[#allocation2 + $0x1f0] sm:$0xff] }
 0x37e   :  { %v1643_v29 = vadd.f32 %v1642_v42, %v3507_v31  ;;  %v3659_v31 = vpop.f32.mrf.mxu3 }
 0x380   :  { %2045 = vmatmul.f32.gmra.mxu1 %v2934_v36  ;;  %2258 = vmatmul.f32.gmra.mxu2 %v2141_v18 }
 0x383   :  { %v1755_v23 = vpop.f32.mrf.mxu2 }
 0x384   :  { %v3652_v13 = vadd.f32 %v1755_v23, %v1643_v29  ;;  %v2508_v29 = vld [vmem:[#allocation10 + $0x58] sm:$0xff] }
 0x385   :  { %v1645_v43 = vpop.f32.mrf.mxu1  ;;  %2521 = vmatpush.msra.mxu0 %v2508_v29  ;;  %v2506_v29 = vld [vmem:[#allocation10 + $0x48] sm:$0xff] }
 0x386   :  { %v1646_v20 = vadd.f32 %v1645_v43, %v3513_v2  ;;  %v2147_v2 = vmax.f32 %v3411_v60, 0.0  ;;  %v3665_v35 = vpop.f32.mrf.mxu3 }
 0x388   :  { %2048 = vmatmul.f32.gmra.mxu1 %v2935_v26  ;;  %2261 = vmatmul.f32.gmra.mxu2 %v2143_v58 }
 0x38b   :  { %v1758_v28 = vpop.f32.mrf.mxu2 }
 0x38c   :  { %v3656_v59 = vadd.f32 %v1758_v28, %v1646_v20  ;;  %v2221_v20 = vld [vmem:[#allocation8 + $0x90] sm:$0xff] }
 0x38d   :  { %v1648_v7 = vpop.f32.mrf.mxu1  ;;  %2365 = vmatpush.msra.mxu3 %v2221_v20  ;;  %v2219_v20 = vld [vmem:[#allocation8 + $0x80] sm:$0xff] }
 0x38e   :  { %v1649_v5 = vadd.f32 %v1648_v7, %v3519_v3  ;;  %v2149_v3 = vmax.f32 %v3417_v8, 0.0  ;;  %v3672_v23 = vpop.f32.mrf.mxu3 }
 0x390   :  { %2051 = vmatmul.f32.gmra.mxu1 %v2936_v61  ;;  %2264 = vmatmul.f32.gmra.mxu2 %v2145_v47  ;;  %v2153_v61 = vmax.f32 %v3429_v6, 0.0 }
 0x393   :  { %v1761_v19 = vpop.f32.mrf.mxu2 }
 0x394   :  { %v3662_v52 = vadd.f32 %v1761_v19, %v1649_v5  ;;  %v2507_v5 = vld [vmem:[#allocation10 + $0x50] sm:$0xff] }
 0x395   :  { %v1651_v17 = vpop.f32.mrf.mxu1  ;;  %2522 = vmatpush.msra.mxu0 %v2507_v5  ;;  %v2944_v5 = vld [vmem:[#allocation2 + $0x298] sm:$0xff] }
 0x396   :  { %v1652_v12 = vadd.f32 %v1651_v17, %v3525_v50  ;;  %v2151_v50 = vmax.f32 %v3423_v62, 0.0  ;;  %v3680_v47 = vpop.f32.mrf.mxu3 }
 0x397   :  { %2523 = vmatpush.msra.mxu0 %v2506_v29  ;;  %v4002_v29 = vld [vmem:[#allocation18_spill] sm:$0xff] }
 0x398   :  { %2054 = vmatmul.f32.gmra.mxu1 %v2937_v49  ;;  %2267 = vmatmul.f32.gmra.mxu2 %v2147_v2 }
 0x39b   :  { %v1764_v42 = vpop.f32.mrf.mxu2 }
 0x39c   :  { %v3668_v18 = vadd.f32 %v1764_v42, %v1652_v12  ;;  %v2220_v12 = vld [vmem:[#allocation8 + $0x88] sm:$0xff] }
 0x39d   :  { %v1654_v36 = vpop.f32.mrf.mxu1  ;;  %2366 = vmatpush.msra.mxu3 %v2220_v12 }
 0x39e   :  { %v1655_v60 = vadd.f32 %v1654_v36, %v3531_v41  ;;  %v3687_v49 = vpop.f32.mrf.mxu3 }
 0x39f   :  { %2367 = vmatpush.msra.mxu3 %v2219_v20 }
 0x3a0   :  { %2057 = vmatmul.f32.gmra.mxu1 %v2938_v32  ;;  %2270 = vmatmul.f32.gmra.mxu2 %v2149_v3  ;;  %v2942_v32 = vld [vmem:[#allocation2 + $0x228] sm:$0xff] }
 0x3a3   :  { %v1767_v43 = vpop.f32.mrf.mxu2 }
 0x3a4   :  { %v3674_v58 = vadd.f32 %v1767_v43, %v1655_v60 }
 0x3a5   :  { %v1657_v26 = vpop.f32.mrf.mxu1 }
 0x3a6   :  { %v1658_v8 = vadd.f32 %v1657_v26, %v3537_v11  ;;  %v2155_v11 = vmax.f32 %v3435_v46, 0.0  ;;  %v3693_v46 = vpop.f32.mrf.mxu3 }
 0x3a8   :  { %2060 = vmatmul.f32.gmra.mxu1 %v2939_v27  ;;  %2273 = vmatmul.f32.gmra.mxu2 %v2151_v50  ;;  %v2943_v27 = vld [vmem:[#allocation2 + $0x260] sm:$0xff] }
 0x3ab   :  { %v1770_v28 = vpop.f32.mrf.mxu2 }
 0x3ac   :  { %v3678_v7 = vadd.f32 %v1770_v28, %v1658_v8 }
 0x3ad   :  { %v1660_v41 = vpop.f32.mrf.mxu1 }
 0x3ae   :  { %v1661_v62 = vadd.f32 %v1660_v41, %v3543_v30  ;;  %v2157_v30 = vmax.f32 %v3441_v4, 0.0  ;;  %v3700_v8 = vpop.f32.mrf.mxu3 }
 0x3b0   :  { %2063 = vmatmul.f32.gmra.mxu1 %v2940_v15  ;;  %2276 = vmatmul.f32.gmra.mxu2 %v2153_v61 }
 0x3b3   :  { %v1773_v19 = vpop.f32.mrf.mxu2 }
 0x3b4   :  { %v3684_v17 = vadd.f32 %v1773_v19, %v1661_v62  ;;  %v2505_v62 = vld [vmem:[#allocation10 + $0x40] sm:$0xff] }
 0x3b5   :  { %v1663_v2 = vpop.f32.mrf.mxu1  ;;  %2524 = vmatpush.msra.mxu0 %v2505_v62 }
 0x3b6   :  { %v1664_v6 = vadd.f32 %v1663_v2, %v3549_v22  ;;  %v2159_v22 = vmax.f32 %v3447_v0, 0.0 }
 0x3b8   :  { %2066 = vmatmul.f32.gmra.mxu1 %v2941_v10  ;;  %2279 = vmatmul.f32.gmra.mxu2 %v2155_v11  ;;  %v3708_v11 = vpop.f32.mrf.mxu3  ;;  %v4001_v10 = vld [vmem:[#allocation17_spill] sm:$0xff] }
 0x3b9   :  { %v2163_v12 = vmax.f32 %v4001_v10, 0.0  ;;  %v4005_v10 = vld [vmem:[#allocation37_spill] sm:$0xff] }
 0x3bb   :  { %v1776_v42 = vpop.f32.mrf.mxu2 }
 0x3bc   :  { %v3690_v36 = vadd.f32 %v1776_v42, %v1664_v6  ;;  %v2945_v6 = vld [vmem:[#allocation2 + $0x2d0] sm:$0xff] }
 0x3bd   :  { %v1666_v3 = vpop.f32.mrf.mxu1 }
 0x3be   :  { %v1667_v60 = vadd.f32 %v1666_v3, %v3555_v14  ;;  %v4000_v14 = vld [vmem:[#allocation16_spill] sm:$0xff] }
 0x3bf   :  { %v2161_v15 = vmax.f32 %v4000_v14, 0.0 }
 0x3c0   :  { %2069 = vmatmul.f32.gmra.mxu1 %v2942_v32  ;;  %2282 = vmatmul.f32.gmra.mxu2 %v2157_v30 }
 0x3c3   :  { %v1779_v43 = vpop.f32.mrf.mxu2 }
 0x3c4   :  { %v3696_v26 = vadd.f32 %v1779_v43, %v1667_v60  ;;  %v2165_v60 = vmax.f32 %v4002_v29, 0.0  ;;  %v2946_v43 = vld [vmem:[#allocation2 + $0x308] sm:$0xff] }
 0x3c5   :  { %v1669_v50 = vpop.f32.mrf.mxu1 }
 0x3c6   :  { %v1670_v4 = vadd.f32 %v1669_v50, %v3561_v40 }
 0x3c8   :  { %2072 = vmatmul.f32.gmra.mxu1 %v2943_v27  ;;  %2285 = vmatmul.f32.gmra.mxu2 %v2159_v22  ;;  %v2504_v22 = vld [vmem:[#allocation10 + $0x38] sm:$0xff] }
 0x3c9   :  { %2525 = vmatpush.msra.mxu0 %v2504_v22  ;;  %v2949_v22 = vld [vmem:[#allocation2 + $0x3b0] sm:$0xff] }
 0x3cb   :  { %v1782_v28 = vpop.f32.mrf.mxu2 }
 0x3cc   :  { %v3702_v41 = vadd.f32 %v1782_v28, %v1670_v4 }
 0x3cd   :  { %v1672_v61 = vpop.f32.mrf.mxu1 }
 0x3ce   :  { %v1673_v0 = vadd.f32 %v1672_v61, %v3567_v53  ;;  %v3715_v53 = vpop.f32.mrf.mxu3  ;;  %v2947_v61 = vld [vmem:[#allocation2 + $0x340] sm:$0xff] }
 0x3d0   :  { %2075 = vmatmul.f32.gmra.mxu1 %v2944_v5  ;;  %2288 = vmatmul.f32.gmra.mxu2 %v2161_v15 }
 0x3d3   :  { %v1785_v19 = vpop.f32.mrf.mxu2 }
 0x3d4   :  { %v3706_v2 = vadd.f32 %v1785_v19, %v1673_v0 }
 0x3d5   :  { %v1675_v40 = vpop.f32.mrf.mxu1 }
 0x3d6   :  { %v1676_v42 = vadd.f32 %v1675_v40, %v3573_v57  ;;  %v4003_v57 = vld [vmem:[#allocation19_spill] sm:$0xff]  ;;  %v3721_v14 = vpop.f32.mrf.mxu3 }
 0x3d7   :  { %v2167_v28 = vmax.f32 %v4003_v57, 0.0  ;;  %v2948_v40 = vld [vmem:[#allocation2 + $0x378] sm:$0xff] }
 0x3d8   :  { %2078 = vmatmul.f32.gmra.mxu1 %v2945_v6  ;;  %2291 = vmatmul.f32.gmra.mxu2 %v2163_v12  ;;  %v2503_v6 = vld [vmem:[#allocation10 + $0x30] sm:$0xff] }
 0x3d9   :  { %2526 = vmatpush.msra.mxu0 %v2503_v6  ;;  %v4007_v57 = vld [vmem:[#allocation22_spill] sm:$0xff] }
 0x3db   :  { %v1788_v3 = vpop.f32.mrf.mxu2 }
 0x3dc   :  { %v3712_v30 = vadd.f32 %v1788_v3, %v1676_v42 }
 0x3dd   :  { %v1678_v32 = vpop.f32.mrf.mxu1 }
 0x3de   :  { %v1679_v50 = vadd.f32 %v1678_v32, %v3579_v37  ;;  %v4004_v37 = vld [vmem:[#allocation20_spill] sm:$0xff]  ;;  %v3728_v42 = vpop.f32.mrf.mxu3 }
 0x3df   :  { %v2169_v19 = vmax.f32 %v4004_v37, 0.0 }
 0x3e0   :  { %2081 = vmatmul.f32.gmra.mxu1 %v2946_v43  ;;  %2294 = vmatmul.f32.gmra.mxu2 %v2165_v60 }
 0x3e3   :  { %v1791_v27 = vpop.f32.mrf.mxu2 }
 0x3e4   :  { %v3718_v20 = vadd.f32 %v1791_v27, %v1679_v50 }
 0x3e5   :  { %v1681_v4 = vpop.f32.mrf.mxu1 }
 0x3e6   :  { %v1682_v15 = vadd.f32 %v1681_v4, %v3585_v33  ;;  %v4006_v33 = vld [vmem:[#allocation21_spill] sm:$0xff]  ;;  %v3734_v27 = vpop.f32.mrf.mxu3 }
 0x3e7   :  { %v2171_v60 = vmax.f32 %v4006_v33, 0.0  ;;  %v4009_v33 = vld [vmem:[#allocation24_spill] sm:$0xff] }
 0x3e8   :  { %2084 = vmatmul.f32.gmra.mxu1 %v2947_v61  ;;  %2297 = vmatmul.f32.gmra.mxu2 %v2167_v28  ;;  %v2173_v28 = vmax.f32 %v4007_v57, 0.0 }
 0x3eb   :  { %v1794_v5 = vpop.f32.mrf.mxu2 }
 0x3ec   :  { %v3724_v62 = vadd.f32 %v1794_v5, %v1682_v15  ;;  %v2950_v5 = vld [vmem:[#allocation2 + $0x3e8] sm:$0xff] }
 0x3ed   :  { %v1684_v0 = vpop.f32.mrf.mxu1 }
 0x3ee   :  { %v1685_v12 = vadd.f32 %v1684_v0, %v4005_v10  ;;  %v3738_v0 = vpop.f32.mrf.mxu0 }
 0x3f0   :  { %2087 = vmatmul.f32.gmra.mxu1 %v2948_v40  ;;  %2300 = vmatmul.f32.gmra.mxu2 %v2169_v19  ;;  %v4008_v19 = vld [vmem:[#allocation23_spill] sm:$0xff] }
 0x3f1   :  { %v2175_v40 = vmax.f32 %v4008_v19, 0.0 }
 0x3f3   :  { %v1797_v3 = vpop.f32.mrf.mxu2 }
 0x3f4   :  { %v3730_v32 = vadd.f32 %v1797_v3, %v1685_v12  ;;  %v3742_v12 = vpop.f32.mrf.mxu3  ;;  %v2951_v3 = vld [vmem:[#allocation2 + $0x420] sm:$0xff] }
 0x3f5   :  { %v2043_v29 = vpop.f32.mrf.mxu1 }
 0x3f6   :  { %v2044_v43 = vadd.f32 %v2043_v29, %v3594_v21  ;;  %v2502_v21 = vld [vmem:[#allocation10 + $0x28] sm:$0xff] }
 0x3f7   :  { %2527 = vmatpush.msra.mxu0 %v2502_v21 }
 0x3f8   :  { %v2140_v50 = vmax.f32 %v2044_v43, 0.0  ;;  %2090 = vmatmul.f32.gmra.mxu1 %v2949_v22  ;;  %2303 = vmatmul.f32.gmra.mxu2 %v2171_v60  ;;  %v2177_v60 = vmax.f32 %v4009_v33, 0.0  ;;  %v2952_v22 = vld [vmem:[#allocation2 + $0x458] sm:$0xff]  ;;  %v2954_v33 = vld [vmem:[#allocation2 + $0x4c8] sm:$0xff] }
 0x3fa   :  { %2368 = vmatmul.f32.vlgmr.msra.gmra.mxu3 %v2140_v50 }
 0x3fd   :  { %v2046_v4 = vpop.f32.mrf.mxu1 }
 0x3fe   :  { %v2047_v61 = vadd.f32 %v2046_v4, %v3597_v55  ;;  %v3744_v55 = vpop.f32.mrf.mxu0  ;;  %v3748_v4 = vpop.f32.mrf.mxu3 }
 0x400   :  { %v2142_v15 = vmax.f32 %v2047_v61, 0.0  ;;  %2093 = vmatmul.f32.gmra.mxu1 %v2950_v5  ;;  %2306 = vmatmul.f32.gmra.mxu2 %v2173_v28  ;;  %v4010_v28 = vld [vmem:[#allocation25_spill] sm:$0xff] }
 0x401   :  { %v2179_v61 = vmax.f32 %v4010_v28, 0.0  ;;  %v2955_v28 = vld [vmem:[#allocation2 + $0x500] sm:$0xff] }
 0x402   :  { %2371 = vmatmul.f32.gmra.mxu3 %v2142_v15 }
 0x405   :  { %v2049_v37 = vpop.f32.mrf.mxu1 }
 0x406   :  { %v2050_v10 = vadd.f32 %v2049_v37, %v3600_v16  ;;  %v2501_v16 = vld [vmem:[#allocation10 + $0x20] sm:$0xff]  ;;  %v3751_v15 = vpop.f32.mrf.mxu0  ;;  %v2953_v37 = vld [vmem:[#allocation2 + $0x490] sm:$0xff] }
 0x407   :  { %2528 = vmatpush.msra.mxu0 %v2501_v16 }
 0x408   :  { %v2144_v6 = vmax.f32 %v2050_v10, 0.0  ;;  %2096 = vmatmul.f32.gmra.mxu1 %v2951_v3  ;;  %2309 = vmatmul.f32.gmra.mxu2 %v2175_v40  ;;  %v4011_v40 = vld [vmem:[#allocation26_spill] sm:$0xff] }
 0x409   :  { %v2181_v10 = vmax.f32 %v4011_v40, 0.0 }
 0x40a   :  { %2374 = vmatmul.f32.gmra.mxu3 %v2144_v6 }
 0x40d   :  { %v2052_v29 = vpop.f32.mrf.mxu1 }
 0x40e   :  { %v2053_v43 = vadd.f32 %v2052_v29, %v3603_v48  ;;  %v3754_v48 = vpop.f32.mrf.mxu3  ;;  %v3758_v3 = vpop.f32.mrf.mxu0 }
 0x410   :  { %v2146_v50 = vmax.f32 %v2053_v43, 0.0  ;;  %2099 = vmatmul.f32.gmra.mxu1 %v2952_v22  ;;  %2312 = vmatmul.f32.gmra.mxu2 %v2177_v60 }
 0x412   :  { %2377 = vmatmul.f32.gmra.mxu3 %v2146_v50  ;;  %v4012_v50 = vld [vmem:[#allocation27_spill] sm:$0xff] }
 0x413   :  { %v2183_v22 = vmax.f32 %v4012_v50, 0.0 }
 0x415   :  { %v2055_v57 = vpop.f32.mrf.mxu1 }
 0x416   :  { %v2056_v5 = vadd.f32 %v2055_v57, %v3606_v54  ;;  %v2500_v54 = vld [vmem:[#allocation10 + $0x18] sm:$0xff]  ;;  %v3760_v60 = vpop.f32.mrf.mxu3 }
 0x417   :  { %2529 = vmatpush.msra.mxu0 %v2500_v54 }
 0x418   :  { %v2148_v21 = vmax.f32 %v2056_v5, 0.0  ;;  %2102 = vmatmul.f32.gmra.mxu1 %v2953_v37  ;;  %2315 = vmatmul.f32.gmra.mxu2 %v2179_v61  ;;  %v3766_v61 = vpop.f32.mrf.mxu2 }
 0x41a   :  { %2380 = vmatmul.f32.gmra.mxu3 %v2148_v21  ;;  %v4013_v21 = vld [vmem:[#allocation28_spill] sm:$0xff] }
 0x41b   :  { %v2185_v37 = vmax.f32 %v4013_v21, 0.0  ;;  %v4015_v21 = vld [vmem:[#allocation30_spill] sm:$0xff] }
 0x41d   :  { %v2058_v19 = vpop.f32.mrf.mxu1 }
 0x41e   :  { %v2059_v6 = vadd.f32 %v2058_v19, %v3609_v56  ;;  %v3764_v56 = vpop.f32.mrf.mxu0  ;;  %v3770_v40 = vpop.f32.mrf.mxu3 }
 0x420   :  { %v2150_v29 = vmax.f32 %v2059_v6, 0.0  ;;  %2105 = vmatmul.f32.gmra.mxu1 %v2954_v33  ;;  %2318 = vmatmul.f32.gmra.mxu2 %v2181_v10  ;;  %v1842_v10 = vadd.f32 %v3659_v31, %v3618_v39  ;;  %v2956_v6 = vld [vmem:[#allocation2 + $0x538] sm:$0xff]  ;;  %v1845_v39 = vadd.f32 %v3665_v35, %v3621_v34  ;;  %v1848_v34 = vadd.f32 %v3672_v23, %v3624_v24 }
 0x422   :  { %2383 = vmatmul.f32.gmra.mxu3 %v2150_v29  ;;  %v2499_v29 = vld [vmem:[#allocation10 + $0x10] sm:$0xff]  ;;  %v1955_v33 = vadd.f32 %v3738_v0, %v1842_v10  ;;  %v1958_v0 = vadd.f32 %v3744_v55, %v1845_v39  ;;  %v1961_v55 = vadd.f32 %v3751_v15, %v1848_v34  ;;  %v1851_v39 = vadd.f32 %v3680_v47, %v3628_v1 }
 0x423   :  { %2530 = vmatpush.msra.mxu0 %v2499_v29  ;;  %v2498_v29 = vld [vmem:[#allocation10 + $0x8] sm:$0xff]  ;;  %v1854_v34 = vadd.f32 %v3687_v49, %v3632_v63  ;;  %v2960_v47 = vld [vmem:[#allocation2 + $0x618] sm:$0xff]  ;;  %v1857_v63 = vadd.f32 %v3693_v46, %v3636_v9 }
 0x425   :  { %v2061_v43 = vpop.f32.mrf.mxu1  ;;  %2531 = vmatpush.msra.mxu0 %v2498_v29  ;;  %v2497_v29 = vld [vmem:[#allocation10] sm:$0xff] }
 0x426   :  { %v2062_v16 = vadd.f32 %v2061_v43, %v3612_v44  ;;  %v3775_v54 = vpop.f32.mrf.mxu0  ;;  %v3777_v43 = vpop.f32.mrf.mxu2 }
 0x427   :  { %2532 = vmatpush.msra.mxu0 %v2497_v29 }
 0x428   :  { %v2152_v57 = vmax.f32 %v2062_v16, 0.0  ;;  %2108 = vmatmul.f32.gmra.mxu1 %v2955_v28  ;;  %2321 = vmatmul.f32.gmra.mxu2 %v2183_v22  ;;  %v3782_v28 = vpop.f32.mrf.mxu3 }
 0x42a   :  { %2386 = vmatmul.f32.gmra.mxu3 %v2152_v57  ;;  %v2957_v57 = vld [vmem:[#allocation2 + $0x570] sm:$0xff] }
 0x42d   :  { %v2064_v5 = vpop.f32.mrf.mxu1 }
 0x42e   :  { %v2065_v19 = vadd.f32 %v2064_v5, %v3615_v45  ;;  %v4014_v45 = vld [vmem:[#allocation29_spill] sm:$0xff]  ;;  %v3788_v10 = vpop.f32.mrf.mxu2 }
 0x42f   :  { %v2187_v22 = vmax.f32 %v4014_v45, 0.0  ;;  %v4016_v45 = vld [vmem:[#allocation31_spill] sm:$0xff] }
 0x430   :  { %v2154_v44 = vmax.f32 %v2065_v19, 0.0  ;;  %2111 = vmatmul.f32.gmra.mxu1 %v2956_v6  ;;  %2324 = vmatmul.f32.gmra.mxu2 %v2185_v37  ;;  %v2189_v37 = vmax.f32 %v4015_v21, 0.0  ;;  %v3786_v19 = vpop.f32.mrf.mxu0  ;;  %v2958_v6 = vld [vmem:[#allocation2 + $0x5a8] sm:$0xff] }
 0x431   :  { %v4017_v21 = vld [vmem:[#allocation32_spill] sm:$0xff] }
 0x432   :  { %2389 = vmatmul.f32.gmra.mxu3 %v2154_v44 }
 0x435   :  { %v2067_v50 = vpop.f32.mrf.mxu1 }
 0x436   :  { %v2068_v16 = vadd.f32 %v2067_v50, %v1955_v33  ;;  %v3792_v33 = vpop.f32.mrf.mxu3  ;;  %v3798_v24 = vpop.f32.mrf.mxu2 }
 0x438   :  { %v2156_v31 = vmax.f32 %v2068_v16, 0.0  ;;  %2114 = vmatmul.f32.gmra.mxu1 %v2957_v57  ;;  %2327 = vmatmul.f32.gmra.mxu2 %v2187_v22  ;;  %v2191_v22 = vmax.f32 %v4016_v45, 0.0  ;;  %v2959_v57 = vld [vmem:[#allocation2 + $0x5e0] sm:$0xff] }
 0x43a   :  { %2392 = vmatmul.f32.gmra.mxu3 %v2156_v31  ;;  %v1975_v31 = vpop.f32.mrf.mxu0 }
 0x43d   :  { %v2070_v5 = vpop.f32.mrf.mxu1 }
 0x43e   :  { %v2071_v44 = vadd.f32 %v2070_v5, %v1958_v0  ;;  %v1964_v0 = vadd.f32 %v3758_v3, %v1851_v39  ;;  %v3801_v5 = vpop.f32.mrf.mxu3  ;;  %v1967_v3 = vadd.f32 %v3764_v56, %v1854_v34  ;;  %v2961_v39 = vld [vmem:[#allocation2 + $0x650] sm:$0xff] }
 0x440   :  { %v2158_v35 = vmax.f32 %v2071_v44, 0.0  ;;  %2117 = vmatmul.f32.gmra.mxu1 %v2958_v6  ;;  %2330 = vmatmul.f32.gmra.mxu2 %v2189_v37  ;;  %v2193_v37 = vmax.f32 %v4017_v21, 0.0  ;;  %v3806_v6 = vpop.f32.mrf.mxu2 }
 0x442   :  { %2395 = vmatmul.f32.gmra.mxu3 %v2158_v35  ;;  %v1978_v35 = vpop.f32.mrf.mxu0 }
 0x445   :  { %v2073_v50 = vpop.f32.mrf.mxu1 }
 0x446   :  { %v2074_v16 = vadd.f32 %v2073_v50, %v1961_v55  ;;  %v4018_v50 = vld [vmem:[#allocation33_spill] sm:$0xff] }
 0x447   :  { %v2195_v45 = vmax.f32 %v4018_v50, 0.0 }
 0x448   :  { %v2160_v23 = vmax.f32 %v2074_v16, 0.0  ;;  %2120 = vmatmul.f32.gmra.mxu1 %v2959_v57  ;;  %2333 = vmatmul.f32.gmra.mxu2 %v2191_v22  ;;  %v3810_v16 = vpop.f32.mrf.mxu3 }
 0x44a   :  { %2398 = vmatmul.f32.gmra.mxu3 %v2160_v23  ;;  %v1970_v23 = vadd.f32 %v3775_v54, %v1857_v63  ;;  %v1981_v57 = vpop.f32.mrf.mxu0 }
 0x44d   :  { %v2076_v15 = vpop.f32.mrf.mxu1 }
 0x44e   :  { %v2077_v44 = vadd.f32 %v2076_v15, %v1964_v0  ;;  %v3815_v0 = vpop.f32.mrf.mxu2  ;;  %v4019_v15 = vld [vmem:[#allocation34_spill] sm:$0xff] }
 0x44f   :  { %v2197_v21 = vmax.f32 %v4019_v15, 0.0 }
 0x450   :  { %v2162_v1 = vmax.f32 %v2077_v44, 0.0  ;;  %2123 = vmatmul.f32.gmra.mxu1 %v2960_v47  ;;  %2336 = vmatmul.f32.gmra.mxu2 %v2193_v37  ;;  %v1860_v44 = vadd.f32 %v3700_v8, %v3640_v25  ;;  %v3820_v9 = vpop.f32.mrf.mxu3  ;;  %v4020_v47 = vld [vmem:[#allocation35_spill] sm:$0xff] }
 0x451   :  { %v2199_v29 = vmax.f32 %v4020_v47, 0.0  ;;  %v2963_v8 = vld [vmem:[#allocation2 + $0x6c0] sm:$0xff] }
 0x452   :  { %2401 = vmatmul.f32.gmra.mxu3 %v2162_v1  ;;  %v2962_v1 = vld [vmem:[#allocation2 + $0x688] sm:$0xff]  ;;  %v1973_v46 = vadd.f32 %v3786_v19, %v1860_v44 }
 0x453   :  { %v4021_v19 = vld [vmem:[#allocation36_spill] sm:$0xff] }
 0x455   :  { %v2079_v55 = vpop.f32.mrf.mxu1 }
 0x456   :  { %v2080_v22 = vadd.f32 %v2079_v55, %v1967_v3  ;;  %v1984_v3 = vpop.f32.mrf.mxu0  ;;  %v3824_v55 = vpop.f32.mrf.mxu2 }
 0x458   :  { %v2164_v49 = vmax.f32 %v2080_v22, 0.0  ;;  %2126 = vmatmul.f32.gmra.mxu1 %v2961_v39  ;;  %2339 = vmatmul.f32.gmra.mxu2 %v2195_v45  ;;  %v1863_v45 = vadd.f32 %v3708_v11, %v3644_v38  ;;  %v3828_v22 = vpop.f32.mrf.mxu3  ;;  %v2201_v39 = vmax.f32 %v4021_v19, 0.0  ;;  %v2964_v38 = vld [vmem:[#allocation2 + $0x6f8] sm:$0xff] }
 0x45a   :  { %2404 = vmatmul.f32.gmra.mxu3 %v2164_v49  ;;  %v1976_v63 = vadd.f32 %v1975_v31, %v1863_v45 }
 0x45d   :  { %v2082_v56 = vpop.f32.mrf.mxu1 }
 0x45e   :  { %v2083_v37 = vadd.f32 %v2082_v56, %v1970_v23  ;;  %v1866_v56 = vadd.f32 %v3715_v53, %v3648_v51  ;;  %v1987_v15 = vpop.f32.mrf.mxu0  ;;  %v3842_v51 = vld [vmem:[%s3974_s4] ss:$0 sm:$0xff] }
 0x45f   :  { %v2257_v47 = vadd.f32 %v3842_v51, %v3766_v61 }
 0x460   :  { %v2166_v34 = vmax.f32 %v2083_v37, 0.0  ;;  %2129 = vmatmul.f32.gmra.mxu1 %v2962_v1  ;;  %2342 = vmatmul.f32.gmra.mxu2 %v2197_v21  ;;  %v3833_v21 = vpop.f32.mrf.mxu2  ;;  %v1979_v11 = vadd.f32 %v1978_v35, %v1866_v56  ;;  %v3835_v44 = vpop.f32.mrf.mxu3  ;;  %v1869_v1 = vadd.f32 %v3721_v14, %v3652_v13 }
 0x462   :  { %2407 = vmatmul.f32.gmra.mxu3 %v2166_v34 }
 0x465   :  { %v2085_v54 = vpop.f32.mrf.mxu1 }
 0x466   :  { %v2086_v50 = vadd.f32 %v2085_v54, %v1973_v46  ;;  %v1990_v46 = vpop.f32.mrf.mxu0  ;;  %v1982_v54 = vadd.f32 %v1981_v57, %v1869_v1  ;;  %v1878_v1 = vadd.f32 %v3742_v12, %v3668_v18 }
 0x468   :  { %v2168_v25 = vmax.f32 %v2086_v50, 0.0  ;;  %2132 = vmatmul.f32.gmra.mxu1 %v2963_v8  ;;  %2345 = vmatmul.f32.gmra.mxu2 %v2199_v29 }
 0x46a   :  { %2410 = vmatmul.f32.gmra.mxu3 %v2168_v25  ;;  %v1872_v25 = vadd.f32 %v3728_v42, %v3656_v59  ;;  %v2263_v42 = vadd.f32 %v3842_v51, %v3788_v10 }
 0x46c   :  { %v1985_v8 = vadd.f32 %v1984_v3, %v1872_v25 }
 0x46d   :  { %v2088_v49 = vpop.f32.mrf.mxu1 }
 0x46e   :  { %v2089_v23 = vadd.f32 %v2088_v49, %v1976_v63  ;;  %v1993_v63 = vpop.f32.mrf.mxu0  ;;  %v2260_v49 = vadd.f32 %v3842_v51, %v3777_v43 }
 0x470   :  { %v2170_v37 = vmax.f32 %v2089_v23, 0.0  ;;  %2135 = vmatmul.f32.gmra.mxu1 %v2964_v38  ;;  %2348 = vmatmul.f32.gmra.mxu2 %v2201_v39  ;;  %v1875_v23 = vadd.f32 %v3734_v27, %v3662_v52  ;;  %v3852_v38 = vpop.f32.mrf.mxu2  ;;  %v1991_v27 = vadd.f32 %v1990_v46, %v1878_v1  ;;  %v2269_v46 = vadd.f32 %v3842_v51, %v3806_v6 }
 0x471   :  { %v1890_v1 = vadd.f32 %v3770_v40, %v3690_v36 }
 0x472   :  { %2413 = vmatmul.f32.gmra.mxu3 %v2170_v37  ;;  %v1988_v59 = vadd.f32 %v1987_v15, %v1875_v23 }
 0x475   :  { %v2091_v34 = vpop.f32.mrf.mxu1 }
 0x476   :  { %v2092_v31 = vadd.f32 %v2091_v34, %v1979_v11  ;;  %v1996_v43 = vpop.f32.mrf.mxu0 }
 0x478   :  { %v2172_v53 = vmax.f32 %v2092_v31, 0.0  ;;  %v3860_v15 = vpop.f32.mrf.mxu2 }
 0x47a   :  { %2416 = vmatmul.f32.gmra.mxu3 %v2172_v53 }
 0x47d   :  { %v2094_v35 = vpop.f32.mrf.mxu1  ;;  %v2369_v29 = vpop.f32.mrf.mxu3 }
 0x47e   :  { %v2095_v50 = vadd.f32 %v2094_v35, %v1982_v54  ;;  %v2370_v45 = vadd.f32 %v2369_v29, %v2257_v47  ;;  %v2266_v54 = vadd.f32 %v3842_v51, %v3798_v24 }
 0x480   :  { %v2174_v13 = vmax.f32 %v2095_v50, 0.0  ;;  %v2465_v14 = vmax.f32 %v2370_v45, 0.0  ;;  %v1881_v50 = vadd.f32 %v3748_v4, %v3674_v58  ;;  %v1999_v45 = vpop.f32.mrf.mxu0 }
 0x482   :  { %2419 = vmatmul.f32.gmra.mxu3 %v2174_v13  ;;  %2533 = vmatmul.f32.vlgmr.msra.gmra.mxu0 %v2465_v14  ;;  %v1994_v12 = vadd.f32 %v1993_v63, %v1881_v50  ;;  %v3866_v14 = vpop.f32.mrf.mxu2  ;;  %v2272_v63 = vadd.f32 %v3842_v51, %v3815_v0 }
 0x485   :  { %v2097_v57 = vpop.f32.mrf.mxu1  ;;  %v2372_v19 = vpop.f32.mrf.mxu3 }
 0x486   :  { %v2098_v39 = vadd.f32 %v2097_v57, %v1985_v8  ;;  %v2373_v61 = vadd.f32 %v2372_v19, %v2260_v49  ;;  %v1884_v57 = vadd.f32 %v3754_v48, %v3678_v7 }
 0x488   :  { %v2176_v56 = vmax.f32 %v2098_v39, 0.0  ;;  %v2466_v37 = vmax.f32 %v2373_v61, 0.0  ;;  %v2002_v4 = vpop.f32.mrf.mxu0  ;;  %v1997_v39 = vadd.f32 %v1996_v43, %v1884_v57 }
 0x48a   :  { %2422 = vmatmul.f32.gmra.mxu3 %v2176_v56  ;;  %2536 = vmatmul.f32.gmra.mxu0 %v2466_v37  ;;  %v1887_v37 = vadd.f32 %v3760_v60, %v3684_v17 }
 0x48c   :  { %v2000_v48 = vadd.f32 %v1999_v45, %v1887_v37  ;;  %v2281_v45 = vadd.f32 %v3842_v51, %v3852_v38 }
 0x48d   :  { %v2100_v3 = vpop.f32.mrf.mxu1  ;;  %v2375_v11 = vpop.f32.mrf.mxu3 }
 0x48e   :  { %v2101_v34 = vadd.f32 %v2100_v3, %v1988_v59  ;;  %v2376_v31 = vadd.f32 %v2375_v11, %v2263_v42  ;;  %v3874_v59 = vpop.f32.mrf.mxu2  ;;  %v2275_v11 = vadd.f32 %v3842_v51, %v3824_v55 }
 0x490   :  { %v2178_v53 = vmax.f32 %v2101_v34, 0.0  ;;  %v2467_v52 = vmax.f32 %v2376_v31, 0.0  ;;  %v2005_v3 = vpop.f32.mrf.mxu0 }
 0x492   :  { %2425 = vmatmul.f32.gmra.mxu3 %v2178_v53  ;;  %2539 = vmatmul.f32.gmra.mxu0 %v2467_v52  ;;  %v2003_v52 = vadd.f32 %v2002_v4, %v1890_v1 }
 0x495   :  { %v2103_v47 = vpop.f32.mrf.mxu1  ;;  %v2378_v10 = vpop.f32.mrf.mxu3 }
 0x496   :  { %v2104_v35 = vadd.f32 %v2103_v47, %v1991_v27  ;;  %v2379_v29 = vadd.f32 %v2378_v10, %v2266_v54  ;;  %v3880_v60 = vpop.f32.mrf.mxu2  ;;  %v2278_v27 = vadd.f32 %v3842_v51, %v3833_v21 }
 0x498   :  { %v2180_v25 = vmax.f32 %v2104_v35, 0.0  ;;  %v2468_v18 = vmax.f32 %v2379_v29, 0.0  ;;  %v2008_v55 = vpop.f32.mrf.mxu0  ;;  %v1893_v29 = vadd.f32 %v3782_v28, %v3696_v26  ;;  %v2284_v28 = vadd.f32 %v3842_v51, %v3860_v15 }
 0x49a   :  { %2428 = vmatmul.f32.gmra.mxu3 %v2180_v25  ;;  %2542 = vmatmul.f32.gmra.mxu0 %v2468_v18  ;;  %v2006_v40 = vadd.f32 %v2005_v3, %v1893_v29 }
 0x49d   :  { %v2106_v13 = vpop.f32.mrf.mxu1  ;;  %v2381_v24 = vpop.f32.mrf.mxu3 }
 0x49e   :  { %v2107_v8 = vadd.f32 %v2106_v13, %v1994_v12  ;;  %v2382_v49 = vadd.f32 %v2381_v24, %v2269_v46  ;;  %v2295_v25 = vpop.f32.mrf.mxu2  ;;  %v1896_v13 = vadd.f32 %v3792_v33, %v3702_v41 }
 0x4a0   :  { %v2182_v19 = vmax.f32 %v2107_v8, 0.0  ;;  %v2469_v58 = vmax.f32 %v2382_v49, 0.0  ;;  %v2011_v24 = vpop.f32.mrf.mxu0  ;;  %v2009_v26 = vadd.f32 %v2008_v55, %v1896_v13  ;;  %v1908_v55 = vadd.f32 %v3828_v22, %v3724_v62 }
 0x4a2   :  { %2431 = vmatmul.f32.gmra.mxu3 %v2182_v19  ;;  %2545 = vmatmul.f32.gmra.mxu0 %v2469_v58 }
 0x4a5   :  { %v2109_v61 = vpop.f32.mrf.mxu1  ;;  %v2384_v6 = vpop.f32.mrf.mxu3 }
 0x4a6   :  { %v2110_v23 = vadd.f32 %v2109_v61, %v1997_v39  ;;  %v2385_v56 = vadd.f32 %v2384_v6, %v2272_v63  ;;  %v2298_v38 = vpop.f32.mrf.mxu2  ;;  %v1899_v39 = vadd.f32 %v3801_v5, %v3706_v2  ;;  %v2287_v6 = vadd.f32 %v3842_v51, %v3866_v14 }
 0x4a7   :  { %v2299_v22 = vadd.f32 %v3842_v51, %v2298_v38  ;;  %v3915_v38 = vld [vmem:[%s3976_s6] ss:$0 sm:$0xff]  ;;  %s3128_s6 = smov [#allocation11]  }
 0x4a8   :  { %v2184_v42 = vmax.f32 %v2110_v23, 0.0  ;;  %v2470_v7 = vmax.f32 %v2385_v56, 0.0  ;;  %v2014_v41 = vpop.f32.mrf.mxu0  ;;  %v2012_v33 = vadd.f32 %v2011_v24, %v1899_v39  ;;  %s2666_s30 = sshll.u32 %s3128_s6, 4  ;;  %s2667_s30 = int_to_ptr.vmem [resolvable:$true] %s2666_s30 }
 0x4aa   :  { %2434 = vmatmul.f32.gmra.mxu3 %v2184_v42  ;;  %2548 = vmatmul.f32.gmra.mxu0 %v2470_v7  ;;  %v1902_v42 = vadd.f32 %v3810_v16, %v3712_v30 }
 0x4ac   :  { %v2015_v2 = vadd.f32 %v2014_v41, %v1902_v42 }
 0x4ad   :  { %v2112_v43 = vpop.f32.mrf.mxu1  ;;  %v2387_v0 = vpop.f32.mrf.mxu3 }
 0x4ae   :  { %v2113_v34 = vadd.f32 %v2112_v43, %v2000_v48  ;;  %v2388_v31 = vadd.f32 %v2387_v0, %v2275_v11  ;;  %v2301_v7 = vpop.f32.mrf.mxu2  ;;  %v2290_v11 = vadd.f32 %v3842_v51, %v3874_v59 }
 0x4b0   :  { %v2186_v53 = vmax.f32 %v2113_v34, 0.0  ;;  %v2471_v17 = vmax.f32 %v2388_v31, 0.0  ;;  %v2017_v5 = vpop.f32.mrf.mxu0  ;;  %v1905_v31 = vadd.f32 %v3820_v9, %v3718_v20  ;;  %v2296_v9 = vadd.f32 %v3842_v51, %v2295_v25 }
 0x4b2   :  { %2437 = vmatmul.f32.gmra.mxu3 %v2186_v53  ;;  %2551 = vmatmul.f32.gmra.mxu0 %v2471_v17  ;;  %v2018_v16 = vadd.f32 %v2017_v5, %v1905_v31  ;;  %v2293_v17 = vadd.f32 %v3842_v51, %v3880_v60 }
 0x4b5   :  { %v2115_v54 = vpop.f32.mrf.mxu1  ;;  %v2390_v47 = vpop.f32.mrf.mxu3 }
 0x4b6   :  { %v2116_v10 = vadd.f32 %v2115_v54, %v2003_v52  ;;  %v2391_v35 = vadd.f32 %v2390_v47, %v2278_v27  ;;  %v2304_v30 = vpop.f32.mrf.mxu2 }
 0x4b8   :  { %v2188_v50 = vmax.f32 %v2116_v10, 0.0  ;;  %v2472_v36 = vmax.f32 %v2391_v35, 0.0  ;;  %v2020_v47 = vpop.f32.mrf.mxu0 }
 0x4b9   :  { %v2021_v20 = vadd.f32 %v2020_v47, %v1908_v55 }
 0x4ba   :  { %2440 = vmatmul.f32.gmra.mxu3 %v2188_v50  ;;  %2554 = vmatmul.f32.gmra.mxu0 %v2472_v36 }
 0x4bd   :  { %v2118_v18 = vpop.f32.mrf.mxu1  ;;  %v2393_v12 = vpop.f32.mrf.mxu3 }
 0x4be   :  { %v2119_v21 = vadd.f32 %v2118_v18, %v2006_v40  ;;  %v2394_v46 = vadd.f32 %v2393_v12, %v2281_v45  ;;  %v2307_v29 = vpop.f32.mrf.mxu2  ;;  %v1911_v45 = vadd.f32 %v3835_v44, %v3730_v32 }
 0x4c0   :  { %v2190_v8 = vmax.f32 %v2119_v21, 0.0  ;;  %v2473_v49 = vmax.f32 %v2394_v46, 0.0  ;;  %v2023_v21 = vpop.f32.mrf.mxu0 }
 0x4c1   :  { %v2024_v62 = vadd.f32 %v2023_v21, %v1911_v45 }
 0x4c2   :  { %2443 = vmatmul.f32.gmra.mxu3 %v2190_v8  ;;  %2557 = vmatmul.f32.gmra.mxu0 %v2473_v49 }
 0x4c5   :  { %v2121_v57 = vpop.f32.mrf.mxu1  ;;  %v2396_v19 = vpop.f32.mrf.mxu3 }
 0x4c6   :  { %v2122_v58 = vadd.f32 %v2121_v57, %v2009_v26  ;;  %v2397_v4 = vadd.f32 %v2396_v19, %v2284_v28  ;;  %v2310_v8 = vpop.f32.mrf.mxu2  ;;  %v2302_v28 = vadd.f32 %v3842_v51, %v2301_v7 }
 0x4c7   :  { %v2311_v7 = vadd.f32 %v3842_v51, %v2310_v8 }
 0x4c8   :  { %v2192_v63 = vmax.f32 %v2122_v58, 0.0  ;;  %v2474_v61 = vmax.f32 %v2397_v4, 0.0  ;;  %v2305_v58 = vadd.f32 %v3842_v51, %v2304_v30 }
 0x4ca   :  { %2446 = vmatmul.f32.gmra.mxu3 %v2192_v63  ;;  %2560 = vmatmul.f32.gmra.mxu0 %v2474_v61 }
 0x4cd   :  { %v2124_v23 = vpop.f32.mrf.mxu1  ;;  %v2399_v56 = vpop.f32.mrf.mxu3 }
 0x4ce   :  { %v2125_v15 = vadd.f32 %v2124_v23, %v2012_v33  ;;  %v2400_v37 = vadd.f32 %v2399_v56, %v2287_v6  ;;  %v2313_v19 = vpop.f32.mrf.mxu2  ;;  %v2308_v6 = vadd.f32 %v3842_v51, %v2307_v29 }
 0x4d0   :  { %v2194_v48 = vmax.f32 %v2125_v15, 0.0  ;;  %v2475_v3 = vmax.f32 %v2400_v37, 0.0 }
 0x4d2   :  { %2449 = vmatmul.f32.gmra.mxu3 %v2194_v48  ;;  %2563 = vmatmul.f32.gmra.mxu0 %v2475_v3 }
 0x4d5   :  { %v2127_v43 = vpop.f32.mrf.mxu1  ;;  %v2402_v0 = vpop.f32.mrf.mxu3 }
 0x4d6   :  { %v2128_v14 = vadd.f32 %v2127_v43, %v2015_v2  ;;  %v2403_v34 = vadd.f32 %v2402_v0, %v2290_v11  ;;  %v2316_v33 = vpop.f32.mrf.mxu2  ;;  %v2314_v0 = vadd.f32 %v3842_v51, %v2313_v19 }
 0x4d8   :  { %v2196_v1 = vmax.f32 %v2128_v14, 0.0  ;;  %v2476_v53 = vmax.f32 %v2403_v34, 0.0 }
 0x4da   :  { %2452 = vmatmul.f32.gmra.mxu3 %v2196_v1  ;;  %2566 = vmatmul.f32.gmra.mxu0 %v2476_v53 }
 0x4dd   :  { %v2130_v52 = vpop.f32.mrf.mxu1  ;;  %v2405_v27 = vpop.f32.mrf.mxu3 }
 0x4de   :  { %v2131_v54 = vadd.f32 %v2130_v52, %v2018_v16  ;;  %v2406_v59 = vadd.f32 %v2405_v27, %v2293_v17  ;;  %v2319_v48 = vpop.f32.mrf.mxu2  ;;  %v2317_v16 = vadd.f32 %v3842_v51, %v2316_v33 }
 0x4df   :  { %v2320_v55 = vadd.f32 %v3842_v51, %v2319_v48 }
 0x4e0   :  { %v2198_v10 = vmax.f32 %v2131_v54, 0.0  ;;  %v2477_v35 = vmax.f32 %v2406_v59, 0.0 }
 0x4e2   :  { %2455 = vmatmul.f32.gmra.mxu3 %v2198_v10  ;;  %2569 = vmatmul.f32.gmra.mxu0 %v2477_v35 }
 0x4e5   :  { %v2133_v50 = vpop.f32.mrf.mxu1  ;;  %v2408_v36 = vpop.f32.mrf.mxu3 }
 0x4e6   :  { %v2134_v40 = vadd.f32 %v2133_v50, %v2021_v20  ;;  %v2409_v60 = vadd.f32 %v2408_v36, %v2296_v9  ;;  %v2322_v31 = vpop.f32.mrf.mxu2 }
 0x4e7   :  { %v2323_v36 = vadd.f32 %v3842_v51, %v2322_v31 }
 0x4e8   :  { %v2200_v18 = vmax.f32 %v2134_v40, 0.0  ;;  %v2478_v12 = vmax.f32 %v2409_v60, 0.0 }
 0x4ea   :  { %2458 = vmatmul.f32.gmra.mxu3 %v2200_v18  ;;  %2572 = vmatmul.f32.gmra.mxu0 %v2478_v12 }
 0x4ed   :  { %v2136_v46 = vpop.f32.mrf.mxu1  ;;  %v2411_v13 = vpop.f32.mrf.mxu3 }
 0x4ee   :  { %v2137_v24 = vadd.f32 %v2136_v46, %v2024_v62  ;;  %v2412_v25 = vadd.f32 %v2411_v13, %v2299_v22  ;;  %v2325_v47 = vpop.f32.mrf.mxu2 }
 0x4ef   :  { %v2326_v21 = vadd.f32 %v3842_v51, %v2325_v47 }
 0x4f0   :  { %v2202_v49 = vmax.f32 %v2137_v24, 0.0  ;;  %v2479_v26 = vmax.f32 %v2412_v25, 0.0 }
 0x4f2   :  { %2461 = vmatmul.f32.gmra.mxu3 %v2202_v49  ;;  %2575 = vmatmul.f32.gmra.mxu0 %v2479_v26 }
 0x4f5   :  { %v2414_v32 = vpop.f32.mrf.mxu3 }
 0x4f6   :  { %v2415_v44 = vadd.f32 %v2414_v32, %v2302_v28  ;;  %v2328_v50 = vpop.f32.mrf.mxu2 }
 0x4f7   :  { %v2329_v8 = vadd.f32 %v3842_v51, %v2328_v50 }
 0x4f8   :  { %v2480_v57 = vmax.f32 %v2415_v44, 0.0 }
 0x4fa   :  { %2578 = vmatmul.f32.gmra.mxu0 %v2480_v57 }
 0x4fd   :  { %v2417_v4 = vpop.f32.mrf.mxu3 }
 0x4fe   :  { %v2418_v39 = vadd.f32 %v2417_v4, %v2305_v58  ;;  %v2331_v62 = vpop.f32.mrf.mxu2 }
 0x4ff   :  { %v2534_v63 = vpop.f32.mrf.mxu0  ;;  %v2332_v19 = vadd.f32 %v3842_v51, %v2331_v62 }
 0x500   :  { %v2481_v61 = vmax.f32 %v2418_v39, 0.0  ;;  %v2535_v41 = vadd.f32 %v3915_v38, %v2534_v63 }
 0x502   :  { %2630 = vst [vmem:[#allocation11] sm:$0xff] %v2535_v41  ;;  %2581 = vmatmul.f32.gmra.mxu0 %v2481_v61 }
 0x505   :  { %v2420_v23 = vpop.f32.mrf.mxu3 }
 0x506   :  { %v2421_v56 = vadd.f32 %v2420_v23, %v2308_v6  ;;  %v2334_v28 = vpop.f32.mrf.mxu2 }
 0x507   :  { %v2537_v15 = vpop.f32.mrf.mxu0  ;;  %v2335_v33 = vadd.f32 %v3842_v51, %v2334_v28 }
 0x508   :  { %v2482_v37 = vmax.f32 %v2421_v56, 0.0  ;;  %v2538_v42 = vadd.f32 %v3915_v38, %v2537_v15 }
 0x50a   :  { %2631 = vst [vmem:[#allocation11 + $0x8] sm:$0xff] %v2538_v42  ;;  %2584 = vmatmul.f32.gmra.mxu0 %v2482_v37 }
 0x50d   :  { %v2423_v3 = vpop.f32.mrf.mxu3 }
 0x50e   :  { %v2424_v2 = vadd.f32 %v2423_v3, %v2311_v7  ;;  %v2337_v41 = vpop.f32.mrf.mxu2 }
 0x50f   :  { %v2540_v5 = vpop.f32.mrf.mxu0  ;;  %v2338_v7 = vadd.f32 %v3842_v51, %v2337_v41 }
 0x510   :  { %v2483_v11 = vmax.f32 %v2424_v2, 0.0  ;;  %v2541_v43 = vadd.f32 %v3915_v38, %v2540_v5 }
 0x512   :  { %2632 = vst [vmem:[#allocation11 + $0x10] sm:$0xff] %v2541_v43  ;;  %2587 = vmatmul.f32.gmra.mxu0 %v2483_v11 }
 0x515   :  { %v2426_v14 = vpop.f32.mrf.mxu3 }
 0x516   :  { %v2427_v34 = vadd.f32 %v2426_v14, %v2314_v0  ;;  %v2340_v42 = vpop.f32.mrf.mxu2 }
 0x517   :  { %v2543_v1 = vpop.f32.mrf.mxu0  ;;  %v2341_v43 = vadd.f32 %v3842_v51, %v2340_v42 }
 0x518   :  { %v2484_v53 = vmax.f32 %v2427_v34, 0.0  ;;  %v2544_v30 = vadd.f32 %v3915_v38, %v2543_v1 }
 0x51a   :  { %2633 = vst [vmem:[#allocation11 + $0x18] sm:$0xff] %v2544_v30  ;;  %2590 = vmatmul.f32.gmra.mxu0 %v2484_v53 }
 0x51d   :  { %v2429_v17 = vpop.f32.mrf.mxu3 }
 0x51e   :  { %v2430_v52 = vadd.f32 %v2429_v17, %v2317_v16  ;;  %v2343_v0 = vpop.f32.mrf.mxu2 }
 0x51f   :  { %v2546_v27 = vpop.f32.mrf.mxu0  ;;  %v2344_v30 = vadd.f32 %v3842_v51, %v2343_v0 }
 0x520   :  { %v2485_v54 = vmax.f32 %v2430_v52, 0.0  ;;  %v2547_v59 = vadd.f32 %v3915_v38, %v2546_v27 }
 0x522   :  { %2634 = vst [vmem:[#allocation11 + $0x20] sm:$0xff] %v2547_v59  ;;  %2593 = vmatmul.f32.gmra.mxu0 %v2485_v54 }
 0x525   :  { %v2432_v10 = vpop.f32.mrf.mxu3 }
 0x526   :  { %v2433_v35 = vadd.f32 %v2432_v10, %v2320_v55  ;;  %v2346_v52 = vpop.f32.mrf.mxu2 }
 0x527   :  { %v2549_v20 = vpop.f32.mrf.mxu0  ;;  %v2347_v47 = vadd.f32 %v3842_v51, %v2346_v52 }
 0x528   :  { %v2486_v9 = vmax.f32 %v2433_v35, 0.0  ;;  %v2550_v29 = vadd.f32 %v3915_v38, %v2549_v20 }
 0x52a   :  { %2635 = vst [vmem:[#allocation11 + $0x28] sm:$0xff] %v2550_v29  ;;  %2596 = vmatmul.f32.gmra.mxu0 %v2486_v9 }
 0x52d   :  { %v2435_v40 = vpop.f32.mrf.mxu3 }
 0x52e   :  { %v2436_v60 = vadd.f32 %v2435_v40, %v2323_v36  ;;  %v2349_v29 = vpop.f32.mrf.mxu2 }
 0x52f   :  { %v2552_v45 = vpop.f32.mrf.mxu0  ;;  %v2350_v50 = vadd.f32 %v3842_v51, %v2349_v29 }
 0x530   :  { %v2487_v18 = vmax.f32 %v2436_v60, 0.0  ;;  %v2553_v12 = vadd.f32 %v3915_v38, %v2552_v45 }
 0x532   :  { %2636 = vst [vmem:[#allocation11 + $0x30] sm:$0xff] %v2553_v12  ;;  %2599 = vmatmul.f32.gmra.mxu0 %v2487_v18 }
 0x535   :  { %v2438_v22 = vpop.f32.mrf.mxu3 }
 0x536   :  { %v2439_v46 = vadd.f32 %v2438_v22, %v2326_v21 }
 0x537   :  { %v2555_v13 = vpop.f32.mrf.mxu0 }
 0x538   :  { %v2488_v24 = vmax.f32 %v2439_v46, 0.0  ;;  %v2556_v25 = vadd.f32 %v3915_v38, %v2555_v13 }
 0x53a   :  { %2637 = vst [vmem:[#allocation11 + $0x38] sm:$0xff] %v2556_v25  ;;  %2602 = vmatmul.f32.gmra.mxu0 %v2488_v24 }
 0x53d   :  { %v2441_v49 = vpop.f32.mrf.mxu3 }
 0x53e   :  { %v2442_v26 = vadd.f32 %v2441_v49, %v2329_v8 }
 0x53f   :  { %v2558_v32 = vpop.f32.mrf.mxu0 }
 0x540   :  { %v2489_v44 = vmax.f32 %v2442_v26, 0.0  ;;  %v2559_v57 = vadd.f32 %v3915_v38, %v2558_v32 }
 0x542   :  { %2638 = vst [vmem:[#allocation11 + $0x40] sm:$0xff] %v2559_v57  ;;  %2605 = vmatmul.f32.gmra.mxu0 %v2489_v44 }
 0x545   :  { %v2444_v58 = vpop.f32.mrf.mxu3 }
 0x546   :  { %v2445_v4 = vadd.f32 %v2444_v58, %v2332_v19 }
 0x547   :  { %v2561_v39 = vpop.f32.mrf.mxu0 }
 0x548   :  { %v2490_v63 = vmax.f32 %v2445_v4, 0.0  ;;  %v2562_v61 = vadd.f32 %v3915_v38, %v2561_v39 }
 0x54a   :  { %2639 = vst [vmem:[#allocation11 + $0x48] sm:$0xff] %v2562_v61  ;;  %2608 = vmatmul.f32.gmra.mxu0 %v2490_v63 }
 0x54d   :  { %v2447_v6 = vpop.f32.mrf.mxu3 }
 0x54e   :  { %v2448_v23 = vadd.f32 %v2447_v6, %v2335_v33 }
 0x54f   :  { %v2564_v56 = vpop.f32.mrf.mxu0 }
 0x550   :  { %v2491_v15 = vmax.f32 %v2448_v23, 0.0  ;;  %v2565_v37 = vadd.f32 %v3915_v38, %v2564_v56 }
 0x552   :  { %2640 = vst [vmem:[#allocation11 + $0x50] sm:$0xff] %v2565_v37  ;;  %2611 = vmatmul.f32.gmra.mxu0 %v2491_v15 }
 0x555   :  { %v2450_v48 = vpop.f32.mrf.mxu3 }
 0x556   :  { %v2451_v3 = vadd.f32 %v2450_v48, %v2338_v7 }
 0x557   :  { %v2567_v2 = vpop.f32.mrf.mxu0 }
 0x558   :  { %v2492_v5 = vmax.f32 %v2451_v3, 0.0  ;;  %v2568_v11 = vadd.f32 %v3915_v38, %v2567_v2 }
 0x55a   :  { %2641 = vst [vmem:[#allocation11 + $0x58] sm:$0xff] %v2568_v11  ;;  %2614 = vmatmul.f32.gmra.mxu0 %v2492_v5 }
 0x55d   :  { %v2453_v14 = vpop.f32.mrf.mxu3 }
 0x55e   :  { %v2454_v34 = vadd.f32 %v2453_v14, %v2341_v43 }
 0x55f   :  { %v2570_v31 = vpop.f32.mrf.mxu0 }
 0x560   :  { %v2493_v1 = vmax.f32 %v2454_v34, 0.0  ;;  %v2571_v53 = vadd.f32 %v3915_v38, %v2570_v31 }
 0x562   :  { %2642 = vst [vmem:[#allocation11 + $0x60] sm:$0xff] %v2571_v53  ;;  %2617 = vmatmul.f32.gmra.mxu0 %v2493_v1 }
 0x565   :  { %v2456_v16 = vpop.f32.mrf.mxu3 }
 0x566   :  { %v2457_v17 = vadd.f32 %v2456_v16, %v2344_v30 }
 0x567   :  { %v2573_v27 = vpop.f32.mrf.mxu0 }
 0x568   :  { %v2494_v54 = vmax.f32 %v2457_v17, 0.0  ;;  %v2574_v59 = vadd.f32 %v3915_v38, %v2573_v27 }
 0x56a   :  { %2643 = vst [vmem:[#allocation11 + $0x68] sm:$0xff] %v2574_v59  ;;  %2620 = vmatmul.f32.gmra.mxu0 %v2494_v54 }
 0x56d   :  { %v2459_v55 = vpop.f32.mrf.mxu3 }
 0x56e   :  { %v2460_v10 = vadd.f32 %v2459_v55, %v2347_v47 }
 0x56f   :  { %v2576_v35 = vpop.f32.mrf.mxu0 }
 0x570   :  { %v2495_v20 = vmax.f32 %v2460_v10, 0.0  ;;  %v2577_v9 = vadd.f32 %v3915_v38, %v2576_v35 }
 0x572   :  { %2644 = vst [vmem:[#allocation11 + $0x70] sm:$0xff] %v2577_v9  ;;  %2623 = vmatmul.f32.gmra.mxu0 %v2495_v20 }
 0x575   :  { %v2462_v36 = vpop.f32.mrf.mxu3 }
 0x576   :  { %v2463_v40 = vadd.f32 %v2462_v36, %v2350_v50 }
 0x577   :  { %v2579_v60 = vpop.f32.mrf.mxu0 }
 0x578   :  { %v2496_v45 = vmax.f32 %v2463_v40, 0.0  ;;  %v2580_v18 = vadd.f32 %v3915_v38, %v2579_v60 }
 0x57a   :  { %2645 = vst [vmem:[#allocation11 + $0x78] sm:$0xff] %v2580_v18  ;;  %2626 = vmatmul.f32.gmra.mxu0 %v2496_v45 }
 0x57f   :  { %v2582_v12 = vpop.f32.mrf.mxu0 }
 0x580   :  { %v2583_v21 = vadd.f32 %v3915_v38, %v2582_v12 }
 0x582   :  { %2646 = vst [vmem:[#allocation11 + $0x80] sm:$0xff] %v2583_v21 }
 0x587   :  { %v2585_v62 = vpop.f32.mrf.mxu0 }
 0x588   :  { %v2586_v22 = vadd.f32 %v3915_v38, %v2585_v62 }
 0x58a   :  { %2647 = vst [vmem:[#allocation11 + $0x88] sm:$0xff] %v2586_v22 }
 0x58f   :  { %v2588_v46 = vpop.f32.mrf.mxu0 }
 0x590   :  { %v2589_v13 = vadd.f32 %v3915_v38, %v2588_v46 }
 0x592   :  { %2648 = vst [vmem:[#allocation11 + $0x90] sm:$0xff] %v2589_v13 }
 0x597   :  { %v2591_v51 = vpop.f32.mrf.mxu0 }
 0x598   :  { %v2592_v24 = vadd.f32 %v3915_v38, %v2591_v51 }
 0x59a   :  { %2649 = vst [vmem:[#allocation11 + $0x98] sm:$0xff] %v2592_v24 }
 0x59f   :  { %v2594_v25 = vpop.f32.mrf.mxu0 }
 0x5a0   :  { %v2595_v8 = vadd.f32 %v3915_v38, %v2594_v25 }
 0x5a2   :  { %2650 = vst [vmem:[#allocation11 + $0xa0] sm:$0xff] %v2595_v8 }
 0x5a7   :  { %v2597_v49 = vpop.f32.mrf.mxu0 }
 0x5a8   :  { %v2598_v26 = vadd.f32 %v3915_v38, %v2597_v49 }
 0x5aa   :  { %2651 = vst [vmem:[#allocation11 + $0xa8] sm:$0xff] %v2598_v26 }
 0x5af   :  { %v2600_v28 = vpop.f32.mrf.mxu0 }
 0x5b0   :  { %v2601_v32 = vadd.f32 %v3915_v38, %v2600_v28 }
 0x5b2   :  { %2652 = vst [vmem:[#allocation11 + $0xb0] sm:$0xff] %v2601_v32 }
 0x5b7   :  { %v2603_v44 = vpop.f32.mrf.mxu0 }
 0x5b8   :  { %v2604_v57 = vadd.f32 %v3915_v38, %v2603_v44 }
 0x5ba   :  { %2653 = vst [vmem:[#allocation11 + $0xb8] sm:$0xff] %v2604_v57 }
 0x5bf   :  { %v2606_v19 = vpop.f32.mrf.mxu0 }
 0x5c0   :  { %v2607_v58 = vadd.f32 %v3915_v38, %v2606_v19 }
 0x5c2   :  { %2654 = vst [vmem:[#allocation11 + $0xc0] sm:$0xff] %v2607_v58 }
 0x5c7   :  { %v2609_v4 = vpop.f32.mrf.mxu0 }
 0x5c8   :  { %v2610_v39 = vadd.f32 %v3915_v38, %v2609_v4 }
 0x5ca   :  { %2655 = vst [vmem:[#allocation11 + $0xc8] sm:$0xff] %v2610_v39 }
 0x5cf   :  { %v2612_v63 = vpop.f32.mrf.mxu0 }
 0x5d0   :  { %v2613_v61 = vadd.f32 %v3915_v38, %v2612_v63 }
 0x5d2   :  { %2656 = vst [vmem:[#allocation11 + $0xd0] sm:$0xff] %v2613_v61 }
 0x5d7   :  { %v2615_v41 = vpop.f32.mrf.mxu0 }
 0x5d8   :  { %v2616_v33 = vadd.f32 %v3915_v38, %v2615_v41 }
 0x5da   :  { %2657 = vst [vmem:[#allocation11 + $0xd8] sm:$0xff] %v2616_v33 }
 0x5df   :  { %v2618_v6 = vpop.f32.mrf.mxu0 }
 0x5e0   :  { %v2619_v23 = vadd.f32 %v3915_v38, %v2618_v6 }
 0x5e2   :  { %2658 = vst [vmem:[#allocation11 + $0xe0] sm:$0xff] %v2619_v23 }
 0x5e7   :  { %v2621_v56 = vpop.f32.mrf.mxu0 }
 0x5e8   :  { %v2622_v15 = vadd.f32 %v3915_v38, %v2621_v56 }
 0x5ea   :  { %2659 = vst [vmem:[#allocation11 + $0xe8] sm:$0xff] %v2622_v15 }
 0x5ef   :  { %v2624_v37 = vpop.f32.mrf.mxu0 }
 0x5f0   :  { %v2625_v42 = vadd.f32 %v3915_v38, %v2624_v37 }
 0x5f2   :  { %2660 = vst [vmem:[#allocation11 + $0xf0] sm:$0xff] %v2625_v42 }
 0x5f7   :  { %v2627_v7 = vpop.f32.mrf.mxu0 }
 0x5f8   :  { %v2628_v48 = vadd.f32 %v3915_v38, %v2627_v7 }
 0x5fa   :  { %2661 = vst [vmem:[#allocation11 + $0xf8] sm:$0xff] %v2628_v48 }
 0x5fb   :  { %2674 = dma.vmem_to_hbm [thread:$0]  %s2667_s30, 4096, %s2669_s10, [#allocation4], %s3121_s13, %s3121_s13, %s3122_s14  }
 0x5fc   :  { %3115 = dma.done.wait [#allocation4], 4096  }
 0x5fd   :  { %3116 = vsyncadd [#allocation4], 4294963200 }
 0x5fe   :  { %2679 = vsyncpa [#allocation3], 1 }
 0x5ff   :  { %2680 = vsyncpa [#allocation6], 1 }
 0x600   :  { %2681 = vsyncpa [#allocation9], 1 }
 0x601   :  { %2682 = vsyncpa [#allocation4], 1 }

</bundles_post_ra>
